<compile_context>
chip_gen: v7x
topology: tpu7x:2x2x1
jax: 0.10.0
libtpu: 0.0.40
codegen_flags: <defaults>
</compile_context>

<pallas_src>
import functools

import jax
import jax.numpy as jnp
from jax import lax
from jax.experimental import pallas as pl
from jax.experimental.pallas import tpu as pltpu


_BN_EPS = 1e-5

# Static conv-stack configuration.  Kept OUT of the jitted params pytree so
# strides / paddings stay concrete Python ints (the previous version put them
# inside `params`, which made jnp.pad see tracers and fail).
CONV_CONFIGS = (
    dict(c_in=1, c_out=32, kernel=(41, 11), stride=(2, 1), padding=(20, 5)),
    dict(c_in=32, c_out=32, kernel=(21, 11), stride=(2, 1), padding=(10, 5)),
    dict(c_in=32, c_out=96, kernel=(21, 11), stride=(2, 1), padding=(10, 5)),
)


def _round_up(x, m):
    return ((x + m - 1) // m) * m


# ----------------------------------------------------------------------------
# Fused matmul + per-output-channel affine (+ReLU) — tiled & pipelined
# ----------------------------------------------------------------------------

def _matmul_affine_kernel(a_ref, b_ref, s_ref, c_ref, o_ref, acc_ref, *, relu):
    """o = relu?( (A @ B) * scale + shift ).  K-axis accumulated in VMEM."""
    k = pl.program_id(2)

    @pl.when(k == 0)
    def _():
        acc_ref[...] = jnp.zeros_like(acc_ref)

    acc_ref[...] += jnp.dot(a_ref[...], b_ref[...],
                            preferred_element_type=jnp.float32)

    @pl.when(k == pl.num_programs(2) - 1)
    def _():
        y = acc_ref[...] * s_ref[...] + c_ref[...]
        if relu:
            y = jnp.maximum(y, 0.0)
        o_ref[...] = y


def matmul_affine(a, b, scale, shift, relu=False, tm=256, tk=512, tn=256):
    """relu?((a @ b) * scale + shift). a:(M,K), b:(K,N), scale/shift:(N,).

    Operands cast to bf16 (f32 accumulation), all dims padded so tiles are
    (8,128)-aligned and output stores are lane-dense.
    """
    M, K = a.shape
    N = b.shape[1]
    tm = min(tm, _round_up(M, 8))
    tk = min(tk, _round_up(K, 128))
    tn = min(tn, _round_up(N, 128))
    Mp, Kp, Np = _round_up(M, tm), _round_up(K, tk), _round_up(N, tn)

    a_p = jnp.pad(a, ((0, Mp - M), (0, Kp - K))).astype(jnp.bfloat16)
    b_p = jnp.pad(b, ((0, Kp - K), (0, Np - N))).astype(jnp.bfloat16)
    s_p = jnp.pad(scale.astype(jnp.float32), (0, Np - N)).reshape(1, Np)
    c_p = jnp.pad(shift.astype(jnp.float32), (0, Np - N)).reshape(1, Np)

    kern = functools.partial(_matmul_affine_kernel, relu=relu)
    out = pl.pallas_call(
        kern,
        out_shape=jax.ShapeDtypeStruct((Mp, Np), jnp.float32),
        grid=(Mp // tm, Np // tn, Kp // tk),
        in_specs=[
            pl.BlockSpec((tm, tk), lambda i, j, k: (i, k)),
            pl.BlockSpec((tk, tn), lambda i, j, k: (k, j)),
            pl.BlockSpec((1, tn), lambda i, j, k: (0, j)),
            pl.BlockSpec((1, tn), lambda i, j, k: (0, j)),
        ],
        out_specs=pl.BlockSpec((tm, tn), lambda i, j, k: (i, j)),
        scratch_shapes=[pltpu.VMEM((tm, tn), jnp.float32)],
        compiler_params=pltpu.CompilerParams(
            dimension_semantics=("parallel", "parallel", "arbitrary"),
            vmem_limit_bytes=32 * 1024 * 1024,
        ),
    )(a_p, b_p, s_p, c_p)
    return out[:M, :N]


# ----------------------------------------------------------------------------
# Fused Linear + log_softmax
# ----------------------------------------------------------------------------

def _fc_logsoftmax_kernel(x_ref, w_ref, b_ref, o_ref, *, valid_n):
    y = jnp.dot(x_ref[...], w_ref[...], preferred_element_type=jnp.float32)
    y = y + b_ref[...]
    col = lax.broadcasted_iota(jnp.int32, y.shape, 1)
    y = jnp.where(col < valid_n, y, -jnp.inf)      # mask lane padding
    m = jnp.max(y, axis=-1, keepdims=True)
    lse = m + jnp.log(jnp.sum(jnp.exp(y - m), axis=-1, keepdims=True))
    o_ref[...] = y - lse


def linear_logsoftmax(x, w_t, b, tm=256):
    M, K = x.shape
    N = w_t.shape[1]
    Kp = _round_up(K, 128)
    Np = _round_up(N, 128)
    tm = min(tm, _round_up(M, 8))
    Mp = _round_up(M, tm)

    x_p = jnp.pad(x, ((0, Mp - M), (0, Kp - K))).astype(jnp.bfloat16)
    w_p = jnp.pad(w_t, ((0, Kp - K), (0, Np - N))).astype(jnp.bfloat16)
    b_p = jnp.pad(b.astype(jnp.float32), (0, Np - N)).reshape(1, Np)

    kern = functools.partial(_fc_logsoftmax_kernel, valid_n=N)
    out = pl.pallas_call(
        kern,
        out_shape=jax.ShapeDtypeStruct((Mp, Np), jnp.float32),
        grid=(Mp // tm,),
        in_specs=[
            pl.BlockSpec((tm, Kp), lambda i: (i, 0)),
            pl.BlockSpec((Kp, Np), lambda i: (0, 0)),
            pl.BlockSpec((1, Np), lambda i: (0, 0)),
        ],
        out_specs=pl.BlockSpec((tm, Np), lambda i: (i, 0)),
        compiler_params=pltpu.CompilerParams(
            dimension_semantics=("parallel",)),
    )(x_p, w_p, b_p)
    return out[:M, :N]


# ----------------------------------------------------------------------------
# GRU recurrence: both directions in one kernel, time chunked, h in VMEM
# ----------------------------------------------------------------------------

def _gru_kernel(xp_ref, whh_ref, bhh_ref, o_ref, h_ref, *, hp, tc):
    @pl.when(pl.program_id(1) == 0)      # new direction / new sequence
    def _():
        h_ref[...] = jnp.zeros_like(h_ref)

    whh = whh_ref[...]                   # (Hp, 3Hp) bf16
    bhh = bhh_ref[...]                   # (1, 3Hp)  f32

    def step(s, h):
        xp = xp_ref[s]                   # (Bp, 3Hp) = x @ W_ih^T + b_ih
        hh = jnp.dot(h.astype(jnp.bfloat16), whh,
                     preferred_element_type=jnp.float32) + bhh
        r = jax.nn.sigmoid(xp[:, :hp] + hh[:, :hp])
        z = jax.nn.sigmoid(xp[:, hp:2 * hp] + hh[:, hp:2 * hp])
        n = jnp.tanh(xp[:, 2 * hp:] + r * hh[:, 2 * hp:])
        h_new = (1.0 - z) * n + z * h
        o_ref[s] = h_new
        return h_new

    h_ref[...] = lax.fori_loop(0, tc, step, h_ref[...], unroll=True)


def gru_recurrence(xp, whh, bhh, hp, tc):
    """xp: (nd, Tp, Bp, 3Hp) f32, whh: (nd, Hp, 3Hp) bf16, bhh: (nd, 1, 3Hp).
    Returns (nd, Tp, Bp, Hp) f32 hidden-state sequences (h0 = 0)."""
    nd, Tp, Bp, g3 = xp.shape
    kern = functools.partial(_gru_kernel, hp=hp, tc=tc)
    return pl.pallas_call(
        kern,
        out_shape=jax.ShapeDtypeStruct((nd, Tp, Bp, hp), jnp.float32),
        grid=(nd, Tp // tc),
        in_specs=[
            pl.BlockSpec((None, tc, Bp, g3), lambda d, c: (d, c, 0, 0)),
            pl.BlockSpec((None, hp, g3), lambda d, c: (d, 0, 0)),
            pl.BlockSpec((None, 1, g3), lambda d, c: (d, 0, 0)),
        ],
        out_specs=pl.BlockSpec((None, tc, Bp, hp), lambda d, c: (d, c, 0, 0)),
        scratch_shapes=[pltpu.VMEM((Bp, hp), jnp.float32)],
        compiler_params=pltpu.CompilerParams(
            dimension_semantics=("parallel", "arbitrary")),
    )(xp, whh, bhh)


# ----------------------------------------------------------------------------
# Model glue
# ----------------------------------------------------------------------------

def conv_bn_relu(x_nchw, cparams, cfg):
    """Conv2d + BatchNorm2d(eval) + ReLU via im2col + fused Pallas matmul."""
    w = cparams["weight"]                        # (C_out, C_in, KH, KW)
    bias = cparams["bias"]
    kh, kw = cfg["kernel"]
    sh, sw = cfg["stride"]
    ph, pw = cfg["padding"]

    B, C_in, H, W = x_nchw.shape
    C_out = w.shape[0]
    H_out = (H + 2 * ph - kh) // sh + 1
    W_out = (W + 2 * pw - kw) // sw + 1

    # TODO(synk): generate im2col patches per output tile inside the Pallas
    # kernel (strided DMA / implicit GEMM) instead of materializing the
    # KH*KW*C_in-expanded patch matrix in HBM.
    x_pad = jnp.pad(x_nchw, ((0, 0), (0, 0), (ph, ph), (pw, pw)))
    h_idx = jnp.arange(H_out)[:, None] * sh + jnp.arange(kh)[None, :]
    w_idx = jnp.arange(W_out)[:, None] * sw + jnp.arange(kw)[None, :]
    patches = x_pad[:, :, h_idx[:, None, :, None], w_idx[None, :, None, :]]
    patches = jnp.transpose(patches, (0, 2, 3, 1, 4, 5))
    patches = patches.reshape(B * H_out * W_out, C_in * kh * kw)

    w2d = w.reshape(C_out, C_in * kh * kw).T     # (K, C_out)

    bn_scale = cparams["gamma"] / jnp.sqrt(cparams["var"] + _BN_EPS)
    bn_shift = (bias - cparams["mean"]) * bn_scale + cparams["beta"]

    y = matmul_affine(patches, w2d, bn_scale, bn_shift, relu=True)
    y = y.reshape(B, H_out, W_out, C_out)
    return jnp.transpose(y, (0, 3, 1, 2))        # back to NCHW


def _pad_gate_cols(w, h, hp):
    """(..., 3H) -> (..., 3Hp): pad each gate block to hp lanes."""
    lead = w.shape[:-1]
    w3 = w.reshape(lead + (3, h))
    w3 = jnp.pad(w3, [(0, 0)] * len(lead) + [(0, 0), (0, hp - h)])
    return w3.reshape(lead + (3 * hp,))


def bidir_gru_layer(x, layer_params, hidden, in_scale=None, in_shift=None,
                    time_chunk=8):
    """x: (B, T, D) -> (B, T, num_dirs*hidden), exact PyTorch GRU math.

    The previous layer's eval-mode BatchNorm1d (in_scale/in_shift) is folded
    into W_ih / b_ih so no standalone affine pass over HBM is needed."""
    B, T, D = x.shape
    H = hidden
    Hp = _round_up(H, 128)
    Bp = _round_up(B, 8)
    Tp = _round_up(T, time_chunk)
    nd = len(layer_params)

    # Input projections for all directions in one lane-dense matmul (N = nd*3Hp)
    w_cat, b_cat = [], []
    for p in layer_params:
        w_ih = p["w_ih_t"]                       # (D, 3H)
        b_ih = p["b_ih"]                         # (3H,)
        if in_scale is not None:
            b_ih = b_ih + in_shift @ w_ih        # fold previous BatchNorm1d
            w_ih = w_ih * in_scale[:, None]
        w_cat.append(_pad_gate_cols(w_ih, H, Hp))
        b_cat.append(_pad_gate_cols(b_ih, H, Hp))
    w_cat = jnp.concatenate(w_cat, axis=1)       # (D, nd*3Hp)
    b_cat = jnp.concatenate(b_cat, axis=0)       # (nd*3Hp,)

    ones = jnp.ones((nd * 3 * Hp,), jnp.float32)
    xp = matmul_affine(x.reshape(B * T, D), w_cat, ones, b_cat, relu=False)
    xp = xp.reshape(B, T, nd, 3 * Hp)

    # time-major, one slab per direction (backward direction time-reversed)
    dirs = []
    for d in range(nd):
        xp_d = xp[:, :, d, :]
        if d == 1:
            xp_d = xp_d[:, ::-1, :]
        dirs.append(jnp.transpose(xp_d, (1, 0, 2)))      # (T, B, 3Hp)
    xp_tm = jnp.stack(dirs, axis=0)                      # (nd, T, B, 3Hp)
    xp_tm = jnp.pad(xp_tm, ((0, 0), (0, Tp - T), (0, Bp - B), (0, 0)))

    whh = jnp.stack(
        [_pad_gate_cols(jnp.pad(p["w_hh_t"], ((0, Hp - H), (0, 0))), H, Hp)
         for p in layer_params], axis=0).astype(jnp.bfloat16)  # (nd, Hp, 3Hp)
    bhh = jnp.stack(
        [_pad_gate_cols(p["b_hh"], H, Hp)[None, :] for p in layer_params],
        axis=0)                                                # (nd, 1, 3Hp)

    h_seq = gru_recurrence(xp_tm, whh, bhh, Hp, tc=time_chunk)  # (nd,Tp,Bp,Hp)
    h_seq = h_seq[:, :T, :B, :H]

    outs = []
    for d in range(nd):
        h_d = h_seq[d]
        if d == 1:
            h_d = h_d[::-1]                      # undo time reversal
        outs.append(jnp.transpose(h_d, (1, 0, 2)))       # (B, T, H)
    return jnp.concatenate(outs, axis=-1)                # (B, T, nd*H)


def deepspeech2_forward(params, spectrogram, spectrogram_length):
    """spectrogram: (B, F, T) float32; returns {"log_probs", "log_probs_length"}."""
    x = spectrogram[:, None, :, :]                       # (B,1,F,T)
    for cparams, cfg in zip(params["convs"], CONV_CONFIGS):
        x = conv_bn_relu(x, cparams, cfg)
    B, C, Freq, Time = x.shape
    x = jnp.transpose(x, (0, 3, 1, 2)).reshape(B, Time, C * Freq)

    hidden = params["grus"][0][0]["w_hh_t"].shape[0]
    in_scale = in_shift = None
    for layer_params, bn in zip(params["grus"], params["bns"]):
        x = bidir_gru_layer(x, layer_params, hidden,
                            in_scale=in_scale, in_shift=in_shift)
        scale = bn["gamma"] / jnp.sqrt(bn["var"] + _BN_EPS)
        shift = bn["beta"] - bn["mean"] * scale
        in_scale, in_shift = scale, shift        # folded into next consumer

    # fold the final BatchNorm1d into the FC layer
    fc_w = params["fc_w_t"]                      # (D, n_tokens)
    fc_b = params["fc_b"] + in_shift @ fc_w
    fc_w = fc_w * in_scale[:, None]

    D = x.shape[-1]
    log_probs = linear_logsoftmax(x.reshape(B * Time, D), fc_w, fc_b)
    log_probs = log_probs.reshape(B, Time, -1)

    log_probs_length = ((spectrogram_length - 1) // 2 + 1).astype(jnp.int32)
    return {"log_probs": log_probs, "log_probs_length": log_probs_length}


# ----------------------------------------------------------------------------
# Deterministic parameter construction (synthetic, no checkpoint)
# ----------------------------------------------------------------------------

def make_params(key, n_feats, n_tokens, rnn_hidden, rnn_layers, bidirectional=True):
    keys = list(jax.random.split(key, 256))

    def nxt():
        return keys.pop()

    def rnd(shape, s=0.05):
        return s * jax.random.normal(nxt(), shape, jnp.float32)

    convs = []
    freq = n_feats
    for cfg in CONV_CONFIGS:
        kh, kw = cfg["kernel"]
        sh, _ = cfg["stride"]
        ph, _ = cfg["padding"]
        co, ci = cfg["c_out"], cfg["c_in"]
        convs.append(dict(
            weight=rnd((co, ci, kh, kw)),
            bias=rnd((co,)),
            gamma=1.0 + rnd((co,)),
            beta=rnd((co,)),
            mean=rnd((co,)),
            var=1.0 + 0.1 * jnp.abs(rnd((co,), 1.0)),
        ))
        freq = (freq + 2 * ph - kh) // sh + 1

    num_dirs = 2 if bidirectional else 1
    gru_in = CONV_CONFIGS[-1]["c_out"] * freq
    D = rnn_hidden * num_dirs

    grus, bns = [], []
    in_size = gru_in
    for _ in range(rnn_layers):
        layer = []
        for _d in range(num_dirs):
            layer.append(dict(
                w_ih_t=rnd((3 * rnn_hidden, in_size)).T,     # (in_size, 3H)
                w_hh_t=rnd((3 * rnn_hidden, rnn_hidden)).T,  # (H, 3H)
                b_ih=rnd((3 * rnn_hidden,)),
                b_hh=rnd((3 * rnn_hidden,)),
            ))
        grus.append(layer)
        bns.append(dict(
            gamma=1.0 + rnd((D,)),
            beta=rnd((D,)),
            mean=rnd((D,)),
            var=1.0 + 0.1 * jnp.abs(rnd((D,), 1.0)),
        ))
        in_size = D

    return dict(
        convs=convs, grus=grus, bns=bns,
        fc_w_t=rnd((n_tokens, D)).T,             # (D, n_tokens)
        fc_b=rnd((n_tokens,)),
    )


# ----------------------------------------------------------------------------
# Main
# ----------------------------------------------------------------------------

if __name__ == "__main__":
    B, F, T = 2, 16, 8
    n_tokens, rnn_hidden, rnn_layers = 10, 32, 2

    key = jax.random.PRNGKey(0)
    pkey, xkey = jax.random.split(key)
    params = make_params(pkey, F, n_tokens, rnn_hidden, rnn_layers, True)

    spectrogram = jax.random.normal(xkey, (B, F, T), jnp.float32)
    spectrogram_length = jnp.array([T, T - 2], jnp.int32)

    fwd = jax.jit(deepspeech2_forward)
    out = fwd(params, spectrogram, spectrogram_length)
    jax.block_until_ready(out)

    assert out["log_probs"].shape == (B, T, n_tokens)
    assert out["log_probs_length"].shape == (B,)
    probs_sum = jnp.exp(out["log_probs"]).sum(-1)
    assert jnp.allclose(probs_sum, 1.0, atol=1e-4), "log_softmax rows must normalize"
    assert bool(jnp.all(jnp.isfinite(out["log_probs"]))), "log_probs must be finite"

    print("KERNEL_OK")
</pallas_src>

<mosaic_0001>
module attributes {stable_mosaic.version = 11 : i64} {
  func.func @_matmul_affine_kernel(%arg0: i32, %arg1: i32, %arg2: i32, %arg3: memref<128x512xbf16, #tpu.memory_space<vmem>>, %arg4: memref<512x128xbf16, #tpu.memory_space<vmem>>, %arg5: memref<1x128xf32, #tpu.memory_space<vmem>>, %arg6: memref<1x128xf32, #tpu.memory_space<vmem>>, %arg7: memref<128x128xf32, #tpu.memory_space<vmem>>, %arg8: memref<128x128xf32, #tpu.memory_space<vmem>>) attributes {dimension_semantics = [#tpu.dimension_semantics<parallel>, #tpu.dimension_semantics<parallel>, #tpu.dimension_semantics<arbitrary>], iteration_bounds = array<i64: 1, 1, 1>, scalar_prefetch = 0 : i64, scratch_operands = 1 : i64, tpu.core_type = #tpu.core_type<tc>, window_params = [{transform_indices = @transform_0, window_bounds = array<i64: 128, 512>}, {transform_indices = @transform_1, window_bounds = array<i64: 512, 128>}, {transform_indices = @transform_2, window_bounds = array<i64: 1, 128>}, {transform_indices = @transform_3, window_bounds = array<i64: 1, 128>}, {transform_indices = @transform_4, window_bounds = array<i64: 128, 128>}]} {
    %c0_i32 = arith.constant 0 : i32
    %0 = arith.cmpi eq, %arg2, %c0_i32 : i32
    %1 = arith.extui %0 : i1 to i32
    %c0_i32_0 = arith.constant 0 : i32
    %2 = arith.cmpi ne, %1, %c0_i32_0 : i32
    scf.if %2 {
      %cst_10 = arith.constant 0.000000e+00 : f32
      %12 = vector.broadcast %cst_10 : f32 to vector<128x128xf32>
      %c0_11 = arith.constant 0 : index
      %c0_12 = arith.constant 0 : index
      %13 = vector.load %arg8[%c0_11, %c0_12] : memref<128x128xf32, #tpu.memory_space<vmem>>, vector<128x128xf32>
      tpu.vector_store %arg8[%c0_11, %c0_12], %12 {strides = array<i32>} : memref<128x128xf32, #tpu.memory_space<vmem>>, vector<128x128xf32>,
    } else {
    }
    %c0 = arith.constant 0 : index
    %c0_1 = arith.constant 0 : index
    %3 = vector.load %arg8[%c0, %c0_1] : memref<128x128xf32, #tpu.memory_space<vmem>>, vector<128x128xf32>
    %c0_2 = arith.constant 0 : index
    %c0_3 = arith.constant 0 : index
    %4 = vector.load %arg3[%c0_2, %c0_3] : memref<128x512xbf16, #tpu.memory_space<vmem>>, vector<128x512xbf16>
    %c0_4 = arith.constant 0 : index
    %c0_5 = arith.constant 0 : index
    %5 = vector.load %arg4[%c0_4, %c0_5] : memref<512x128xbf16, #tpu.memory_space<vmem>>, vector<512x128xbf16>
    %cst = arith.constant dense<0.000000e+00> : vector<128x128xf32>
    %6 = tpu.matmul %4, %5, %cst {dimension_numbers = #tpu.dot_dimension_numbers<[1], [0], [0], [1], [0, 0, 1, 1], [], []>} : vector<128x512xbf16>, vector<512x128xbf16>, vector<128x128xf32> -> vector<128x128xf32>
    %7 = arith.addf %3, %6 : vector<128x128xf32>
    %c0_6 = arith.constant 0 : index
    %c0_7 = arith.constant 0 : index
    %8 = vector.load %arg8[%c0_6, %c0_7] : memref<128x128xf32, #tpu.memory_space<vmem>>, vector<128x128xf32>
    tpu.vector_store %arg8[%c0_6, %c0_7], %7 {strides = array<i32>} : memref<128x128xf32, #tpu.memory_space<vmem>>, vector<128x128xf32>,
    %c0_i32_8 = arith.constant 0 : i32
    %9 = arith.cmpi eq, %arg2, %c0_i32_8 : i32
    %10 = arith.extui %9 : i1 to i32
    %c0_i32_9 = arith.constant 0 : i32
    %11 = arith.cmpi ne, %10, %c0_i32_9 : i32
    scf.if %11 {
      %c0_10 = arith.constant 0 : index
      %c0_11 = arith.constant 0 : index
      %12 = vector.load %arg8[%c0_10, %c0_11] : memref<128x128xf32, #tpu.memory_space<vmem>>, vector<128x128xf32>
      %c0_12 = arith.constant 0 : index
      %c0_13 = arith.constant 0 : index
      %13 = vector.load %arg5[%c0_12, %c0_13] : memref<1x128xf32, #tpu.memory_space<vmem>>, vector<1x128xf32>
      %14 = vector.broadcast %13 : vector<1x128xf32> to vector<128x128xf32>
      %15 = arith.mulf %12, %14 : vector<128x128xf32>
      %c0_14 = arith.constant 0 : index
      %c0_15 = arith.constant 0 : index
      %16 = vector.load %arg6[%c0_14, %c0_15] : memref<1x128xf32, #tpu.memory_space<vmem>>, vector<1x128xf32>
      %17 = vector.broadcast %16 : vector<1x128xf32> to vector<128x128xf32>
      %18 = arith.addf %15, %17 : vector<128x128xf32>
      %cst_16 = arith.constant 0.000000e+00 : f32
      %19 = vector.broadcast %cst_16 : f32 to vector<128x128xf32>
      %20 = arith.maximumf %18, %19 : vector<128x128xf32>
      %c0_17 = arith.constant 0 : index
      %c0_18 = arith.constant 0 : index
      %21 = vector.load %arg7[%c0_17, %c0_18] : memref<128x128xf32, #tpu.memory_space<vmem>>, vector<128x128xf32>
      tpu.vector_store %arg7[%c0_17, %c0_18], %20 {strides = array<i32>} : memref<128x128xf32, #tpu.memory_space<vmem>>, vector<128x128xf32>,
    } else {
    }
    return
  }
  func.func @transform_0(%arg0: i32, %arg1: i32, %arg2: i32) -> (i32, i32) {
    %c0_i32 = arith.constant 0 : i32
    return %arg0, %arg2 : i32, i32
  }
  func.func @transform_1(%arg0: i32, %arg1: i32, %arg2: i32) -> (i32, i32) {
    %c0_i32 = arith.constant 0 : i32
    return %arg2, %arg1 : i32, i32
  }
  func.func @transform_2(%arg0: i32, %arg1: i32, %arg2: i32) -> (i32, i32) {
    %c0_i32 = arith.constant 0 : i32
    %c0_i32_0 = arith.constant 0 : i32
    return %c0_i32, %arg1 : i32, i32
  }
  func.func @transform_3(%arg0: i32, %arg1: i32, %arg2: i32) -> (i32, i32) {
    %c0_i32 = arith.constant 0 : i32
    %c0_i32_0 = arith.constant 0 : i32
    return %c0_i32, %arg1 : i32, i32
  }
  func.func @transform_4(%arg0: i32, %arg1: i32, %arg2: i32) -> (i32, i32) {
    %c0_i32 = arith.constant 0 : i32
    return %arg0, %arg1 : i32, i32
  }
}

module attributes {stable_mosaic.version = 11 : i64} {
  func.func @_matmul_affine_kernel(%arg0: i32, %arg1: i32, %arg2: i32, %arg3: memref<64x512xbf16, #tpu.memory_space<vmem>>, %arg4: memref<512x128xbf16, #tpu.memory_space<vmem>>, %arg5: memref<1x128xf32, #tpu.memory_space<vmem>>, %arg6: memref<1x128xf32, #tpu.memory_space<vmem>>, %arg7: memref<64x128xf32, #tpu.memory_space<vmem>>, %arg8: memref<64x128xf32, #tpu.memory_space<vmem>>) attributes {dimension_semantics = [#tpu.dimension_semantics<parallel>, #tpu.dimension_semantics<parallel>, #tpu.dimension_semantics<arbitrary>], iteration_bounds = array<i64: 1, 1, 15>, scalar_prefetch = 0 : i64, scratch_operands = 1 : i64, tpu.core_type = #tpu.core_type<tc>, window_params = [{transform_indices = @transform_0, window_bounds = array<i64: 64, 512>}, {transform_indices = @transform_1, window_bounds = array<i64: 512, 128>}, {transform_indices = @transform_2, window_bounds = array<i64: 1, 128>}, {transform_indices = @transform_3, window_bounds = array<i64: 1, 128>}, {transform_indices = @transform_4, window_bounds = array<i64: 64, 128>}]} {
    %c0_i32 = arith.constant 0 : i32
    %0 = arith.cmpi eq, %arg2, %c0_i32 : i32
    %1 = arith.extui %0 : i1 to i32
    %c0_i32_0 = arith.constant 0 : i32
    %2 = arith.cmpi ne, %1, %c0_i32_0 : i32
    scf.if %2 {
      %cst_9 = arith.constant 0.000000e+00 : f32
      %12 = vector.broadcast %cst_9 : f32 to vector<64x128xf32>
      %c0_10 = arith.constant 0 : index
      %c0_11 = arith.constant 0 : index
      %13 = vector.load %arg8[%c0_10, %c0_11] : memref<64x128xf32, #tpu.memory_space<vmem>>, vector<64x128xf32>
      tpu.vector_store %arg8[%c0_10, %c0_11], %12 {strides = array<i32>} : memref<64x128xf32, #tpu.memory_space<vmem>>, vector<64x128xf32>,
    } else {
    }
    %c0 = arith.constant 0 : index
    %c0_1 = arith.constant 0 : index
    %3 = vector.load %arg8[%c0, %c0_1] : memref<64x128xf32, #tpu.memory_space<vmem>>, vector<64x128xf32>
    %c0_2 = arith.constant 0 : index
    %c0_3 = arith.constant 0 : index
    %4 = vector.load %arg3[%c0_2, %c0_3] : memref<64x512xbf16, #tpu.memory_space<vmem>>, vector<64x512xbf16>
    %c0_4 = arith.constant 0 : index
    %c0_5 = arith.constant 0 : index
    %5 = vector.load %arg4[%c0_4, %c0_5] : memref<512x128xbf16, #tpu.memory_space<vmem>>, vector<512x128xbf16>
    %cst = arith.constant dense<0.000000e+00> : vector<64x128xf32>
    %6 = tpu.matmul %4, %5, %cst {dimension_numbers = #tpu.dot_dimension_numbers<[1], [0], [0], [1], [0, 0, 1, 1], [], []>} : vector<64x512xbf16>, vector<512x128xbf16>, vector<64x128xf32> -> vector<64x128xf32>
    %7 = arith.addf %3, %6 : vector<64x128xf32>
    %c0_6 = arith.constant 0 : index
    %c0_7 = arith.constant 0 : index
    %8 = vector.load %arg8[%c0_6, %c0_7] : memref<64x128xf32, #tpu.memory_space<vmem>>, vector<64x128xf32>
    tpu.vector_store %arg8[%c0_6, %c0_7], %7 {strides = array<i32>} : memref<64x128xf32, #tpu.memory_space<vmem>>, vector<64x128xf32>,
    %c14_i32 = arith.constant 14 : i32
    %9 = arith.cmpi eq, %arg2, %c14_i32 : i32
    %10 = arith.extui %9 : i1 to i32
    %c0_i32_8 = arith.constant 0 : i32
    %11 = arith.cmpi ne, %10, %c0_i32_8 : i32
    scf.if %11 {
      %c0_9 = arith.constant 0 : index
      %c0_10 = arith.constant 0 : index
      %12 = vector.load %arg8[%c0_9, %c0_10] : memref<64x128xf32, #tpu.memory_space<vmem>>, vector<64x128xf32>
      %c0_11 = arith.constant 0 : index
      %c0_12 = arith.constant 0 : index
      %13 = vector.load %arg5[%c0_11, %c0_12] : memref<1x128xf32, #tpu.memory_space<vmem>>, vector<1x128xf32>
      %14 = vector.broadcast %13 : vector<1x128xf32> to vector<64x128xf32>
      %15 = arith.mulf %12, %14 : vector<64x128xf32>
      %c0_13 = arith.constant 0 : index
      %c0_14 = arith.constant 0 : index
      %16 = vector.load %arg6[%c0_13, %c0_14] : memref<1x128xf32, #tpu.memory_space<vmem>>, vector<1x128xf32>
      %17 = vector.broadcast %16 : vector<1x128xf32> to vector<64x128xf32>
      %18 = arith.addf %15, %17 : vector<64x128xf32>
      %cst_15 = arith.constant 0.000000e+00 : f32
      %19 = vector.broadcast %cst_15 : f32 to vector<64x128xf32>
      %20 = arith.maximumf %18, %19 : vector<64x128xf32>
      %c0_16 = arith.constant 0 : index
      %c0_17 = arith.constant 0 : index
      %21 = vector.load %arg7[%c0_16, %c0_17] : memref<64x128xf32, #tpu.memory_space<vmem>>, vector<64x128xf32>
      tpu.vector_store %arg7[%c0_16, %c0_17], %20 {strides = array<i32>} : memref<64x128xf32, #tpu.memory_space<vmem>>, vector<64x128xf32>,
    } else {
    }
    return
  }
  func.func @transform_0(%arg0: i32, %arg1: i32, %arg2: i32) -> (i32, i32) {
    %c0_i32 = arith.constant 0 : i32
    return %arg0, %arg2 : i32, i32
  }
  func.func @transform_1(%arg0: i32, %arg1: i32, %arg2: i32) -> (i32, i32) {
    %c0_i32 = arith.constant 0 : i32
    return %arg2, %arg1 : i32, i32
  }
  func.func @transform_2(%arg0: i32, %arg1: i32, %arg2: i32) -> (i32, i32) {
    %c0_i32 = arith.constant 0 : i32
    %c0_i32_0 = arith.constant 0 : i32
    return %c0_i32, %arg1 : i32, i32
  }
  func.func @transform_3(%arg0: i32, %arg1: i32, %arg2: i32) -> (i32, i32) {
    %c0_i32 = arith.constant 0 : i32
    %c0_i32_0 = arith.constant 0 : i32
    return %c0_i32, %arg1 : i32, i32
  }
  func.func @transform_4(%arg0: i32, %arg1: i32, %arg2: i32) -> (i32, i32) {
    %c0_i32 = arith.constant 0 : i32
    return %arg0, %arg1 : i32, i32
  }
}

module attributes {stable_mosaic.version = 11 : i64} {
  func.func @_matmul_affine_kernel(%arg0: i32, %arg1: i32, %arg2: i32, %arg3: memref<32x512xbf16, #tpu.memory_space<vmem>>, %arg4: memref<512x128xbf16, #tpu.memory_space<vmem>>, %arg5: memref<1x128xf32, #tpu.memory_space<vmem>>, %arg6: memref<1x128xf32, #tpu.memory_space<vmem>>, %arg7: memref<32x128xf32, #tpu.memory_space<vmem>>, %arg8: memref<32x128xf32, #tpu.memory_space<vmem>>) attributes {dimension_semantics = [#tpu.dimension_semantics<parallel>, #tpu.dimension_semantics<parallel>, #tpu.dimension_semantics<arbitrary>], iteration_bounds = array<i64: 1, 1, 15>, scalar_prefetch = 0 : i64, scratch_operands = 1 : i64, tpu.core_type = #tpu.core_type<tc>, window_params = [{transform_indices = @transform_0, window_bounds = array<i64: 32, 512>}, {transform_indices = @transform_1, window_bounds = array<i64: 512, 128>}, {transform_indices = @transform_2, window_bounds = array<i64: 1, 128>}, {transform_indices = @transform_3, window_bounds = array<i64: 1, 128>}, {transform_indices = @transform_4, window_bounds = array<i64: 32, 128>}]} {
    %c0_i32 = arith.constant 0 : i32
    %0 = arith.cmpi eq, %arg2, %c0_i32 : i32
    %1 = arith.extui %0 : i1 to i32
    %c0_i32_0 = arith.constant 0 : i32
    %2 = arith.cmpi ne, %1, %c0_i32_0 : i32
    scf.if %2 {
      %cst_9 = arith.constant 0.000000e+00 : f32
      %12 = vector.broadcast %cst_9 : f32 to vector<32x128xf32>
      %c0_10 = arith.constant 0 : index
      %c0_11 = arith.constant 0 : index
      %13 = vector.load %arg8[%c0_10, %c0_11] : memref<32x128xf32, #tpu.memory_space<vmem>>, vector<32x128xf32>
      tpu.vector_store %arg8[%c0_10, %c0_11], %12 {strides = array<i32>} : memref<32x128xf32, #tpu.memory_space<vmem>>, vector<32x128xf32>,
    } else {
    }
    %c0 = arith.constant 0 : index
    %c0_1 = arith.constant 0 : index
    %3 = vector.load %arg8[%c0, %c0_1] : memref<32x128xf32, #tpu.memory_space<vmem>>, vector<32x128xf32>
    %c0_2 = arith.constant 0 : index
    %c0_3 = arith.constant 0 : index
    %4 = vector.load %arg3[%c0_2, %c0_3] : memref<32x512xbf16, #tpu.memory_space<vmem>>, vector<32x512xbf16>
    %c0_4 = arith.constant 0 : index
    %c0_5 = arith.constant 0 : index
    %5 = vector.load %arg4[%c0_4, %c0_5] : memref<512x128xbf16, #tpu.memory_space<vmem>>, vector<512x128xbf16>
    %cst = arith.constant dense<0.000000e+00> : vector<32x128xf32>
    %6 = tpu.matmul %4, %5, %cst {dimension_numbers = #tpu.dot_dimension_numbers<[1], [0], [0], [1], [0, 0, 1, 1], [], []>} : vector<32x512xbf16>, vector<512x128xbf16>, vector<32x128xf32> -> vector<32x128xf32>
    %7 = arith.addf %3, %6 : vector<32x128xf32>
    %c0_6 = arith.constant 0 : index
    %c0_7 = arith.constant 0 : index
    %8 = vector.load %arg8[%c0_6, %c0_7] : memref<32x128xf32, #tpu.memory_space<vmem>>, vector<32x128xf32>
    tpu.vector_store %arg8[%c0_6, %c0_7], %7 {strides = array<i32>} : memref<32x128xf32, #tpu.memory_space<vmem>>, vector<32x128xf32>,
    %c14_i32 = arith.constant 14 : i32
    %9 = arith.cmpi eq, %arg2, %c14_i32 : i32
    %10 = arith.extui %9 : i1 to i32
    %c0_i32_8 = arith.constant 0 : i32
    %11 = arith.cmpi ne, %10, %c0_i32_8 : i32
    scf.if %11 {
      %c0_9 = arith.constant 0 : index
      %c0_10 = arith.constant 0 : index
      %12 = vector.load %arg8[%c0_9, %c0_10] : memref<32x128xf32, #tpu.memory_space<vmem>>, vector<32x128xf32>
      %c0_11 = arith.constant 0 : index
      %c0_12 = arith.constant 0 : index
      %13 = vector.load %arg5[%c0_11, %c0_12] : memref<1x128xf32, #tpu.memory_space<vmem>>, vector<1x128xf32>
      %14 = vector.broadcast %13 : vector<1x128xf32> to vector<32x128xf32>
      %15 = arith.mulf %12, %14 : vector<32x128xf32>
      %c0_13 = arith.constant 0 : index
      %c0_14 = arith.constant 0 : index
      %16 = vector.load %arg6[%c0_13, %c0_14] : memref<1x128xf32, #tpu.memory_space<vmem>>, vector<1x128xf32>
      %17 = vector.broadcast %16 : vector<1x128xf32> to vector<32x128xf32>
      %18 = arith.addf %15, %17 : vector<32x128xf32>
      %cst_15 = arith.constant 0.000000e+00 : f32
      %19 = vector.broadcast %cst_15 : f32 to vector<32x128xf32>
      %20 = arith.maximumf %18, %19 : vector<32x128xf32>
      %c0_16 = arith.constant 0 : index
      %c0_17 = arith.constant 0 : index
      %21 = vector.load %arg7[%c0_16, %c0_17] : memref<32x128xf32, #tpu.memory_space<vmem>>, vector<32x128xf32>
      tpu.vector_store %arg7[%c0_16, %c0_17], %20 {strides = array<i32>} : memref<32x128xf32, #tpu.memory_space<vmem>>, vector<32x128xf32>,
    } else {
    }
    return
  }
  func.func @transform_0(%arg0: i32, %arg1: i32, %arg2: i32) -> (i32, i32) {
    %c0_i32 = arith.constant 0 : i32
    return %arg0, %arg2 : i32, i32
  }
  func.func @transform_1(%arg0: i32, %arg1: i32, %arg2: i32) -> (i32, i32) {
    %c0_i32 = arith.constant 0 : i32
    return %arg2, %arg1 : i32, i32
  }
  func.func @transform_2(%arg0: i32, %arg1: i32, %arg2: i32) -> (i32, i32) {
    %c0_i32 = arith.constant 0 : i32
    %c0_i32_0 = arith.constant 0 : i32
    return %c0_i32, %arg1 : i32, i32
  }
  func.func @transform_3(%arg0: i32, %arg1: i32, %arg2: i32) -> (i32, i32) {
    %c0_i32 = arith.constant 0 : i32
    %c0_i32_0 = arith.constant 0 : i32
    return %c0_i32, %arg1 : i32, i32
  }
  func.func @transform_4(%arg0: i32, %arg1: i32, %arg2: i32) -> (i32, i32) {
    %c0_i32 = arith.constant 0 : i32
    return %arg0, %arg1 : i32, i32
  }
}

module attributes {stable_mosaic.version = 11 : i64} {
  func.func @_matmul_affine_kernel(%arg0: i32, %arg1: i32, %arg2: i32, %arg3: memref<16x256xbf16, #tpu.memory_space<vmem>>, %arg4: memref<256x256xbf16, #tpu.memory_space<vmem>>, %arg5: memref<1x256xf32, #tpu.memory_space<vmem>>, %arg6: memref<1x256xf32, #tpu.memory_space<vmem>>, %arg7: memref<16x256xf32, #tpu.memory_space<vmem>>, %arg8: memref<16x256xf32, #tpu.memory_space<vmem>>) attributes {dimension_semantics = [#tpu.dimension_semantics<parallel>, #tpu.dimension_semantics<parallel>, #tpu.dimension_semantics<arbitrary>], iteration_bounds = array<i64: 1, 3, 1>, scalar_prefetch = 0 : i64, scratch_operands = 1 : i64, tpu.core_type = #tpu.core_type<tc>, window_params = [{transform_indices = @transform_0, window_bounds = array<i64: 16, 256>}, {transform_indices = @transform_1, window_bounds = array<i64: 256, 256>}, {transform_indices = @transform_2, window_bounds = array<i64: 1, 256>}, {transform_indices = @transform_3, window_bounds = array<i64: 1, 256>}, {transform_indices = @transform_4, window_bounds = array<i64: 16, 256>}]} {
    %c0_i32 = arith.constant 0 : i32
    %0 = arith.cmpi eq, %arg2, %c0_i32 : i32
    %1 = arith.extui %0 : i1 to i32
    %c0_i32_0 = arith.constant 0 : i32
    %2 = arith.cmpi ne, %1, %c0_i32_0 : i32
    scf.if %2 {
      %cst_10 = arith.constant 0.000000e+00 : f32
      %12 = vector.broadcast %cst_10 : f32 to vector<16x256xf32>
      %c0_11 = arith.constant 0 : index
      %c0_12 = arith.constant 0 : index
      %13 = vector.load %arg8[%c0_11, %c0_12] : memref<16x256xf32, #tpu.memory_space<vmem>>, vector<16x256xf32>
      tpu.vector_store %arg8[%c0_11, %c0_12], %12 {strides = array<i32>} : memref<16x256xf32, #tpu.memory_space<vmem>>, vector<16x256xf32>,
    } else {
    }
    %c0 = arith.constant 0 : index
    %c0_1 = arith.constant 0 : index
    %3 = vector.load %arg8[%c0, %c0_1] : memref<16x256xf32, #tpu.memory_space<vmem>>, vector<16x256xf32>
    %c0_2 = arith.constant 0 : index
    %c0_3 = arith.constant 0 : index
    %4 = vector.load %arg3[%c0_2, %c0_3] : memref<16x256xbf16, #tpu.memory_space<vmem>>, vector<16x256xbf16>
    %c0_4 = arith.constant 0 : index
    %c0_5 = arith.constant 0 : index
    %5 = vector.load %arg4[%c0_4, %c0_5] : memref<256x256xbf16, #tpu.memory_space<vmem>>, vector<256x256xbf16>
    %cst = arith.constant dense<0.000000e+00> : vector<16x256xf32>
    %6 = tpu.matmul %4, %5, %cst {dimension_numbers = #tpu.dot_dimension_numbers<[1], [0], [0], [1], [0, 0, 1, 1], [], []>} : vector<16x256xbf16>, vector<256x256xbf16>, vector<16x256xf32> -> vector<16x256xf32>
    %7 = arith.addf %3, %6 : vector<16x256xf32>
    %c0_6 = arith.constant 0 : index
    %c0_7 = arith.constant 0 : index
    %8 = vector.load %arg8[%c0_6, %c0_7] : memref<16x256xf32, #tpu.memory_space<vmem>>, vector<16x256xf32>
    tpu.vector_store %arg8[%c0_6, %c0_7], %7 {strides = array<i32>} : memref<16x256xf32, #tpu.memory_space<vmem>>, vector<16x256xf32>,
    %c0_i32_8 = arith.constant 0 : i32
    %9 = arith.cmpi eq, %arg2, %c0_i32_8 : i32
    %10 = arith.extui %9 : i1 to i32
    %c0_i32_9 = arith.constant 0 : i32
    %11 = arith.cmpi ne, %10, %c0_i32_9 : i32
    scf.if %11 {
      %c0_10 = arith.constant 0 : index
      %c0_11 = arith.constant 0 : index
      %12 = vector.load %arg8[%c0_10, %c0_11] : memref<16x256xf32, #tpu.memory_space<vmem>>, vector<16x256xf32>
      %c0_12 = arith.constant 0 : index
      %c0_13 = arith.constant 0 : index
      %13 = vector.load %arg5[%c0_12, %c0_13] : memref<1x256xf32, #tpu.memory_space<vmem>>, vector<1x256xf32>
      %14 = vector.broadcast %13 : vector<1x256xf32> to vector<16x256xf32>
      %15 = arith.mulf %12, %14 : vector<16x256xf32>
      %c0_14 = arith.constant 0 : index
      %c0_15 = arith.constant 0 : index
      %16 = vector.load %arg6[%c0_14, %c0_15] : memref<1x256xf32, #tpu.memory_space<vmem>>, vector<1x256xf32>
      %17 = vector.broadcast %16 : vector<1x256xf32> to vector<16x256xf32>
      %18 = arith.addf %15, %17 : vector<16x256xf32>
      %c0_16 = arith.constant 0 : index
      %c0_17 = arith.constant 0 : index
      %19 = vector.load %arg7[%c0_16, %c0_17] : memref<16x256xf32, #tpu.memory_space<vmem>>, vector<16x256xf32>
      tpu.vector_store %arg7[%c0_16, %c0_17], %18 {strides = array<i32>} : memref<16x256xf32, #tpu.memory_space<vmem>>, vector<16x256xf32>,
    } else {
    }
    return
  }
  func.func @transform_0(%arg0: i32, %arg1: i32, %arg2: i32) -> (i32, i32) {
    %c0_i32 = arith.constant 0 : i32
    return %arg0, %arg2 : i32, i32
  }
  func.func @transform_1(%arg0: i32, %arg1: i32, %arg2: i32) -> (i32, i32) {
    %c0_i32 = arith.constant 0 : i32
    return %arg2, %arg1 : i32, i32
  }
  func.func @transform_2(%arg0: i32, %arg1: i32, %arg2: i32) -> (i32, i32) {
    %c0_i32 = arith.constant 0 : i32
    %c0_i32_0 = arith.constant 0 : i32
    return %c0_i32, %arg1 : i32, i32
  }
  func.func @transform_3(%arg0: i32, %arg1: i32, %arg2: i32) -> (i32, i32) {
    %c0_i32 = arith.constant 0 : i32
    %c0_i32_0 = arith.constant 0 : i32
    return %c0_i32, %arg1 : i32, i32
  }
  func.func @transform_4(%arg0: i32, %arg1: i32, %arg2: i32) -> (i32, i32) {
    %c0_i32 = arith.constant 0 : i32
    return %arg0, %arg1 : i32, i32
  }
}

module attributes {stable_mosaic.version = 11 : i64} {
  func.func @_gru_kernel(%arg0: i32, %arg1: i32, %arg2: memref<1x8x8x384xf32, #tpu.memory_space<vmem>>, %arg3: memref<1x128x384xbf16, #tpu.memory_space<vmem>>, %arg4: memref<1x1x384xf32, #tpu.memory_space<vmem>>, %arg5: memref<1x8x8x128xf32, #tpu.memory_space<vmem>>, %arg6: memref<8x128xf32, #tpu.memory_space<vmem>>) attributes {dimension_semantics = [#tpu.dimension_semantics<parallel>, #tpu.dimension_semantics<arbitrary>], iteration_bounds = array<i64: 2, 1>, scalar_prefetch = 0 : i64, scratch_operands = 1 : i64, tpu.core_type = #tpu.core_type<tc>, window_params = [{transform_indices = @transform_0, window_bounds = array<i64: 1, 8, 8, 384>}, {transform_indices = @transform_1, window_bounds = array<i64: 1, 128, 384>}, {transform_indices = @transform_2, window_bounds = array<i64: 1, 1, 384>}, {transform_indices = @transform_3, window_bounds = array<i64: 1, 8, 8, 128>}]} {
    %c0_i32 = arith.constant 0 : i32
    %0 = arith.cmpi eq, %arg1, %c0_i32 : i32
    %1 = arith.extui %0 : i1 to i32
    %c0_i32_0 = arith.constant 0 : i32
    %2 = arith.cmpi ne, %1, %c0_i32_0 : i32
    scf.if %2 {
      %cst_90 = arith.constant 0.000000e+00 : f32
      %305 = vector.broadcast %cst_90 : f32 to vector<8x128xf32>
      %c0_91 = arith.constant 0 : index
      %c0_92 = arith.constant 0 : index
      %306 = vector.load %arg6[%c0_91, %c0_92] : memref<8x128xf32, #tpu.memory_space<vmem>>, vector<8x128xf32>
      tpu.vector_store %arg6[%c0_91, %c0_92], %305 {strides = array<i32>} : memref<8x128xf32, #tpu.memory_space<vmem>>, vector<8x128xf32>,
    } else {
    }
    %c0 = arith.constant 0 : index
    %c0_1 = arith.constant 0 : index
    %c0_2 = arith.constant 0 : index
    %3 = vector.load %arg3[%c0, %c0_1, %c0_2] : memref<1x128x384xbf16, #tpu.memory_space<vmem>>, vector<1x128x384xbf16>
    %4 = vector.shape_cast %3 : vector<1x128x384xbf16> to vector<128x384xbf16>
    %c0_3 = arith.constant 0 : index
    %c0_4 = arith.constant 0 : index
    %c0_5 = arith.constant 0 : index
    %5 = vector.load %arg4[%c0_3, %c0_4, %c0_5] : memref<1x1x384xf32, #tpu.memory_space<vmem>>, vector<1x1x384xf32>
    %6 = vector.shape_cast %5 : vector<1x1x384xf32> to vector<1x384xf32>
    %c0_6 = arith.constant 0 : index
    %c0_7 = arith.constant 0 : index
    %7 = vector.load %arg6[%c0_6, %c0_7] : memref<8x128xf32, #tpu.memory_space<vmem>>, vector<8x128xf32>
    %c0_i32_8 = arith.constant 0 : i32
    %c0_9 = arith.constant 0 : index
    %8 = arith.index_cast %c0_i32_8 : i32 to index
    %c0_10 = arith.constant 0 : index
    %c0_11 = arith.constant 0 : index
    %9 = vector.load %arg2[%c0_9, %8, %c0_10, %c0_11] : memref<1x8x8x384xf32, #tpu.memory_space<vmem>>, vector<1x1x8x384xf32>
    %10 = vector.shape_cast %9 : vector<1x1x8x384xf32> to vector<8x384xf32>
    %11 = arith.truncf %7 : vector<8x128xf32> to vector<8x128xbf16>
    %cst = arith.constant dense<0.000000e+00> : vector<8x384xf32>
    %12 = tpu.matmul %11, %4, %cst {dimension_numbers = #tpu.dot_dimension_numbers<[1], [0], [0], [1], [0, 0, 1, 1], [], []>} : vector<8x128xbf16>, vector<128x384xbf16>, vector<8x384xf32> -> vector<8x384xf32>
    %13 = vector.broadcast %6 : vector<1x384xf32> to vector<8x384xf32>
    %14 = arith.addf %12, %13 : vector<8x384xf32>
    %15 = vector.extract_strided_slice %10 {offsets = [0, 0], sizes = [8, 128], strides = [1, 1]} : vector<8x384xf32> to vector<8x128xf32>
    %16 = vector.extract_strided_slice %14 {offsets = [0, 0], sizes = [8, 128], strides = [1, 1]} : vector<8x384xf32> to vector<8x128xf32>
    %17 = arith.addf %15, %16 : vector<8x128xf32>
    %18 = arith.negf %17 : vector<8x128xf32>
    %19 = math.exp %18 : vector<8x128xf32>
    %cst_12 = arith.constant 1.000000e+00 : f32
    %20 = vector.broadcast %cst_12 : f32 to vector<8x128xf32>
    %21 = arith.addf %20, %19 : vector<8x128xf32>
    %22 = arith.divf %20, %21 : vector<8x128xf32>
    %23 = vector.extract_strided_slice %10 {offsets = [0, 128], sizes = [8, 128], strides = [1, 1]} : vector<8x384xf32> to vector<8x128xf32>
    %24 = vector.extract_strided_slice %14 {offsets = [0, 128], sizes = [8, 128], strides = [1, 1]} : vector<8x384xf32> to vector<8x128xf32>
    %25 = arith.addf %23, %24 : vector<8x128xf32>
    %26 = arith.negf %25 : vector<8x128xf32>
    %27 = math.exp %26 : vector<8x128xf32>
    %cst_13 = arith.constant 1.000000e+00 : f32
    %28 = vector.broadcast %cst_13 : f32 to vector<8x128xf32>
    %29 = arith.addf %28, %27 : vector<8x128xf32>
    %30 = arith.divf %28, %29 : vector<8x128xf32>
    %31 = vector.extract_strided_slice %10 {offsets = [0, 256], sizes = [8, 128], strides = [1, 1]} : vector<8x384xf32> to vector<8x128xf32>
    %32 = vector.extract_strided_slice %14 {offsets = [0, 256], sizes = [8, 128], strides = [1, 1]} : vector<8x384xf32> to vector<8x128xf32>
    %33 = arith.mulf %22, %32 : vector<8x128xf32>
    %34 = arith.addf %31, %33 : vector<8x128xf32>
    %35 = math.tanh %34 : vector<8x128xf32>
    %cst_14 = arith.constant 1.000000e+00 : f32
    %36 = vector.broadcast %cst_14 : f32 to vector<8x128xf32>
    %37 = arith.subf %36, %30 : vector<8x128xf32>
    %38 = arith.mulf %37, %35 : vector<8x128xf32>
    %39 = arith.mulf %30, %7 : vector<8x128xf32>
    %40 = arith.addf %38, %39 : vector<8x128xf32>
    %c0_15 = arith.constant 0 : index
    %41 = arith.index_cast %c0_i32_8 : i32 to index
    %c0_16 = arith.constant 0 : index
    %c0_17 = arith.constant 0 : index
    %42 = vector.load %arg5[%c0_15, %41, %c0_16, %c0_17] : memref<1x8x8x128xf32, #tpu.memory_space<vmem>>, vector<1x1x8x128xf32>
    %43 = vector.shape_cast %42 : vector<1x1x8x128xf32> to vector<8x128xf32>
    %44 = vector.shape_cast %40 : vector<8x128xf32> to vector<1x1x8x128xf32>
    tpu.vector_store %arg5[%c0_15, %41, %c0_16, %c0_17], %44 {strides = array<i32>} : memref<1x8x8x128xf32, #tpu.memory_space<vmem>>, vector<1x1x8x128xf32>,
    %c1_i32 = arith.constant 1 : i32
    %c0_18 = arith.constant 0 : index
    %45 = arith.index_cast %c1_i32 : i32 to index
    %c0_19 = arith.constant 0 : index
    %c0_20 = arith.constant 0 : index
    %46 = vector.load %arg2[%c0_18, %45, %c0_19, %c0_20] : memref<1x8x8x384xf32, #tpu.memory_space<vmem>>, vector<1x1x8x384xf32>
    %47 = vector.shape_cast %46 : vector<1x1x8x384xf32> to vector<8x384xf32>
    %48 = arith.truncf %40 : vector<8x128xf32> to vector<8x128xbf16>
    %cst_21 = arith.constant dense<0.000000e+00> : vector<8x384xf32>
    %49 = tpu.matmul %48, %4, %cst_21 {dimension_numbers = #tpu.dot_dimension_numbers<[1], [0], [0], [1], [0, 0, 1, 1], [], []>} : vector<8x128xbf16>, vector<128x384xbf16>, vector<8x384xf32> -> vector<8x384xf32>
    %50 = vector.broadcast %6 : vector<1x384xf32> to vector<8x384xf32>
    %51 = arith.addf %49, %50 : vector<8x384xf32>
    %52 = vector.extract_strided_slice %47 {offsets = [0, 0], sizes = [8, 128], strides = [1, 1]} : vector<8x384xf32> to vector<8x128xf32>
    %53 = vector.extract_strided_slice %51 {offsets = [0, 0], sizes = [8, 128], strides = [1, 1]} : vector<8x384xf32> to vector<8x128xf32>
    %54 = arith.addf %52, %53 : vector<8x128xf32>
    %55 = arith.negf %54 : vector<8x128xf32>
    %56 = math.exp %55 : vector<8x128xf32>
    %cst_22 = arith.constant 1.000000e+00 : f32
    %57 = vector.broadcast %cst_22 : f32 to vector<8x128xf32>
    %58 = arith.addf %57, %56 : vector<8x128xf32>
    %59 = arith.divf %57, %58 : vector<8x128xf32>
    %60 = vector.extract_strided_slice %47 {offsets = [0, 128], sizes = [8, 128], strides = [1, 1]} : vector<8x384xf32> to vector<8x128xf32>
    %61 = vector.extract_strided_slice %51 {offsets = [0, 128], sizes = [8, 128], strides = [1, 1]} : vector<8x384xf32> to vector<8x128xf32>
    %62 = arith.addf %60, %61 : vector<8x128xf32>
    %63 = arith.negf %62 : vector<8x128xf32>
    %64 = math.exp %63 : vector<8x128xf32>
    %cst_23 = arith.constant 1.000000e+00 : f32
    %65 = vector.broadcast %cst_23 : f32 to vector<8x128xf32>
    %66 = arith.addf %65, %64 : vector<8x128xf32>
    %67 = arith.divf %65, %66 : vector<8x128xf32>
    %68 = vector.extract_strided_slice %47 {offsets = [0, 256], sizes = [8, 128], strides = [1, 1]} : vector<8x384xf32> to vector<8x128xf32>
    %69 = vector.extract_strided_slice %51 {offsets = [0, 256], sizes = [8, 128], strides = [1, 1]} : vector<8x384xf32> to vector<8x128xf32>
    %70 = arith.mulf %59, %69 : vector<8x128xf32>
    %71 = arith.addf %68, %70 : vector<8x128xf32>
    %72 = math.tanh %71 : vector<8x128xf32>
    %cst_24 = arith.constant 1.000000e+00 : f32
    %73 = vector.broadcast %cst_24 : f32 to vector<8x128xf32>
    %74 = arith.subf %73, %67 : vector<8x128xf32>
    %75 = arith.mulf %74, %72 : vector<8x128xf32>
    %76 = arith.mulf %67, %40 : vector<8x128xf32>
    %77 = arith.addf %75, %76 : vector<8x128xf32>
    %c0_25 = arith.constant 0 : index
    %78 = arith.index_cast %c1_i32 : i32 to index
    %c0_26 = arith.constant 0 : index
    %c0_27 = arith.constant 0 : index
    %79 = vector.load %arg5[%c0_25, %78, %c0_26, %c0_27] : memref<1x8x8x128xf32, #tpu.memory_space<vmem>>, vector<1x1x8x128xf32>
    %80 = vector.shape_cast %79 : vector<1x1x8x128xf32> to vector<8x128xf32>
    %81 = vector.shape_cast %77 : vector<8x128xf32> to vector<1x1x8x128xf32>
    tpu.vector_store %arg5[%c0_25, %78, %c0_26, %c0_27], %81 {strides = array<i32>} : memref<1x8x8x128xf32, #tpu.memory_space<vmem>>, vector<1x1x8x128xf32>,
    %c2_i32 = arith.constant 2 : i32
    %c0_28 = arith.constant 0 : index
    %82 = arith.index_cast %c2_i32 : i32 to index
    %c0_29 = arith.constant 0 : index
    %c0_30 = arith.constant 0 : index
    %83 = vector.load %arg2[%c0_28, %82, %c0_29, %c0_30] : memref<1x8x8x384xf32, #tpu.memory_space<vmem>>, vector<1x1x8x384xf32>
    %84 = vector.shape_cast %83 : vector<1x1x8x384xf32> to vector<8x384xf32>
    %85 = arith.truncf %77 : vector<8x128xf32> to vector<8x128xbf16>
    %cst_31 = arith.constant dense<0.000000e+00> : vector<8x384xf32>
    %86 = tpu.matmul %85, %4, %cst_31 {dimension_numbers = #tpu.dot_dimension_numbers<[1], [0], [0], [1], [0, 0, 1, 1], [], []>} : vector<8x128xbf16>, vector<128x384xbf16>, vector<8x384xf32> -> vector<8x384xf32>
    %87 = vector.broadcast %6 : vector<1x384xf32> to vector<8x384xf32>
    %88 = arith.addf %86, %87 : vector<8x384xf32>
    %89 = vector.extract_strided_slice %84 {offsets = [0, 0], sizes = [8, 128], strides = [1, 1]} : vector<8x384xf32> to vector<8x128xf32>
    %90 = vector.extract_strided_slice %88 {offsets = [0, 0], sizes = [8, 128], strides = [1, 1]} : vector<8x384xf32> to vector<8x128xf32>
    %91 = arith.addf %89, %90 : vector<8x128xf32>
    %92 = arith.negf %91 : vector<8x128xf32>
    %93 = math.exp %92 : vector<8x128xf32>
    %cst_32 = arith.constant 1.000000e+00 : f32
    %94 = vector.broadcast %cst_32 : f32 to vector<8x128xf32>
    %95 = arith.addf %94, %93 : vector<8x128xf32>
    %96 = arith.divf %94, %95 : vector<8x128xf32>
    %97 = vector.extract_strided_slice %84 {offsets = [0, 128], sizes = [8, 128], strides = [1, 1]} : vector<8x384xf32> to vector<8x128xf32>
    %98 = vector.extract_strided_slice %88 {offsets = [0, 128], sizes = [8, 128], strides = [1, 1]} : vector<8x384xf32> to vector<8x128xf32>
    %99 = arith.addf %97, %98 : vector<8x128xf32>
    %100 = arith.negf %99 : vector<8x128xf32>
    %101 = math.exp %100 : vector<8x128xf32>
    %cst_33 = arith.constant 1.000000e+00 : f32
    %102 = vector.broadcast %cst_33 : f32 to vector<8x128xf32>
    %103 = arith.addf %102, %101 : vector<8x128xf32>
    %104 = arith.divf %102, %103 : vector<8x128xf32>
    %105 = vector.extract_strided_slice %84 {offsets = [0, 256], sizes = [8, 128], strides = [1, 1]} : vector<8x384xf32> to vector<8x128xf32>
    %106 = vector.extract_strided_slice %88 {offsets = [0, 256], sizes = [8, 128], strides = [1, 1]} : vector<8x384xf32> to vector<8x128xf32>
    %107 = arith.mulf %96, %106 : vector<8x128xf32>
    %108 = arith.addf %105, %107 : vector<8x128xf32>
    %109 = math.tanh %108 : vector<8x128xf32>
    %cst_34 = arith.constant 1.000000e+00 : f32
    %110 = vector.broadcast %cst_34 : f32 to vector<8x128xf32>
    %111 = arith.subf %110, %104 : vector<8x128xf32>
    %112 = arith.mulf %111, %109 : vector<8x128xf32>
    %113 = arith.mulf %104, %77 : vector<8x128xf32>
    %114 = arith.addf %112, %113 : vector<8x128xf32>
    %c0_35 = arith.constant 0 : index
    %115 = arith.index_cast %c2_i32 : i32 to index
    %c0_36 = arith.constant 0 : index
    %c0_37 = arith.constant 0 : index
    %116 = vector.load %arg5[%c0_35, %115, %c0_36, %c0_37] : memref<1x8x8x128xf32, #tpu.memory_space<vmem>>, vector<1x1x8x128xf32>
    %117 = vector.shape_cast %116 : vector<1x1x8x128xf32> to vector<8x128xf32>
    %118 = vector.shape_cast %114 : vector<8x128xf32> to vector<1x1x8x128xf32>
    tpu.vector_store %arg5[%c0_35, %115, %c0_36, %c0_37], %118 {strides = array<i32>} : memref<1x8x8x128xf32, #tpu.memory_space<vmem>>, vector<1x1x8x128xf32>,
    %c3_i32 = arith.constant 3 : i32
    %c0_38 = arith.constant 0 : index
    %119 = arith.index_cast %c3_i32 : i32 to index
    %c0_39 = arith.constant 0 : index
    %c0_40 = arith.constant 0 : index
    %120 = vector.load %arg2[%c0_38, %119, %c0_39, %c0_40] : memref<1x8x8x384xf32, #tpu.memory_space<vmem>>, vector<1x1x8x384xf32>
    %121 = vector.shape_cast %120 : vector<1x1x8x384xf32> to vector<8x384xf32>
    %122 = arith.truncf %114 : vector<8x128xf32> to vector<8x128xbf16>
    %cst_41 = arith.constant dense<0.000000e+00> : vector<8x384xf32>
    %123 = tpu.matmul %122, %4, %cst_41 {dimension_numbers = #tpu.dot_dimension_numbers<[1], [0], [0], [1], [0, 0, 1, 1], [], []>} : vector<8x128xbf16>, vector<128x384xbf16>, vector<8x384xf32> -> vector<8x384xf32>
    %124 = vector.broadcast %6 : vector<1x384xf32> to vector<8x384xf32>
    %125 = arith.addf %123, %124 : vector<8x384xf32>
    %126 = vector.extract_strided_slice %121 {offsets = [0, 0], sizes = [8, 128], strides = [1, 1]} : vector<8x384xf32> to vector<8x128xf32>
    %127 = vector.extract_strided_slice %125 {offsets = [0, 0], sizes = [8, 128], strides = [1, 1]} : vector<8x384xf32> to vector<8x128xf32>
    %128 = arith.addf %126, %127 : vector<8x128xf32>
    %129 = arith.negf %128 : vector<8x128xf32>
    %130 = math.exp %129 : vector<8x128xf32>
    %cst_42 = arith.constant 1.000000e+00 : f32
    %131 = vector.broadcast %cst_42 : f32 to vector<8x128xf32>
    %132 = arith.addf %131, %130 : vector<8x128xf32>
    %133 = arith.divf %131, %132 : vector<8x128xf32>
    %134 = vector.extract_strided_slice %121 {offsets = [0, 128], sizes = [8, 128], strides = [1, 1]} : vector<8x384xf32> to vector<8x128xf32>
    %135 = vector.extract_strided_slice %125 {offsets = [0, 128], sizes = [8, 128], strides = [1, 1]} : vector<8x384xf32> to vector<8x128xf32>
    %136 = arith.addf %134, %135 : vector<8x128xf32>
    %137 = arith.negf %136 : vector<8x128xf32>
    %138 = math.exp %137 : vector<8x128xf32>
    %cst_43 = arith.constant 1.000000e+00 : f32
    %139 = vector.broadcast %cst_43 : f32 to vector<8x128xf32>
    %140 = arith.addf %139, %138 : vector<8x128xf32>
    %141 = arith.divf %139, %140 : vector<8x128xf32>
    %142 = vector.extract_strided_slice %121 {offsets = [0, 256], sizes = [8, 128], strides = [1, 1]} : vector<8x384xf32> to vector<8x128xf32>
    %143 = vector.extract_strided_slice %125 {offsets = [0, 256], sizes = [8, 128], strides = [1, 1]} : vector<8x384xf32> to vector<8x128xf32>
    %144 = arith.mulf %133, %143 : vector<8x128xf32>
    %145 = arith.addf %142, %144 : vector<8x128xf32>
    %146 = math.tanh %145 : vector<8x128xf32>
    %cst_44 = arith.constant 1.000000e+00 : f32
    %147 = vector.broadcast %cst_44 : f32 to vector<8x128xf32>
    %148 = arith.subf %147, %141 : vector<8x128xf32>
    %149 = arith.mulf %148, %146 : vector<8x128xf32>
    %150 = arith.mulf %141, %114 : vector<8x128xf32>
    %151 = arith.addf %149, %150 : vector<8x128xf32>
    %c0_45 = arith.constant 0 : index
    %152 = arith.index_cast %c3_i32 : i32 to index
    %c0_46 = arith.constant 0 : index
    %c0_47 = arith.constant 0 : index
    %153 = vector.load %arg5[%c0_45, %152, %c0_46, %c0_47] : memref<1x8x8x128xf32, #tpu.memory_space<vmem>>, vector<1x1x8x128xf32>
    %154 = vector.shape_cast %153 : vector<1x1x8x128xf32> to vector<8x128xf32>
    %155 = vector.shape_cast %151 : vector<8x128xf32> to vector<1x1x8x128xf32>
    tpu.vector_store %arg5[%c0_45, %152, %c0_46, %c0_47], %155 {strides = array<i32>} : memref<1x8x8x128xf32, #tpu.memory_space<vmem>>, vector<1x1x8x128xf32>,
    %c4_i32 = arith.constant 4 : i32
    %c0_48 = arith.constant 0 : index
    %156 = arith.index_cast %c4_i32 : i32 to index
    %c0_49 = arith.constant 0 : index
    %c0_50 = arith.constant 0 : index
    %157 = vector.load %arg2[%c0_48, %156, %c0_49, %c0_50] : memref<1x8x8x384xf32, #tpu.memory_space<vmem>>, vector<1x1x8x384xf32>
    %158 = vector.shape_cast %157 : vector<1x1x8x384xf32> to vector<8x384xf32>
    %159 = arith.truncf %151 : vector<8x128xf32> to vector<8x128xbf16>
    %cst_51 = arith.constant dense<0.000000e+00> : vector<8x384xf32>
    %160 = tpu.matmul %159, %4, %cst_51 {dimension_numbers = #tpu.dot_dimension_numbers<[1], [0], [0], [1], [0, 0, 1, 1], [], []>} : vector<8x128xbf16>, vector<128x384xbf16>, vector<8x384xf32> -> vector<8x384xf32>
    %161 = vector.broadcast %6 : vector<1x384xf32> to vector<8x384xf32>
    %162 = arith.addf %160, %161 : vector<8x384xf32>
    %163 = vector.extract_strided_slice %158 {offsets = [0, 0], sizes = [8, 128], strides = [1, 1]} : vector<8x384xf32> to vector<8x128xf32>
    %164 = vector.extract_strided_slice %162 {offsets = [0, 0], sizes = [8, 128], strides = [1, 1]} : vector<8x384xf32> to vector<8x128xf32>
    %165 = arith.addf %163, %164 : vector<8x128xf32>
    %166 = arith.negf %165 : vector<8x128xf32>
    %167 = math.exp %166 : vector<8x128xf32>
    %cst_52 = arith.constant 1.000000e+00 : f32
    %168 = vector.broadcast %cst_52 : f32 to vector<8x128xf32>
    %169 = arith.addf %168, %167 : vector<8x128xf32>
    %170 = arith.divf %168, %169 : vector<8x128xf32>
    %171 = vector.extract_strided_slice %158 {offsets = [0, 128], sizes = [8, 128], strides = [1, 1]} : vector<8x384xf32> to vector<8x128xf32>
    %172 = vector.extract_strided_slice %162 {offsets = [0, 128], sizes = [8, 128], strides = [1, 1]} : vector<8x384xf32> to vector<8x128xf32>
    %173 = arith.addf %171, %172 : vector<8x128xf32>
    %174 = arith.negf %173 : vector<8x128xf32>
    %175 = math.exp %174 : vector<8x128xf32>
    %cst_53 = arith.constant 1.000000e+00 : f32
    %176 = vector.broadcast %cst_53 : f32 to vector<8x128xf32>
    %177 = arith.addf %176, %175 : vector<8x128xf32>
    %178 = arith.divf %176, %177 : vector<8x128xf32>
    %179 = vector.extract_strided_slice %158 {offsets = [0, 256], sizes = [8, 128], strides = [1, 1]} : vector<8x384xf32> to vector<8x128xf32>
    %180 = vector.extract_strided_slice %162 {offsets = [0, 256], sizes = [8, 128], strides = [1, 1]} : vector<8x384xf32> to vector<8x128xf32>
    %181 = arith.mulf %170, %180 : vector<8x128xf32>
    %182 = arith.addf %179, %181 : vector<8x128xf32>
    %183 = math.tanh %182 : vector<8x128xf32>
    %cst_54 = arith.constant 1.000000e+00 : f32
    %184 = vector.broadcast %cst_54 : f32 to vector<8x128xf32>
    %185 = arith.subf %184, %178 : vector<8x128xf32>
    %186 = arith.mulf %185, %183 : vector<8x128xf32>
    %187 = arith.mulf %178, %151 : vector<8x128xf32>
    %188 = arith.addf %186, %187 : vector<8x128xf32>
    %c0_55 = arith.constant 0 : index
    %189 = arith.index_cast %c4_i32 : i32 to index
    %c0_56 = arith.constant 0 : index
    %c0_57 = arith.constant 0 : index
    %190 = vector.load %arg5[%c0_55, %189, %c0_56, %c0_57] : memref<1x8x8x128xf32, #tpu.memory_space<vmem>>, vector<1x1x8x128xf32>
    %191 = vector.shape_cast %190 : vector<1x1x8x128xf32> to vector<8x128xf32>
    %192 = vector.shape_cast %188 : vector<8x128xf32> to vector<1x1x8x128xf32>
    tpu.vector_store %arg5[%c0_55, %189, %c0_56, %c0_57], %192 {strides = array<i32>} : memref<1x8x8x128xf32, #tpu.memory_space<vmem>>, vector<1x1x8x128xf32>,
    %c5_i32 = arith.constant 5 : i32
    %c0_58 = arith.constant 0 : index
    %193 = arith.index_cast %c5_i32 : i32 to index
    %c0_59 = arith.constant 0 : index
    %c0_60 = arith.constant 0 : index
    %194 = vector.load %arg2[%c0_58, %193, %c0_59, %c0_60] : memref<1x8x8x384xf32, #tpu.memory_space<vmem>>, vector<1x1x8x384xf32>
    %195 = vector.shape_cast %194 : vector<1x1x8x384xf32> to vector<8x384xf32>
    %196 = arith.truncf %188 : vector<8x128xf32> to vector<8x128xbf16>
    %cst_61 = arith.constant dense<0.000000e+00> : vector<8x384xf32>
    %197 = tpu.matmul %196, %4, %cst_61 {dimension_numbers = #tpu.dot_dimension_numbers<[1], [0], [0], [1], [0, 0, 1, 1], [], []>} : vector<8x128xbf16>, vector<128x384xbf16>, vector<8x384xf32> -> vector<8x384xf32>
    %198 = vector.broadcast %6 : vector<1x384xf32> to vector<8x384xf32>
    %199 = arith.addf %197, %198 : vector<8x384xf32>
    %200 = vector.extract_strided_slice %195 {offsets = [0, 0], sizes = [8, 128], strides = [1, 1]} : vector<8x384xf32> to vector<8x128xf32>
    %201 = vector.extract_strided_slice %199 {offsets = [0, 0], sizes = [8, 128], strides = [1, 1]} : vector<8x384xf32> to vector<8x128xf32>
    %202 = arith.addf %200, %201 : vector<8x128xf32>
    %203 = arith.negf %202 : vector<8x128xf32>
    %204 = math.exp %203 : vector<8x128xf32>
    %cst_62 = arith.constant 1.000000e+00 : f32
    %205 = vector.broadcast %cst_62 : f32 to vector<8x128xf32>
    %206 = arith.addf %205, %204 : vector<8x128xf32>
    %207 = arith.divf %205, %206 : vector<8x128xf32>
    %208 = vector.extract_strided_slice %195 {offsets = [0, 128], sizes = [8, 128], strides = [1, 1]} : vector<8x384xf32> to vector<8x128xf32>
    %209 = vector.extract_strided_slice %199 {offsets = [0, 128], sizes = [8, 128], strides = [1, 1]} : vector<8x384xf32> to vector<8x128xf32>
    %210 = arith.addf %208, %209 : vector<8x128xf32>
    %211 = arith.negf %210 : vector<8x128xf32>
    %212 = math.exp %211 : vector<8x128xf32>
    %cst_63 = arith.constant 1.000000e+00 : f32
    %213 = vector.broadcast %cst_63 : f32 to vector<8x128xf32>
    %214 = arith.addf %213, %212 : vector<8x128xf32>
    %215 = arith.divf %213, %214 : vector<8x128xf32>
    %216 = vector.extract_strided_slice %195 {offsets = [0, 256], sizes = [8, 128], strides = [1, 1]} : vector<8x384xf32> to vector<8x128xf32>
    %217 = vector.extract_strided_slice %199 {offsets = [0, 256], sizes = [8, 128], strides = [1, 1]} : vector<8x384xf32> to vector<8x128xf32>
    %218 = arith.mulf %207, %217 : vector<8x128xf32>
    %219 = arith.addf %216, %218 : vector<8x128xf32>
    %220 = math.tanh %219 : vector<8x128xf32>
    %cst_64 = arith.constant 1.000000e+00 : f32
    %221 = vector.broadcast %cst_64 : f32 to vector<8x128xf32>
    %222 = arith.subf %221, %215 : vector<8x128xf32>
    %223 = arith.mulf %222, %220 : vector<8x128xf32>
    %224 = arith.mulf %215, %188 : vector<8x128xf32>
    %225 = arith.addf %223, %224 : vector<8x128xf32>
    %c0_65 = arith.constant 0 : index
    %226 = arith.index_cast %c5_i32 : i32 to index
    %c0_66 = arith.constant 0 : index
    %c0_67 = arith.constant 0 : index
    %227 = vector.load %arg5[%c0_65, %226, %c0_66, %c0_67] : memref<1x8x8x128xf32, #tpu.memory_space<vmem>>, vector<1x1x8x128xf32>
    %228 = vector.shape_cast %227 : vector<1x1x8x128xf32> to vector<8x128xf32>
    %229 = vector.shape_cast %225 : vector<8x128xf32> to vector<1x1x8x128xf32>
    tpu.vector_store %arg5[%c0_65, %226, %c0_66, %c0_67], %229 {strides = array<i32>} : memref<1x8x8x128xf32, #tpu.memory_space<vmem>>, vector<1x1x8x128xf32>,
    %c6_i32 = arith.constant 6 : i32
    %c0_68 = arith.constant 0 : index
    %230 = arith.index_cast %c6_i32 : i32 to index
    %c0_69 = arith.constant 0 : index
    %c0_70 = arith.constant 0 : index
    %231 = vector.load %arg2[%c0_68, %230, %c0_69, %c0_70] : memref<1x8x8x384xf32, #tpu.memory_space<vmem>>, vector<1x1x8x384xf32>
    %232 = vector.shape_cast %231 : vector<1x1x8x384xf32> to vector<8x384xf32>
    %233 = arith.truncf %225 : vector<8x128xf32> to vector<8x128xbf16>
    %cst_71 = arith.constant dense<0.000000e+00> : vector<8x384xf32>
    %234 = tpu.matmul %233, %4, %cst_71 {dimension_numbers = #tpu.dot_dimension_numbers<[1], [0], [0], [1], [0, 0, 1, 1], [], []>} : vector<8x128xbf16>, vector<128x384xbf16>, vector<8x384xf32> -> vector<8x384xf32>
    %235 = vector.broadcast %6 : vector<1x384xf32> to vector<8x384xf32>
    %236 = arith.addf %234, %235 : vector<8x384xf32>
    %237 = vector.extract_strided_slice %232 {offsets = [0, 0], sizes = [8, 128], strides = [1, 1]} : vector<8x384xf32> to vector<8x128xf32>
    %238 = vector.extract_strided_slice %236 {offsets = [0, 0], sizes = [8, 128], strides = [1, 1]} : vector<8x384xf32> to vector<8x128xf32>
    %239 = arith.addf %237, %238 : vector<8x128xf32>
    %240 = arith.negf %239 : vector<8x128xf32>
    %241 = math.exp %240 : vector<8x128xf32>
    %cst_72 = arith.constant 1.000000e+00 : f32
    %242 = vector.broadcast %cst_72 : f32 to vector<8x128xf32>
    %243 = arith.addf %242, %241 : vector<8x128xf32>
    %244 = arith.divf %242, %243 : vector<8x128xf32>
    %245 = vector.extract_strided_slice %232 {offsets = [0, 128], sizes = [8, 128], strides = [1, 1]} : vector<8x384xf32> to vector<8x128xf32>
    %246 = vector.extract_strided_slice %236 {offsets = [0, 128], sizes = [8, 128], strides = [1, 1]} : vector<8x384xf32> to vector<8x128xf32>
    %247 = arith.addf %245, %246 : vector<8x128xf32>
    %248 = arith.negf %247 : vector<8x128xf32>
    %249 = math.exp %248 : vector<8x128xf32>
    %cst_73 = arith.constant 1.000000e+00 : f32
    %250 = vector.broadcast %cst_73 : f32 to vector<8x128xf32>
    %251 = arith.addf %250, %249 : vector<8x128xf32>
    %252 = arith.divf %250, %251 : vector<8x128xf32>
    %253 = vector.extract_strided_slice %232 {offsets = [0, 256], sizes = [8, 128], strides = [1, 1]} : vector<8x384xf32> to vector<8x128xf32>
    %254 = vector.extract_strided_slice %236 {offsets = [0, 256], sizes = [8, 128], strides = [1, 1]} : vector<8x384xf32> to vector<8x128xf32>
    %255 = arith.mulf %244, %254 : vector<8x128xf32>
    %256 = arith.addf %253, %255 : vector<8x128xf32>
    %257 = math.tanh %256 : vector<8x128xf32>
    %cst_74 = arith.constant 1.000000e+00 : f32
    %258 = vector.broadcast %cst_74 : f32 to vector<8x128xf32>
    %259 = arith.subf %258, %252 : vector<8x128xf32>
    %260 = arith.mulf %259, %257 : vector<8x128xf32>
    %261 = arith.mulf %252, %225 : vector<8x128xf32>
    %262 = arith.addf %260, %261 : vector<8x128xf32>
    %c0_75 = arith.constant 0 : index
    %263 = arith.index_cast %c6_i32 : i32 to index
    %c0_76 = arith.constant 0 : index
    %c0_77 = arith.constant 0 : index
    %264 = vector.load %arg5[%c0_75, %263, %c0_76, %c0_77] : memref<1x8x8x128xf32, #tpu.memory_space<vmem>>, vector<1x1x8x128xf32>
    %265 = vector.shape_cast %264 : vector<1x1x8x128xf32> to vector<8x128xf32>
    %266 = vector.shape_cast %262 : vector<8x128xf32> to vector<1x1x8x128xf32>
    tpu.vector_store %arg5[%c0_75, %263, %c0_76, %c0_77], %266 {strides = array<i32>} : memref<1x8x8x128xf32, #tpu.memory_space<vmem>>, vector<1x1x8x128xf32>,
    %c7_i32 = arith.constant 7 : i32
    %c0_78 = arith.constant 0 : index
    %267 = arith.index_cast %c7_i32 : i32 to index
    %c0_79 = arith.constant 0 : index
    %c0_80 = arith.constant 0 : index
    %268 = vector.load %arg2[%c0_78, %267, %c0_79, %c0_80] : memref<1x8x8x384xf32, #tpu.memory_space<vmem>>, vector<1x1x8x384xf32>
    %269 = vector.shape_cast %268 : vector<1x1x8x384xf32> to vector<8x384xf32>
    %270 = arith.truncf %262 : vector<8x128xf32> to vector<8x128xbf16>
    %cst_81 = arith.constant dense<0.000000e+00> : vector<8x384xf32>
    %271 = tpu.matmul %270, %4, %cst_81 {dimension_numbers = #tpu.dot_dimension_numbers<[1], [0], [0], [1], [0, 0, 1, 1], [], []>} : vector<8x128xbf16>, vector<128x384xbf16>, vector<8x384xf32> -> vector<8x384xf32>
    %272 = vector.broadcast %6 : vector<1x384xf32> to vector<8x384xf32>
    %273 = arith.addf %271, %272 : vector<8x384xf32>
    %274 = vector.extract_strided_slice %269 {offsets = [0, 0], sizes = [8, 128], strides = [1, 1]} : vector<8x384xf32> to vector<8x128xf32>
    %275 = vector.extract_strided_slice %273 {offsets = [0, 0], sizes = [8, 128], strides = [1, 1]} : vector<8x384xf32> to vector<8x128xf32>
    %276 = arith.addf %274, %275 : vector<8x128xf32>
    %277 = arith.negf %276 : vector<8x128xf32>
    %278 = math.exp %277 : vector<8x128xf32>
    %cst_82 = arith.constant 1.000000e+00 : f32
    %279 = vector.broadcast %cst_82 : f32 to vector<8x128xf32>
    %280 = arith.addf %279, %278 : vector<8x128xf32>
    %281 = arith.divf %279, %280 : vector<8x128xf32>
    %282 = vector.extract_strided_slice %269 {offsets = [0, 128], sizes = [8, 128], strides = [1, 1]} : vector<8x384xf32> to vector<8x128xf32>
    %283 = vector.extract_strided_slice %273 {offsets = [0, 128], sizes = [8, 128], strides = [1, 1]} : vector<8x384xf32> to vector<8x128xf32>
    %284 = arith.addf %282, %283 : vector<8x128xf32>
    %285 = arith.negf %284 : vector<8x128xf32>
    %286 = math.exp %285 : vector<8x128xf32>
    %cst_83 = arith.constant 1.000000e+00 : f32
    %287 = vector.broadcast %cst_83 : f32 to vector<8x128xf32>
    %288 = arith.addf %287, %286 : vector<8x128xf32>
    %289 = arith.divf %287, %288 : vector<8x128xf32>
    %290 = vector.extract_strided_slice %269 {offsets = [0, 256], sizes = [8, 128], strides = [1, 1]} : vector<8x384xf32> to vector<8x128xf32>
    %291 = vector.extract_strided_slice %273 {offsets = [0, 256], sizes = [8, 128], strides = [1, 1]} : vector<8x384xf32> to vector<8x128xf32>
    %292 = arith.mulf %281, %291 : vector<8x128xf32>
    %293 = arith.addf %290, %292 : vector<8x128xf32>
    %294 = math.tanh %293 : vector<8x128xf32>
    %cst_84 = arith.constant 1.000000e+00 : f32
    %295 = vector.broadcast %cst_84 : f32 to vector<8x128xf32>
    %296 = arith.subf %295, %289 : vector<8x128xf32>
    %297 = arith.mulf %296, %294 : vector<8x128xf32>
    %298 = arith.mulf %289, %262 : vector<8x128xf32>
    %299 = arith.addf %297, %298 : vector<8x128xf32>
    %c0_85 = arith.constant 0 : index
    %300 = arith.index_cast %c7_i32 : i32 to index
    %c0_86 = arith.constant 0 : index
    %c0_87 = arith.constant 0 : index
    %301 = vector.load %arg5[%c0_85, %300, %c0_86, %c0_87] : memref<1x8x8x128xf32, #tpu.memory_space<vmem>>, vector<1x1x8x128xf32>
    %302 = vector.shape_cast %301 : vector<1x1x8x128xf32> to vector<8x128xf32>
    %303 = vector.shape_cast %299 : vector<8x128xf32> to vector<1x1x8x128xf32>
    tpu.vector_store %arg5[%c0_85, %300, %c0_86, %c0_87], %303 {strides = array<i32>} : memref<1x8x8x128xf32, #tpu.memory_space<vmem>>, vector<1x1x8x128xf32>,
    %c8_i32 = arith.constant 8 : i32
    %c0_88 = arith.constant 0 : index
    %c0_89 = arith.constant 0 : index
    %304 = vector.load %arg6[%c0_88, %c0_89] : memref<8x128xf32, #tpu.memory_space<vmem>>, vector<8x128xf32>
    tpu.vector_store %arg6[%c0_88, %c0_89], %299 {strides = array<i32>} : memref<8x128xf32, #tpu.memory_space<vmem>>, vector<8x128xf32>,
    return
  }
  func.func @transform_0(%arg0: i32, %arg1: i32) -> (i32, i32, i32, i32) {
    %c0_i32 = arith.constant 0 : i32
    %c0_i32_0 = arith.constant 0 : i32
    %c0_i32_1 = arith.constant 0 : i32
    return %arg0, %arg1, %c0_i32, %c0_i32_0 : i32, i32, i32, i32
  }
  func.func @transform_1(%arg0: i32, %arg1: i32) -> (i32, i32, i32) {
    %c0_i32 = arith.constant 0 : i32
    %c0_i32_0 = arith.constant 0 : i32
    %c0_i32_1 = arith.constant 0 : i32
    return %arg0, %c0_i32, %c0_i32_0 : i32, i32, i32
  }
  func.func @transform_2(%arg0: i32, %arg1: i32) -> (i32, i32, i32) {
    %c0_i32 = arith.constant 0 : i32
    %c0_i32_0 = arith.constant 0 : i32
    %c0_i32_1 = arith.constant 0 : i32
    return %arg0, %c0_i32, %c0_i32_0 : i32, i32, i32
  }
  func.func @transform_3(%arg0: i32, %arg1: i32) -> (i32, i32, i32, i32) {
    %c0_i32 = arith.constant 0 : i32
    %c0_i32_0 = arith.constant 0 : i32
    %c0_i32_1 = arith.constant 0 : i32
    return %arg0, %arg1, %c0_i32, %c0_i32_0 : i32, i32, i32, i32
  }
}

module attributes {stable_mosaic.version = 11 : i64} {
  func.func @_matmul_affine_kernel(%arg0: i32, %arg1: i32, %arg2: i32, %arg3: memref<16x128xbf16, #tpu.memory_space<vmem>>, %arg4: memref<128x256xbf16, #tpu.memory_space<vmem>>, %arg5: memref<1x256xf32, #tpu.memory_space<vmem>>, %arg6: memref<1x256xf32, #tpu.memory_space<vmem>>, %arg7: memref<16x256xf32, #tpu.memory_space<vmem>>, %arg8: memref<16x256xf32, #tpu.memory_space<vmem>>) attributes {dimension_semantics = [#tpu.dimension_semantics<parallel>, #tpu.dimension_semantics<parallel>, #tpu.dimension_semantics<arbitrary>], iteration_bounds = array<i64: 1, 3, 1>, scalar_prefetch = 0 : i64, scratch_operands = 1 : i64, tpu.core_type = #tpu.core_type<tc>, window_params = [{transform_indices = @transform_0, window_bounds = array<i64: 16, 128>}, {transform_indices = @transform_1, window_bounds = array<i64: 128, 256>}, {transform_indices = @transform_2, window_bounds = array<i64: 1, 256>}, {transform_indices = @transform_3, window_bounds = array<i64: 1, 256>}, {transform_indices = @transform_4, window_bounds = array<i64: 16, 256>}]} {
    %c0_i32 = arith.constant 0 : i32
    %0 = arith.cmpi eq, %arg2, %c0_i32 : i32
    %1 = arith.extui %0 : i1 to i32
    %c0_i32_0 = arith.constant 0 : i32
    %2 = arith.cmpi ne, %1, %c0_i32_0 : i32
    scf.if %2 {
      %cst_10 = arith.constant 0.000000e+00 : f32
      %12 = vector.broadcast %cst_10 : f32 to vector<16x256xf32>
      %c0_11 = arith.constant 0 : index
      %c0_12 = arith.constant 0 : index
      %13 = vector.load %arg8[%c0_11, %c0_12] : memref<16x256xf32, #tpu.memory_space<vmem>>, vector<16x256xf32>
      tpu.vector_store %arg8[%c0_11, %c0_12], %12 {strides = array<i32>} : memref<16x256xf32, #tpu.memory_space<vmem>>, vector<16x256xf32>,
    } else {
    }
    %c0 = arith.constant 0 : index
    %c0_1 = arith.constant 0 : index
    %3 = vector.load %arg8[%c0, %c0_1] : memref<16x256xf32, #tpu.memory_space<vmem>>, vector<16x256xf32>
    %c0_2 = arith.constant 0 : index
    %c0_3 = arith.constant 0 : index
    %4 = vector.load %arg3[%c0_2, %c0_3] : memref<16x128xbf16, #tpu.memory_space<vmem>>, vector<16x128xbf16>
    %c0_4 = arith.constant 0 : index
    %c0_5 = arith.constant 0 : index
    %5 = vector.load %arg4[%c0_4, %c0_5] : memref<128x256xbf16, #tpu.memory_space<vmem>>, vector<128x256xbf16>
    %cst = arith.constant dense<0.000000e+00> : vector<16x256xf32>
    %6 = tpu.matmul %4, %5, %cst {dimension_numbers = #tpu.dot_dimension_numbers<[1], [0], [0], [1], [0, 0, 1, 1], [], []>} : vector<16x128xbf16>, vector<128x256xbf16>, vector<16x256xf32> -> vector<16x256xf32>
    %7 = arith.addf %3, %6 : vector<16x256xf32>
    %c0_6 = arith.constant 0 : index
    %c0_7 = arith.constant 0 : index
    %8 = vector.load %arg8[%c0_6, %c0_7] : memref<16x256xf32, #tpu.memory_space<vmem>>, vector<16x256xf32>
    tpu.vector_store %arg8[%c0_6, %c0_7], %7 {strides = array<i32>} : memref<16x256xf32, #tpu.memory_space<vmem>>, vector<16x256xf32>,
    %c0_i32_8 = arith.constant 0 : i32
    %9 = arith.cmpi eq, %arg2, %c0_i32_8 : i32
    %10 = arith.extui %9 : i1 to i32
    %c0_i32_9 = arith.constant 0 : i32
    %11 = arith.cmpi ne, %10, %c0_i32_9 : i32
    scf.if %11 {
      %c0_10 = arith.constant 0 : index
      %c0_11 = arith.constant 0 : index
      %12 = vector.load %arg8[%c0_10, %c0_11] : memref<16x256xf32, #tpu.memory_space<vmem>>, vector<16x256xf32>
      %c0_12 = arith.constant 0 : index
      %c0_13 = arith.constant 0 : index
      %13 = vector.load %arg5[%c0_12, %c0_13] : memref<1x256xf32, #tpu.memory_space<vmem>>, vector<1x256xf32>
      %14 = vector.broadcast %13 : vector<1x256xf32> to vector<16x256xf32>
      %15 = arith.mulf %12, %14 : vector<16x256xf32>
      %c0_14 = arith.constant 0 : index
      %c0_15 = arith.constant 0 : index
      %16 = vector.load %arg6[%c0_14, %c0_15] : memref<1x256xf32, #tpu.memory_space<vmem>>, vector<1x256xf32>
      %17 = vector.broadcast %16 : vector<1x256xf32> to vector<16x256xf32>
      %18 = arith.addf %15, %17 : vector<16x256xf32>
      %c0_16 = arith.constant 0 : index
      %c0_17 = arith.constant 0 : index
      %19 = vector.load %arg7[%c0_16, %c0_17] : memref<16x256xf32, #tpu.memory_space<vmem>>, vector<16x256xf32>
      tpu.vector_store %arg7[%c0_16, %c0_17], %18 {strides = array<i32>} : memref<16x256xf32, #tpu.memory_space<vmem>>, vector<16x256xf32>,
    } else {
    }
    return
  }
  func.func @transform_0(%arg0: i32, %arg1: i32, %arg2: i32) -> (i32, i32) {
    %c0_i32 = arith.constant 0 : i32
    return %arg0, %arg2 : i32, i32
  }
  func.func @transform_1(%arg0: i32, %arg1: i32, %arg2: i32) -> (i32, i32) {
    %c0_i32 = arith.constant 0 : i32
    return %arg2, %arg1 : i32, i32
  }
  func.func @transform_2(%arg0: i32, %arg1: i32, %arg2: i32) -> (i32, i32) {
    %c0_i32 = arith.constant 0 : i32
    %c0_i32_0 = arith.constant 0 : i32
    return %c0_i32, %arg1 : i32, i32
  }
  func.func @transform_3(%arg0: i32, %arg1: i32, %arg2: i32) -> (i32, i32) {
    %c0_i32 = arith.constant 0 : i32
    %c0_i32_0 = arith.constant 0 : i32
    return %c0_i32, %arg1 : i32, i32
  }
  func.func @transform_4(%arg0: i32, %arg1: i32, %arg2: i32) -> (i32, i32) {
    %c0_i32 = arith.constant 0 : i32
    return %arg0, %arg1 : i32, i32
  }
}

module attributes {stable_mosaic.version = 11 : i64} {
  func.func @_fc_logsoftmax_kernel(%arg0: i32, %arg1: memref<16x128xbf16, #tpu.memory_space<vmem>>, %arg2: memref<128x128xbf16, #tpu.memory_space<vmem>>, %arg3: memref<1x128xf32, #tpu.memory_space<vmem>>, %arg4: memref<16x128xf32, #tpu.memory_space<vmem>>) attributes {dimension_semantics = [#tpu.dimension_semantics<parallel>], iteration_bounds = array<i64: 1>, scalar_prefetch = 0 : i64, scratch_operands = 0 : i64, tpu.core_type = #tpu.core_type<tc>, window_params = [{transform_indices = @transform_0, window_bounds = array<i64: 16, 128>}, {pipeline_mode = #tpu.pipeline_mode<synchronous>, transform_indices = @transform_1, window_bounds = array<i64: 128, 128>}, {pipeline_mode = #tpu.pipeline_mode<synchronous>, transform_indices = @transform_2, window_bounds = array<i64: 1, 128>}, {transform_indices = @transform_3, window_bounds = array<i64: 16, 128>}]} {
    %c0 = arith.constant 0 : index
    %c0_0 = arith.constant 0 : index
    %0 = vector.load %arg1[%c0, %c0_0] : memref<16x128xbf16, #tpu.memory_space<vmem>>, vector<16x128xbf16>
    %c0_1 = arith.constant 0 : index
    %c0_2 = arith.constant 0 : index
    %1 = vector.load %arg2[%c0_1, %c0_2] : memref<128x128xbf16, #tpu.memory_space<vmem>>, vector<128x128xbf16>
    %cst = arith.constant dense<0.000000e+00> : vector<16x128xf32>
    %2 = tpu.matmul %0, %1, %cst {dimension_numbers = #tpu.dot_dimension_numbers<[1], [0], [0], [1], [0, 0, 1, 1], [], []>} : vector<16x128xbf16>, vector<128x128xbf16>, vector<16x128xf32> -> vector<16x128xf32>
    %c0_3 = arith.constant 0 : index
    %c0_4 = arith.constant 0 : index
    %3 = vector.load %arg3[%c0_3, %c0_4] : memref<1x128xf32, #tpu.memory_space<vmem>>, vector<1x128xf32>
    %4 = vector.broadcast %3 : vector<1x128xf32> to vector<16x128xf32>
    %5 = arith.addf %2, %4 : vector<16x128xf32>
    %6 = tpu.iota {dimensions = array<i32: 1>} : vector<16x128xi32>
    %c10_i32 = arith.constant 10 : i32
    %7 = vector.broadcast %c10_i32 : i32 to vector<16x128xi32>
    %8 = arith.cmpi slt, %6, %7 : vector<16x128xi32>
    %cst_5 = arith.constant 0xFF800000 : f32
    %9 = vector.broadcast %cst_5 : f32 to vector<16x128xf32>
    %10 = arith.select %8, %5, %9 : vector<16x128xi1>, vector<16x128xf32>
    %cst_6 = arith.constant dense<0xFF800000> : vector<16xf32>
    %11 = vector.multi_reduction <maximumf>, %10, %cst_6 [1] : vector<16x128xf32> to vector<16xf32>
    %12 = vector.shape_cast %11 : vector<16xf32> to vector<16x1xf32>
    %13 = vector.broadcast %12 : vector<16x1xf32> to vector<16x128xf32>
    %14 = arith.subf %10, %13 : vector<16x128xf32>
    %15 = math.exp %14 : vector<16x128xf32>
    %cst_7 = arith.constant dense<0.000000e+00> : vector<16xf32>
    %16 = vector.multi_reduction <add>, %15, %cst_7 [1] : vector<16x128xf32> to vector<16xf32>
    %17 = vector.shape_cast %16 : vector<16xf32> to vector<16x1xf32>
    %18 = math.log %17 : vector<16x1xf32>
    %19 = arith.addf %12, %18 : vector<16x1xf32>
    %20 = vector.broadcast %19 : vector<16x1xf32> to vector<16x128xf32>
    %21 = arith.subf %10, %20 : vector<16x128xf32>
    %c0_8 = arith.constant 0 : index
    %c0_9 = arith.constant 0 : index
    %22 = vector.load %arg4[%c0_8, %c0_9] : memref<16x128xf32, #tpu.memory_space<vmem>>, vector<16x128xf32>
    tpu.vector_store %arg4[%c0_8, %c0_9], %21 {strides = array<i32>} : memref<16x128xf32, #tpu.memory_space<vmem>>, vector<16x128xf32>,
    return
  }
  func.func @transform_0(%arg0: i32) -> (i32, i32) {
    %c0_i32 = arith.constant 0 : i32
    %c0_i32_0 = arith.constant 0 : i32
    return %arg0, %c0_i32 : i32, i32
  }
  func.func @transform_1(%arg0: i32) -> (i32, i32) {
    %c0_i32 = arith.constant 0 : i32
    %c0_i32_0 = arith.constant 0 : i32
    %c0_i32_1 = arith.constant 0 : i32
    return %c0_i32, %c0_i32_0 : i32, i32
  }
  func.func @transform_2(%arg0: i32) -> (i32, i32) {
    %c0_i32 = arith.constant 0 : i32
    %c0_i32_0 = arith.constant 0 : i32
    %c0_i32_1 = arith.constant 0 : i32
    return %c0_i32, %c0_i32_0 : i32, i32
  }
  func.func @transform_3(%arg0: i32) -> (i32, i32) {
    %c0_i32 = arith.constant 0 : i32
    %c0_i32_0 = arith.constant 0 : i32
    return %arg0, %c0_i32 : i32, i32
  }
}

</mosaic_0001>

<bundles_post_ra>
// kernel: deepspeech2_forward.8
= control target key start
LH: loop header
LB: loop body
LE: loop exit
PB: predicated region body
PF: predicated region fallthrough
CT: control target
= control target key end

     0   :  { %s1410_s1 = inlined_call_operand.vmem [shape: bf16[512,128], index: 1, kind: input, shape index: {}]   ;;  %s1411_s0 = inlined_call_operand.vmem [shape: bf16[128,512], index: 0, kind: input, shape index: {}]   ;;  %s1412_s2 = inlined_call_operand.vmem [shape: f32[1,128], index: 2, kind: input, shape index: {}]   ;;  %s1413_s3 = inlined_call_operand.vmem [shape: f32[1,128], index: 3, kind: input, shape index: {}]   ;;  %s1414_s4 = inlined_call_operand.vmem [shape: f32[128,128], index: 4, kind: output, shape index: {}]  }
   0x1   :  { %v1023_v0 = vld [vmem:[%s1410_s1 + $0x40] sm:$0xff]   ;;  %v1027_v4 = vld [vmem:[%s1410_s1 + $0x48] sm:$0xff]   ;;  %v1031_v8 = vld [vmem:[%s1410_s1 + $0x50] sm:$0xff]  }
   0x2   :  { %v1024_v1 = vld [vmem:[%s1410_s1 + $0xc0] sm:$0xff]   ;;  %895 = vmatprep.subr.bf16.mxu0 %v1023_v0  ;;  %v1028_v5 = vld [vmem:[%s1410_s1 + $0xc8] sm:$0xff]   ;;  %v1032_v9 = vld [vmem:[%s1410_s1 + $0xd0] sm:$0xff]  }
   0x3   :  { %v1025_v2 = vld [vmem:[%s1410_s1] sm:$0xff]   ;;  %959 = vmatprep.subr.bf16.mxu1 %v1024_v1  ;;  %v1029_v6 = vld [vmem:[%s1410_s1 + $0x8] sm:$0xff]   ;;  %v1033_v10 = vld [vmem:[%s1410_s1 + $0x10] sm:$0xff]  }
   0x4   :  { %v1026_v3 = vld [vmem:[%s1410_s1 + $0x80] sm:$0xff]   ;;  %896 = vmatpush3.bf16.msra.mxu0 %v1025_v2  ;;  %v1030_v7 = vld [vmem:[%s1410_s1 + $0x88] sm:$0xff]   ;;  %v1034_v11 = vld [vmem:[%s1410_s1 + $0x90] sm:$0xff]  }
   0x5   :  { %960 = vmatpush3.bf16.msra.mxu1 %v1026_v3  ;;  %897 = vmatprep.subr.bf16.mxu0 %v1027_v4  ;;  %v1035_v12 = vld [vmem:[%s1410_s1 + $0x58] sm:$0xff]   ;;  %v1039_v16 = vld [vmem:[%s1410_s1 + $0x60] sm:$0xff]   ;;  %v1043_v20 = vld [vmem:[%s1410_s1 + $0x68] sm:$0xff]  }
   0x6   :  { %961 = vmatprep.subr.bf16.mxu1 %v1028_v5  ;;  %v1036_v13 = vld [vmem:[%s1410_s1 + $0xd8] sm:$0xff]   ;;  %v1040_v17 = vld [vmem:[%s1410_s1 + $0xe0] sm:$0xff]   ;;  %v1044_v21 = vld [vmem:[%s1410_s1 + $0xe8] sm:$0xff]  }
   0x7   :  { %v1037_v14 = vld [vmem:[%s1410_s1 + $0x18] sm:$0xff]   ;;  %v1041_v18 = vld [vmem:[%s1410_s1 + $0x20] sm:$0xff]   ;;  %v1045_v22 = vld [vmem:[%s1410_s1 + $0x28] sm:$0xff]  }
   0x8   :  { %898 = vmatpush3.bf16.msra.mxu0 %v1029_v6  ;;  %v1038_v15 = vld [vmem:[%s1410_s1 + $0x98] sm:$0xff]   ;;  %v1042_v19 = vld [vmem:[%s1410_s1 + $0xa0] sm:$0xff]   ;;  %v1046_v23 = vld [vmem:[%s1410_s1 + $0xa8] sm:$0xff]  }
   0x9   :  { %962 = vmatpush3.bf16.msra.mxu1 %v1030_v7  ;;  %899 = vmatprep.subr.bf16.mxu0 %v1031_v8  ;;  %v1047_v24 = vld [vmem:[%s1410_s1 + $0x70] sm:$0xff]   ;;  %v1051_v28 = vld [vmem:[%s1410_s1 + $0x78] sm:$0xff]  }
   0xa   :  { %963 = vmatprep.subr.bf16.mxu1 %v1032_v9  ;;  %v1048_v25 = vld [vmem:[%s1410_s1 + $0xf0] sm:$0xff]   ;;  %v1052_v29 = vld [vmem:[%s1410_s1 + $0xf8] sm:$0xff]   ;;  %v1323_v9 = vld [vmem:[%s1412_s2] ss:$0 sm:$0xff] }
   0xb   :  { %v1049_v26 = vld [vmem:[%s1410_s1 + $0x30] sm:$0xff]   ;;  %v1053_v30 = vld [vmem:[%s1410_s1 + $0x38] sm:$0xff]  }
   0xc   :  { %900 = vmatpush3.bf16.msra.mxu0 %v1033_v10  ;;  %v1050_v27 = vld [vmem:[%s1410_s1 + $0xb0] sm:$0xff]   ;;  %v1054_v31 = vld [vmem:[%s1410_s1 + $0xb8] sm:$0xff]  }
   0xd   :  { %964 = vmatpush3.bf16.msra.mxu1 %v1034_v11  ;;  %901 = vmatprep.subr.bf16.mxu0 %v1035_v12  ;;  %v1055_v32 = vld [vmem:[%s1411_s0] ss:$16 sps:$4 sm:$0xff]   ;;  %v1057_v33 = vld [vmem:[%s1411_s0 + $0x4] ss:$16 sps:$4 sm:$0xff]   ;;  %v1058_v34 = vld [vmem:[%s1411_s0 + $0x8] ss:$16 sps:$4 sm:$0xff]  }
   0xe   :  { %965 = vmatprep.subr.bf16.mxu1 %v1036_v13  ;;  %v1060_v35 = vld [vmem:[%s1411_s0 + $0xc] ss:$16 sps:$4 sm:$0xff]   ;;  %534 = vmatprep.mubr.bf16.mxu0 %v1057_v33  ;;  %v1061_v36 = vld [vmem:[%s1411_s0 + $0x24] ss:$16 sps:$4 sm:$0xff]   ;;  %v1065_v38 = vld [vmem:[%s1411_s0 + $0x20] ss:$16 sps:$4 sm:$0xff]  }
   0xf   :  { %631 = vmatprep.mubr.bf16.mxu1 %v1060_v35  ;;  %v1063_v37 = vld [vmem:[%s1411_s0 + $0x2c] ss:$16 sps:$4 sm:$0xff]   ;;  %v1066_v39 = vld [vmem:[%s1411_s0 + $0x28] ss:$16 sps:$4 sm:$0xff]   ;;  %v1067_v40 = vld [vmem:[%s1411_s0 + $0x44] ss:$16 sps:$4 sm:$0xff]  }
  0x10   :  { %902 = vmatpush3.bf16.msra.mxu0 %v1037_v14  ;;  %v1069_v41 = vld [vmem:[%s1411_s0 + $0x4c] ss:$16 sps:$4 sm:$0xff]   ;;  %v1071_v42 = vld [vmem:[%s1411_s0 + $0x40] ss:$16 sps:$4 sm:$0xff]   ;;  %v1072_v43 = vld [vmem:[%s1411_s0 + $0x48] ss:$16 sps:$4 sm:$0xff]  }
  0x11   :  { %966 = vmatpush3.bf16.msra.mxu1 %v1038_v15  ;;  %903 = vmatprep.subr.bf16.mxu0 %v1039_v16  ;;  %v1073_v44 = vld [vmem:[%s1411_s0 + $0x64] ss:$16 sps:$4 sm:$0xff]   ;;  %v1075_v45 = vld [vmem:[%s1411_s0 + $0x6c] ss:$16 sps:$4 sm:$0xff]   ;;  %v1077_v46 = vld [vmem:[%s1411_s0 + $0x60] ss:$16 sps:$4 sm:$0xff]  }
  0x12   :  { %967 = vmatprep.subr.bf16.mxu1 %v1040_v17  ;;  %v1078_v47 = vld [vmem:[%s1411_s0 + $0x68] ss:$16 sps:$4 sm:$0xff]   ;;  %v1079_v48 = vld [vmem:[%s1411_s0 + $0x84] ss:$16 sps:$4 sm:$0xff]   ;;  %v1081_v49 = vld [vmem:[%s1411_s0 + $0x8c] ss:$16 sps:$4 sm:$0xff]  }
  0x13   :  { %v1083_v50 = vld [vmem:[%s1411_s0 + $0x80] ss:$16 sps:$4 sm:$0xff]   ;;  %v1084_v51 = vld [vmem:[%s1411_s0 + $0x88] ss:$16 sps:$4 sm:$0xff]   ;;  %v1085_v52 = vld [vmem:[%s1411_s0 + $0xa4] ss:$16 sps:$4 sm:$0xff]  }
  0x14   :  { %904 = vmatpush3.bf16.msra.mxu0 %v1041_v18  ;;  %v1087_v53 = vld [vmem:[%s1411_s0 + $0xac] ss:$16 sps:$4 sm:$0xff]   ;;  %v1089_v54 = vld [vmem:[%s1411_s0 + $0xa0] ss:$16 sps:$4 sm:$0xff]   ;;  %v1090_v55 = vld [vmem:[%s1411_s0 + $0xa8] ss:$16 sps:$4 sm:$0xff]  }
  0x15   :  { %968 = vmatpush3.bf16.msra.mxu1 %v1042_v19  ;;  %905 = vmatprep.subr.bf16.mxu0 %v1043_v20  ;;  %v1091_v56 = vld [vmem:[%s1411_s0 + $0xc4] ss:$16 sps:$4 sm:$0xff]   ;;  %v1093_v57 = vld [vmem:[%s1411_s0 + $0xcc] ss:$16 sps:$4 sm:$0xff]   ;;  %v1095_v58 = vld [vmem:[%s1411_s0 + $0xc0] ss:$16 sps:$4 sm:$0xff]  }
  0x16   :  { %969 = vmatprep.subr.bf16.mxu1 %v1044_v21  ;;  %v1096_v59 = vld [vmem:[%s1411_s0 + $0xc8] ss:$16 sps:$4 sm:$0xff]   ;;  %v1097_v60 = vld [vmem:[%s1411_s0 + $0xe4] ss:$16 sps:$4 sm:$0xff]   ;;  %v1099_v61 = vld [vmem:[%s1411_s0 + $0xec] ss:$16 sps:$4 sm:$0xff]  }
  0x17   :  { %v1101_v62 = vld [vmem:[%s1411_s0 + $0xe0] ss:$16 sps:$4 sm:$0xff]   ;;  %v1102_v63 = vld [vmem:[%s1411_s0 + $0xe8] ss:$16 sps:$4 sm:$0xff]  }
  0x18   :  { %906 = vmatpush3.bf16.msra.mxu0 %v1045_v22  ;;  %v1328_v14 = vld [vmem:[%s1413_s3] ss:$0 sm:$0xff] }
  0x19   :  { %970 = vmatpush3.bf16.msra.mxu1 %v1046_v23  ;;  %907 = vmatprep.subr.bf16.mxu0 %v1047_v24 }
  0x1a   :  { %971 = vmatprep.subr.bf16.mxu1 %v1048_v25 }
  0x1c   :  { %908 = vmatpush3.bf16.msra.mxu0 %v1049_v26 }
  0x1d   :  { %972 = vmatpush3.bf16.msra.mxu1 %v1050_v27  ;;  %909 = vmatprep.subr.bf16.mxu0 %v1051_v28 }
  0x1e   :  { %973 = vmatprep.subr.bf16.mxu1 %v1052_v29 }
  0x20   :  { %910 = vmatpush3.bf16.msra.mxu0 %v1053_v30 }
  0x21   :  { %974 = vmatpush3.bf16.msra.mxu1 %v1054_v31 }
  0x23   :  { %535 = vmatmul.mubr.bf16.vlgmr.msra.gmra.mrb[0].mxu0 %v1055_v32 }
  0x24   :  { %632 = vmatmul.mubr.bf16.vlgmr.msra.gmra.mrb[0].mxu1 %v1058_v34  ;;  %542 = vmatprep.mubr.bf16.mxu0 %v1061_v36 }
  0x25   :  { %639 = vmatprep.mubr.bf16.mxu1 %v1063_v37 }
  0x2b   :  { %543 = vmatmul.mubr.bf16.gmra.mrb[4].mxu0 %v1065_v38 }
  0x2c   :  { %640 = vmatmul.mubr.bf16.gmra.mrb[4].mxu1 %v1066_v39  ;;  %550 = vmatprep.mubr.bf16.mxu0 %v1067_v40 }
  0x2d   :  { %647 = vmatprep.mubr.bf16.mxu1 %v1069_v41 }
  0x33   :  { %551 = vmatmul.mubr.bf16.gmra.mrb[8].mxu0 %v1071_v42 }
  0x34   :  { %648 = vmatmul.mubr.bf16.gmra.mrb[8].mxu1 %v1072_v43  ;;  %558 = vmatprep.mubr.bf16.mxu0 %v1073_v44 }
  0x35   :  { %655 = vmatprep.mubr.bf16.mxu1 %v1075_v45 }
  0x3b   :  { %559 = vmatmul.mubr.bf16.gmra.mrb[12].mxu0 %v1077_v46 }
  0x3c   :  { %656 = vmatmul.mubr.bf16.gmra.mrb[12].mxu1 %v1078_v47  ;;  %566 = vmatprep.mubr.bf16.mxu0 %v1079_v48 }
  0x3d   :  { %663 = vmatprep.mubr.bf16.mxu1 %v1081_v49 }
  0x43   :  { %567 = vmatmul.mubr.bf16.gmra.mrb[16].mxu0 %v1083_v50 }
  0x44   :  { %664 = vmatmul.mubr.bf16.gmra.mrb[16].mxu1 %v1084_v51  ;;  %574 = vmatprep.mubr.bf16.mxu0 %v1085_v52 }
  0x45   :  { %671 = vmatprep.mubr.bf16.mxu1 %v1087_v53 }
  0x4b   :  { %575 = vmatmul.mubr.bf16.gmra.mrb[20].mxu0 %v1089_v54 }
  0x4c   :  { %672 = vmatmul.mubr.bf16.gmra.mrb[20].mxu1 %v1090_v55  ;;  %582 = vmatprep.mubr.bf16.mxu0 %v1091_v56 }
  0x4d   :  { %679 = vmatprep.mubr.bf16.mxu1 %v1093_v57 }
  0x53   :  { %583 = vmatmul.mubr.bf16.gmra.mrb[24].mxu0 %v1095_v58 }
  0x54   :  { %680 = vmatmul.mubr.bf16.gmra.mrb[24].mxu1 %v1096_v59  ;;  %590 = vmatprep.mubr.bf16.mxu0 %v1097_v60 }
  0x55   :  { %687 = vmatprep.mubr.bf16.mxu1 %v1099_v61 }
  0x5b   :  { %591 = vmatmul.mubr.bf16.gmra.mrb[28].mxu0 %v1101_v62 }
  0x5c   :  { %688 = vmatmul.mubr.bf16.gmra.mrb[28].mxu1 %v1102_v63 }
  0xf6   :  { %v911_v0 = vpop.f32.mrb[0].mxu0 }
  0xf7   :  { %v975_v1 = vpop.f32.mrb[0].mxu1  ;;  %v912_v2 = vpop.f32.mrb[1].mxu0 }
  0xf8   :  { %v913_v3 = vadd.f32 %v912_v2, %v911_v0  ;;  %v976_v4 = vpop.f32.mrb[1].mxu1  ;;  %v914_v5 = vpop.f32.mrb[2].mxu0 }
  0xf9   :  { %v977_v6 = vadd.f32 %v976_v4, %v975_v1  ;;  %v978_v7 = vpop.f32.mrb[2].mxu1  ;;  %v915_v8 = vpop.f32.mrb[3].mxu0 }
  0xfa   :  { %v916_v10 = vadd.f32 %v915_v8, %v914_v5  ;;  %v979_v11 = vpop.f32.mrb[3].mxu1 }
  0xfb   :  { %v634_v12 = vadd.f32 %v977_v6, %v913_v3  ;;  %v980_v13 = vadd.f32 %v979_v11, %v978_v7 }
  0xfd   :  { %v754_v15 = vmul.f32 %v1323_v9, %v634_v12  ;;  %v637_v16 = vadd.f32 %v980_v13, %v916_v10 }
  0xfe   :  { %v917_v17 = vpop.f32.mrb[4].mxu0 }
  0xff   :  { %v777_v18 = vadd.f32 %v1328_v14, %v754_v15  ;;  %v755_v19 = vmul.f32 %v1323_v9, %v637_v16  ;;  %v981_v20 = vpop.f32.mrb[4].mxu1  ;;  %v918_v21 = vpop.f32.mrb[5].mxu0 }
 0x100   :  { %v919_v22 = vadd.f32 %v918_v21, %v917_v17  ;;  %v982_v23 = vpop.f32.mrb[5].mxu1  ;;  %v920_v24 = vpop.f32.mrb[6].mxu0 }
 0x101   :  { %v793_v25 = vmax.f32 %v777_v18, 0.0  ;;  %v778_v26 = vadd.f32 %v1328_v14, %v755_v19  ;;  %v983_v27 = vadd.f32 %v982_v23, %v981_v20  ;;  %v984_v28 = vpop.f32.mrb[6].mxu1  ;;  %v921_v29 = vpop.f32.mrb[7].mxu0 }
 0x102   :  { %v922_v30 = vadd.f32 %v921_v29, %v920_v24  ;;  %v985_v31 = vpop.f32.mrb[7].mxu1 }
 0x103   :  { %809 = vst [vmem:[%s1414_s4] sm:$0xff] %v793_v25  ;;  %v794_v32 = vmax.f32 %v778_v26, 0.0  ;;  %v642_v33 = vadd.f32 %v983_v27, %v919_v22  ;;  %v986_v34 = vadd.f32 %v985_v31, %v984_v28 }
 0x105   :  { %810 = vst [vmem:[%s1414_s4 + $0x8] sm:$0xff] %v794_v32  ;;  %v756_v35 = vmul.f32 %v1323_v9, %v642_v33  ;;  %v645_v36 = vadd.f32 %v986_v34, %v922_v30 }
 0x106   :  { %v923_v37 = vpop.f32.mrb[8].mxu0 }
 0x107   :  { %v779_v38 = vadd.f32 %v1328_v14, %v756_v35  ;;  %v757_v39 = vmul.f32 %v1323_v9, %v645_v36  ;;  %v987_v40 = vpop.f32.mrb[8].mxu1  ;;  %v924_v41 = vpop.f32.mrb[9].mxu0 }
 0x108   :  { %v925_v42 = vadd.f32 %v924_v41, %v923_v37  ;;  %v988_v43 = vpop.f32.mrb[9].mxu1  ;;  %v926_v44 = vpop.f32.mrb[10].mxu0 }
 0x109   :  { %v795_v45 = vmax.f32 %v779_v38, 0.0  ;;  %v780_v46 = vadd.f32 %v1328_v14, %v757_v39  ;;  %v989_v47 = vadd.f32 %v988_v43, %v987_v40  ;;  %v990_v48 = vpop.f32.mrb[10].mxu1  ;;  %v927_v49 = vpop.f32.mrb[11].mxu0 }
 0x10a   :  { %v928_v50 = vadd.f32 %v927_v49, %v926_v44  ;;  %v991_v51 = vpop.f32.mrb[11].mxu1 }
 0x10b   :  { %811 = vst [vmem:[%s1414_s4 + $0x10] sm:$0xff] %v795_v45  ;;  %v796_v52 = vmax.f32 %v780_v46, 0.0  ;;  %v650_v53 = vadd.f32 %v989_v47, %v925_v42  ;;  %v992_v54 = vadd.f32 %v991_v51, %v990_v48 }
 0x10d   :  { %812 = vst [vmem:[%s1414_s4 + $0x18] sm:$0xff] %v796_v52  ;;  %v758_v55 = vmul.f32 %v1323_v9, %v650_v53  ;;  %v653_v56 = vadd.f32 %v992_v54, %v928_v50 }
 0x10e   :  { %v929_v57 = vpop.f32.mrb[12].mxu0 }
 0x10f   :  { %v781_v58 = vadd.f32 %v1328_v14, %v758_v55  ;;  %v759_v59 = vmul.f32 %v1323_v9, %v653_v56  ;;  %v993_v60 = vpop.f32.mrb[12].mxu1  ;;  %v930_v61 = vpop.f32.mrb[13].mxu0 }
 0x110   :  { %v931_v62 = vadd.f32 %v930_v61, %v929_v57  ;;  %v994_v63 = vpop.f32.mrb[13].mxu1  ;;  %v932_v0 = vpop.f32.mrb[14].mxu0 }
 0x111   :  { %v797_v1 = vmax.f32 %v781_v58, 0.0  ;;  %v782_v2 = vadd.f32 %v1328_v14, %v759_v59  ;;  %v995_v3 = vadd.f32 %v994_v63, %v993_v60  ;;  %v996_v4 = vpop.f32.mrb[14].mxu1  ;;  %v933_v5 = vpop.f32.mrb[15].mxu0 }
 0x112   :  { %v934_v6 = vadd.f32 %v933_v5, %v932_v0  ;;  %v997_v7 = vpop.f32.mrb[15].mxu1 }
 0x113   :  { %813 = vst [vmem:[%s1414_s4 + $0x20] sm:$0xff] %v797_v1  ;;  %v798_v8 = vmax.f32 %v782_v2, 0.0  ;;  %v658_v10 = vadd.f32 %v995_v3, %v931_v62  ;;  %v998_v11 = vadd.f32 %v997_v7, %v996_v4 }
 0x115   :  { %814 = vst [vmem:[%s1414_s4 + $0x28] sm:$0xff] %v798_v8  ;;  %v760_v12 = vmul.f32 %v1323_v9, %v658_v10  ;;  %v661_v13 = vadd.f32 %v998_v11, %v934_v6 }
 0x116   :  { %v935_v15 = vpop.f32.mrb[16].mxu0 }
 0x117   :  { %v783_v16 = vadd.f32 %v1328_v14, %v760_v12  ;;  %v761_v17 = vmul.f32 %v1323_v9, %v661_v13  ;;  %v999_v18 = vpop.f32.mrb[16].mxu1  ;;  %v936_v19 = vpop.f32.mrb[17].mxu0 }
 0x118   :  { %v937_v20 = vadd.f32 %v936_v19, %v935_v15  ;;  %v1000_v21 = vpop.f32.mrb[17].mxu1  ;;  %v938_v22 = vpop.f32.mrb[18].mxu0 }
 0x119   :  { %v799_v23 = vmax.f32 %v783_v16, 0.0  ;;  %v784_v24 = vadd.f32 %v1328_v14, %v761_v17  ;;  %v1001_v25 = vadd.f32 %v1000_v21, %v999_v18  ;;  %v1002_v26 = vpop.f32.mrb[18].mxu1  ;;  %v939_v27 = vpop.f32.mrb[19].mxu0 }
 0x11a   :  { %v940_v28 = vadd.f32 %v939_v27, %v938_v22  ;;  %v1003_v29 = vpop.f32.mrb[19].mxu1 }
 0x11b   :  { %815 = vst [vmem:[%s1414_s4 + $0x30] sm:$0xff] %v799_v23  ;;  %v800_v30 = vmax.f32 %v784_v24, 0.0  ;;  %v666_v31 = vadd.f32 %v1001_v25, %v937_v20  ;;  %v1004_v32 = vadd.f32 %v1003_v29, %v1002_v26 }
 0x11d   :  { %816 = vst [vmem:[%s1414_s4 + $0x38] sm:$0xff] %v800_v30  ;;  %v762_v33 = vmul.f32 %v1323_v9, %v666_v31  ;;  %v669_v34 = vadd.f32 %v1004_v32, %v940_v28 }
 0x11e   :  { %v941_v35 = vpop.f32.mrb[20].mxu0 }
 0x11f   :  { %v785_v36 = vadd.f32 %v1328_v14, %v762_v33  ;;  %v763_v37 = vmul.f32 %v1323_v9, %v669_v34  ;;  %v1005_v38 = vpop.f32.mrb[20].mxu1  ;;  %v942_v39 = vpop.f32.mrb[21].mxu0 }
 0x120   :  { %v943_v40 = vadd.f32 %v942_v39, %v941_v35  ;;  %v1006_v41 = vpop.f32.mrb[21].mxu1  ;;  %v944_v42 = vpop.f32.mrb[22].mxu0 }
 0x121   :  { %v801_v43 = vmax.f32 %v785_v36, 0.0  ;;  %v786_v44 = vadd.f32 %v1328_v14, %v763_v37  ;;  %v1007_v45 = vadd.f32 %v1006_v41, %v1005_v38  ;;  %v1008_v46 = vpop.f32.mrb[22].mxu1  ;;  %v945_v47 = vpop.f32.mrb[23].mxu0 }
 0x122   :  { %v946_v48 = vadd.f32 %v945_v47, %v944_v42  ;;  %v1009_v49 = vpop.f32.mrb[23].mxu1 }
 0x123   :  { %817 = vst [vmem:[%s1414_s4 + $0x40] sm:$0xff] %v801_v43  ;;  %v802_v50 = vmax.f32 %v786_v44, 0.0  ;;  %v674_v51 = vadd.f32 %v1007_v45, %v943_v40  ;;  %v1010_v52 = vadd.f32 %v1009_v49, %v1008_v46 }
 0x125   :  { %818 = vst [vmem:[%s1414_s4 + $0x48] sm:$0xff] %v802_v50  ;;  %v764_v53 = vmul.f32 %v1323_v9, %v674_v51  ;;  %v677_v54 = vadd.f32 %v1010_v52, %v946_v48 }
 0x126   :  { %v947_v55 = vpop.f32.mrb[24].mxu0 }
 0x127   :  { %v787_v56 = vadd.f32 %v1328_v14, %v764_v53  ;;  %v765_v57 = vmul.f32 %v1323_v9, %v677_v54  ;;  %v1011_v58 = vpop.f32.mrb[24].mxu1  ;;  %v948_v59 = vpop.f32.mrb[25].mxu0 }
 0x128   :  { %v949_v60 = vadd.f32 %v948_v59, %v947_v55  ;;  %v1012_v61 = vpop.f32.mrb[25].mxu1  ;;  %v950_v62 = vpop.f32.mrb[26].mxu0 }
 0x129   :  { %v803_v63 = vmax.f32 %v787_v56, 0.0  ;;  %v788_v0 = vadd.f32 %v1328_v14, %v765_v57  ;;  %v1013_v1 = vadd.f32 %v1012_v61, %v1011_v58  ;;  %v1014_v2 = vpop.f32.mrb[26].mxu1  ;;  %v951_v3 = vpop.f32.mrb[27].mxu0 }
 0x12a   :  { %v952_v4 = vadd.f32 %v951_v3, %v950_v62  ;;  %v1015_v5 = vpop.f32.mrb[27].mxu1 }
 0x12b   :  { %819 = vst [vmem:[%s1414_s4 + $0x50] sm:$0xff] %v803_v63  ;;  %v804_v6 = vmax.f32 %v788_v0, 0.0  ;;  %v682_v7 = vadd.f32 %v1013_v1, %v949_v60  ;;  %v1016_v8 = vadd.f32 %v1015_v5, %v1014_v2 }
 0x12d   :  { %820 = vst [vmem:[%s1414_s4 + $0x58] sm:$0xff] %v804_v6  ;;  %v766_v10 = vmul.f32 %v1323_v9, %v682_v7  ;;  %v685_v11 = vadd.f32 %v1016_v8, %v952_v4 }
 0x12e   :  { %v953_v12 = vpop.f32.mrb[28].mxu0 }
 0x12f   :  { %v789_v13 = vadd.f32 %v1328_v14, %v766_v10  ;;  %v767_v15 = vmul.f32 %v1323_v9, %v685_v11  ;;  %v1017_v16 = vpop.f32.mrb[28].mxu1  ;;  %v954_v17 = vpop.f32.mrb[29].mxu0 }
 0x130   :  { %v955_v18 = vadd.f32 %v954_v17, %v953_v12  ;;  %v1018_v19 = vpop.f32.mrb[29].mxu1  ;;  %v956_v20 = vpop.f32.mrb[30].mxu0 }
 0x131   :  { %v805_v21 = vmax.f32 %v789_v13, 0.0  ;;  %v790_v22 = vadd.f32 %v1328_v14, %v767_v15  ;;  %v1019_v23 = vadd.f32 %v1018_v19, %v1017_v16  ;;  %v1020_v24 = vpop.f32.mrb[30].mxu1  ;;  %v957_v25 = vpop.f32.mrb[31].mxu0 }
 0x132   :  { %v958_v26 = vadd.f32 %v957_v25, %v956_v20  ;;  %v1021_v27 = vpop.f32.mrb[31].mxu1 }
 0x133   :  { %821 = vst [vmem:[%s1414_s4 + $0x60] sm:$0xff] %v805_v21  ;;  %v806_v28 = vmax.f32 %v790_v22, 0.0  ;;  %v690_v29 = vadd.f32 %v1019_v23, %v955_v18  ;;  %v1022_v30 = vadd.f32 %v1021_v27, %v1020_v24 }
 0x135   :  { %822 = vst [vmem:[%s1414_s4 + $0x68] sm:$0xff] %v806_v28  ;;  %v768_v31 = vmul.f32 %v1323_v9, %v690_v29  ;;  %v693_v32 = vadd.f32 %v1022_v30, %v958_v26 }
 0x137   :  { %v791_v33 = vadd.f32 %v1328_v14, %v768_v31  ;;  %v769_v34 = vmul.f32 %v1323_v9, %v693_v32 }
 0x139   :  { %v807_v35 = vmax.f32 %v791_v33, 0.0  ;;  %v792_v36 = vadd.f32 %v1328_v14, %v769_v34 }
 0x13b   :  { %823 = vst [vmem:[%s1414_s4 + $0x70] sm:$0xff] %v807_v35  ;;  %v808_v37 = vmax.f32 %v792_v36, 0.0 }
 0x13d   :  { %824 = vst [vmem:[%s1414_s4 + $0x78] sm:$0xff] %v808_v37 }

// kernel: deepspeech2_forward.9
= control target key start
LH: loop header
LB: loop body
LE: loop exit
PB: predicated region body
PF: predicated region fallthrough
CT: control target
= control target key end

     0   :  { %s1356_s15 = smov 0   ;;  %s1358_s16 = smov 0   ;;  %s1523_s0 = inlined_call_operand.vmem [shape: bf16[64,7680], index: 0, kind: input, shape index: {}]   ;;  %s1524_s1 = inlined_call_operand.vmem [shape: bf16[7680,128], index: 1, kind: input, shape index: {}]   ;;  %s1525_s2 = inlined_call_operand.vmem [shape: f32[1,128], index: 2, kind: input, shape index: {}]   ;;  %s1526_s3 = inlined_call_operand.vmem [shape: f32[1,128], index: 3, kind: input, shape index: {}]   ;;  %s1527_s4 = inlined_call_operand.vmem [shape: f32[64,128], index: 4, kind: output, shape index: {}]  }
   0x1   :  { %s1360_s17 = smov 0   ;;  %s1362_s18 = smov 0  }
   0x2   :  { %s1364_s19 = smov 0  }
   0x3 LB: > { %s26_s20 = sadd.s32 1, %s1324_s18  ;;  %p49_p1 = scmp.ne.s32.totalorder %s1316_s16, %s1312_s15  ;;  %s1328_s19 = sphi %s1364_s19, %s14_s19   ;;  %s1324_s18 = sphi %s1362_s18, %s1531_s18   ;;  %s1320_s17 = sphi %s1360_s17, %s1530_s17   ;;  %s1316_s16 = sphi %s1358_s16, %s1529_s16   ;;  %s1312_s15 = sphi %s1356_s15, %s1528_s15  }
   0x4   : > { %p27_p0 = scmp.ge.s32.totalorder %s26_s20, 15  ;;  %p50_p2 = scmp.eq.s32.totalorder %s1328_s19, 0 }
   0x5   : > { %s42_s22 = sadd.s32 1, %s1316_s16  ;;  %p1048_p5 = scmp.ge.s32.totalorder %s1328_s19, 15 }
   0x6   : > { %s1533_s20 = smov (%p27_p0, %s26_s20), 0  ;;  %p51_p3 = por %p50_p2, %p49_p1 }
   0x7   : > { %s38_s21 = ssub.s32 %s1324_s18, %s1533_s20  ;;  %195 = sbr.rel (%p1048_p5) target bundleno = 26 (0x1a), region = 24 }
   0x8   : > { %p40_p4 = scmp.eq.s32.totalorder %s38_s21, 0 }
   0xa   : > { %s1391_s23 = scalar_select %p40_p4, %s1316_s16, %s42_s22  }
   0xe   : > { %198 = sbr.rel (!%p51_p3) target bundleno = 26 (0x1a), region = 28  ;;  %s200_s24 = sand.u32 (%p51_p3), 1, %s1316_s16  }
   0xf   : > { %s1112_s25 = sshll.u32 (%p51_p3), %s1324_s18, 4  ;;  %s1049_s26 = sshll.u32 (%p51_p3), %s200_s24, 7 }
  0x10   : > { %s1399_s29 = scalar_lea.vmem (%p51_p3), %s1523_s0, %s1112_s25  ;;  %s202_s30 = scalar_lea.vmem (%p51_p3), [#allocation3], %s1049_s26 }
  0x11   : > { %v221_v0 = vld [vmem:[%s1399_s29] sm:$0xff] (%p51_p3)  ;;  %v223_v1 = vld [vmem:[%s1399_s29 + $0x8] sm:$0xff] (%p51_p3)  ;;  %v225_v2 = vld [vmem:[%s1399_s29 + $0xf0] sm:$0xff] (%p51_p3) }
  0x12   : > { %222 = vst [vmem:[%s202_s30] sm:$0xff] (%p51_p3), %v221_v0  ;;  %224 = vst [vmem:[%s202_s30 + $0x8] sm:$0xff] (%p51_p3), %v223_v1  ;;  %v227_v3 = vld [vmem:[%s1399_s29 + $0xf8] sm:$0xff] (%p51_p3)  ;;  %v229_v4 = vld [vmem:[%s1399_s29 + $0x1e0] sm:$0xff] (%p51_p3) }
  0x13   : > { %226 = vst [vmem:[%s202_s30 + $0x10] sm:$0xff] (%p51_p3), %v225_v2  ;;  %v231_v5 = vld [vmem:[%s1399_s29 + $0x1e8] sm:$0xff] (%p51_p3)  ;;  %228 = vst [vmem:[%s202_s30 + $0x18] sm:$0xff] (%p51_p3), %v227_v3  ;;  %v233_v6 = vld [vmem:[%s1399_s29 + $0x2d0] sm:$0xff] (%p51_p3) }
  0x14   : > { %230 = vst [vmem:[%s202_s30 + $0x20] sm:$0xff] (%p51_p3), %v229_v4  ;;  %232 = vst [vmem:[%s202_s30 + $0x28] sm:$0xff] (%p51_p3), %v231_v5  ;;  %v235_v7 = vld [vmem:[%s1399_s29 + $0x2d8] sm:$0xff] (%p51_p3)  ;;  %v237_v8 = vld [vmem:[%s1399_s29 + $0x3c0] sm:$0xff] (%p51_p3) }
  0x15   : > { %234 = vst [vmem:[%s202_s30 + $0x30] sm:$0xff] %v233_v6  ;;  %236 = vst [vmem:[%s202_s30 + $0x38] sm:$0xff] %v235_v7  ;;  %v239_v9 = vld [vmem:[%s1399_s29 + $0x3c8] sm:$0xff]  ;;  %v241_v10 = vld [vmem:[%s1399_s29 + $0x4b0] sm:$0xff] }
  0x16   : > { %238 = vst [vmem:[%s202_s30 + $0x40] sm:$0xff] %v237_v8  ;;  %v243_v11 = vld [vmem:[%s1399_s29 + $0x4b8] sm:$0xff]  ;;  %240 = vst [vmem:[%s202_s30 + $0x48] sm:$0xff] %v239_v9  ;;  %v245_v12 = vld [vmem:[%s1399_s29 + $0x5a0] sm:$0xff] }
  0x17   : > { %242 = vst [vmem:[%s202_s30 + $0x50] sm:$0xff] %v241_v10  ;;  %244 = vst [vmem:[%s202_s30 + $0x58] sm:$0xff] %v243_v11  ;;  %v247_v13 = vld [vmem:[%s1399_s29 + $0x5a8] sm:$0xff]  ;;  %v249_v14 = vld [vmem:[%s1399_s29 + $0x690] sm:$0xff] }
  0x18   : > { %246 = vst [vmem:[%s202_s30 + $0x60] sm:$0xff] %v245_v12  ;;  %248 = vst [vmem:[%s202_s30 + $0x68] sm:$0xff] %v247_v13  ;;  %v251_v15 = vld [vmem:[%s1399_s29 + $0x698] sm:$0xff] }
  0x19   : > { %250 = vst [vmem:[%s202_s30 + $0x70] sm:$0xff] %v249_v14  ;;  %252 = vst [vmem:[%s202_s30 + $0x78] sm:$0xff] %v251_v15 }
  0x1a PF: > { %p1052_p6 = scmp.ge.s32.totalorder %s1328_s19, 1  ;;  %p269_p7 = scmp.lt.s32.totalorder %s1328_s19, 16 }
  0x1c   : > { %p270_p8 = pnand %p1052_p6, %p269_p7 }
  0x1d   : > { %s276_s5 = sand.u32 (!%p270_p8), 1, %s1312_s15   ;;  %s1054_s6 = sshll.u32 (!%p270_p8), %s1320_s17, 6 }
  0x1e   : > { %273 = sbr.rel (%p270_p8) target bundleno = 339 (0x153), region = 55  ;;  %s1053_s7 = sshll.u32 (!%p270_p8), %s276_s5, 7 }
  0x1f   : > { %p321_p9 = scmp.lt.s32.totalorder (!%p270_p8), %s1054_s6, 959  ;;  %s1426_s12 = scalar_lea.vmem (!%p270_p8), [#allocation3], %s1053_s7 }
  0x20   : > { %p1056_p10 = scmp.ne.s32.totalorder (!%p270_p8), %s1320_s17, 0 }
  0x25   : > { %s1535_s6 = smov (!%p321_p9, %s1054_s6), 959  ;;  %348 = sbr.rel (%p1056_p10) target bundleno = 44 (0x2c), region = 63 }
  0x26   : > { %s1055_s8 = sshll.u32 %s1535_s6, 2  ;;  %v1330_v16 = vmov (!%p1056_p10), 0.0  }
  0x27   : > { %s1424_s11 = scalar_lea.vmem %s1524_s1, %s1055_s8  ;;  %349 = vst [vmem:[#allocation2] sm:$0xff] (!%p1056_p10), %v1330_v16  ;;  %350 = vst [vmem:[#allocation2 + $0x8] sm:$0xff] (!%p1056_p10), %v1330_v16 }
  0x28   : > { %351 = vst [vmem:[#allocation2 + $0x10] sm:$0xff] (!%p1056_p10), %v1330_v16  ;;  %352 = vst [vmem:[#allocation2 + $0x18] sm:$0xff] (!%p1056_p10), %v1330_v16 }
  0x29   : > { %353 = vst [vmem:[#allocation2 + $0x20] sm:$0xff] (!%p1056_p10), %v1330_v16  ;;  %354 = vst [vmem:[#allocation2 + $0x28] sm:$0xff] (!%p1056_p10), %v1330_v16 }
  0x2a   : > { %355 = vst [vmem:[#allocation2 + $0x30] sm:$0xff] (!%p1056_p10), %v1330_v16  ;;  %356 = vst [vmem:[#allocation2 + $0x38] sm:$0xff] (!%p1056_p10), %v1330_v16 }
  0x2c PF: > { %v1234_v17 = vld [vmem:[%s1424_s11 + $0x40] sm:$0xff]   ;;  %v1238_v21 = vld [vmem:[%s1424_s11 + $0x48] sm:$0xff]   ;;  %v1242_v25 = vld [vmem:[%s1424_s11 + $0x50] sm:$0xff]   ;;  %p1105_p11 = scmp.ne.s32.totalorder %s1320_s17, 14 }
  0x2d   : > { %v1235_v18 = vld [vmem:[%s1424_s11 + $0xc0] sm:$0xff]   ;;  %1113 = vmatprep.subr.bf16.mxu0 %v1234_v17  ;;  %v1239_v22 = vld [vmem:[%s1424_s11 + $0xc8] sm:$0xff]   ;;  %v1243_v26 = vld [vmem:[%s1424_s11 + $0xd0] sm:$0xff]  }
  0x2e   : > { %v1236_v19 = vld [vmem:[%s1424_s11] sm:$0xff]   ;;  %1153 = vmatprep.subr.bf16.mxu1 %v1235_v18  ;;  %v1240_v23 = vld [vmem:[%s1424_s11 + $0x8] sm:$0xff]   ;;  %v1244_v27 = vld [vmem:[%s1424_s11 + $0x10] sm:$0xff]  }
  0x2f   : > { %v1237_v20 = vld [vmem:[%s1424_s11 + $0x80] sm:$0xff]   ;;  %1114 = vmatpush3.bf16.msra.mxu0 %v1236_v19  ;;  %v1241_v24 = vld [vmem:[%s1424_s11 + $0x88] sm:$0xff]   ;;  %v1245_v28 = vld [vmem:[%s1424_s11 + $0x90] sm:$0xff]  }
  0x30   : > { %1154 = vmatpush3.bf16.msra.mxu1 %v1237_v20  ;;  %1115 = vmatprep.subr.bf16.mxu0 %v1238_v21  ;;  %v1246_v29 = vld [vmem:[%s1424_s11 + $0x58] sm:$0xff]   ;;  %v1250_v33 = vld [vmem:[%s1424_s11 + $0x60] sm:$0xff]   ;;  %v1254_v37 = vld [vmem:[%s1424_s11 + $0x68] sm:$0xff]  }
  0x31   : > { %1155 = vmatprep.subr.bf16.mxu1 %v1239_v22  ;;  %v1247_v30 = vld [vmem:[%s1424_s11 + $0xd8] sm:$0xff]   ;;  %v1251_v34 = vld [vmem:[%s1424_s11 + $0xe0] sm:$0xff]   ;;  %v1255_v38 = vld [vmem:[%s1424_s11 + $0xe8] sm:$0xff]  }
  0x32   : > { %v1248_v31 = vld [vmem:[%s1424_s11 + $0x18] sm:$0xff]   ;;  %v1252_v35 = vld [vmem:[%s1424_s11 + $0x20] sm:$0xff]   ;;  %v1256_v39 = vld [vmem:[%s1424_s11 + $0x28] sm:$0xff]  }
  0x33   : > { %1116 = vmatpush3.bf16.msra.mxu0 %v1240_v23  ;;  %v1249_v32 = vld [vmem:[%s1424_s11 + $0x98] sm:$0xff]   ;;  %v1253_v36 = vld [vmem:[%s1424_s11 + $0xa0] sm:$0xff]   ;;  %v1257_v40 = vld [vmem:[%s1424_s11 + $0xa8] sm:$0xff]  }
  0x34   : > { %1156 = vmatpush3.bf16.msra.mxu1 %v1241_v24  ;;  %1117 = vmatprep.subr.bf16.mxu0 %v1242_v25  ;;  %v1258_v41 = vld [vmem:[%s1424_s11 + $0x70] sm:$0xff]   ;;  %v1262_v45 = vld [vmem:[%s1424_s11 + $0x78] sm:$0xff]   ;;  %v357_v10 = vld [vmem:[#allocation2] sm:$0xff] }
  0x35   : > { %1157 = vmatprep.subr.bf16.mxu1 %v1243_v26  ;;  %v1259_v42 = vld [vmem:[%s1424_s11 + $0xf0] sm:$0xff]   ;;  %v1263_v46 = vld [vmem:[%s1424_s11 + $0xf8] sm:$0xff]   ;;  %v358_v15 = vld [vmem:[#allocation2 + $0x8] sm:$0xff] }
  0x36   : > { %v1260_v43 = vld [vmem:[%s1424_s11 + $0x30] sm:$0xff]   ;;  %v1264_v47 = vld [vmem:[%s1424_s11 + $0x38] sm:$0xff]  }
  0x37   : > { %1118 = vmatpush3.bf16.msra.mxu0 %v1244_v27  ;;  %v1261_v44 = vld [vmem:[%s1424_s11 + $0xb0] sm:$0xff]   ;;  %v1265_v48 = vld [vmem:[%s1424_s11 + $0xb8] sm:$0xff]  }
  0x38   : > { %1158 = vmatpush3.bf16.msra.mxu1 %v1245_v28  ;;  %1119 = vmatprep.subr.bf16.mxu0 %v1246_v29  ;;  %v1266_v49 = vld [vmem:[%s1426_s12] ss:$16 sps:$4 sm:$0xff]   ;;  %v1268_v50 = vld [vmem:[%s1426_s12 + $0x4] ss:$16 sps:$4 sm:$0xff]   ;;  %v1269_v51 = vld [vmem:[%s1426_s12 + $0x8] ss:$16 sps:$4 sm:$0xff]  }
  0x39   : > { %1159 = vmatprep.subr.bf16.mxu1 %v1247_v30  ;;  %v1271_v52 = vld [vmem:[%s1426_s12 + $0xc] ss:$16 sps:$4 sm:$0xff]   ;;  %749 = vmatprep.mubr.bf16.mxu0 %v1268_v50  ;;  %v1272_v53 = vld [vmem:[%s1426_s12 + $0x24] ss:$16 sps:$4 sm:$0xff]   ;;  %v1276_v55 = vld [vmem:[%s1426_s12 + $0x20] ss:$16 sps:$4 sm:$0xff]  }
  0x3a   : > { %814 = vmatprep.mubr.bf16.mxu1 %v1271_v52  ;;  %v1274_v54 = vld [vmem:[%s1426_s12 + $0x2c] ss:$16 sps:$4 sm:$0xff]   ;;  %v1277_v56 = vld [vmem:[%s1426_s12 + $0x28] ss:$16 sps:$4 sm:$0xff]   ;;  %v1278_v57 = vld [vmem:[%s1426_s12 + $0x44] ss:$16 sps:$4 sm:$0xff]  }
  0x3b   : > { %1120 = vmatpush3.bf16.msra.mxu0 %v1248_v31  ;;  %v1280_v58 = vld [vmem:[%s1426_s12 + $0x4c] ss:$16 sps:$4 sm:$0xff]   ;;  %v1282_v59 = vld [vmem:[%s1426_s12 + $0x40] ss:$16 sps:$4 sm:$0xff]   ;;  %v1283_v60 = vld [vmem:[%s1426_s12 + $0x48] ss:$16 sps:$4 sm:$0xff]  }
  0x3c   : > { %1160 = vmatpush3.bf16.msra.mxu1 %v1249_v32  ;;  %1121 = vmatprep.subr.bf16.mxu0 %v1250_v33  ;;  %v1284_v61 = vld [vmem:[%s1426_s12 + $0x64] ss:$16 sps:$4 sm:$0xff]   ;;  %v1286_v62 = vld [vmem:[%s1426_s12 + $0x6c] ss:$16 sps:$4 sm:$0xff]   ;;  %v1288_v63 = vld [vmem:[%s1426_s12 + $0x60] ss:$16 sps:$4 sm:$0xff]  }
  0x3d   : > { %1161 = vmatprep.subr.bf16.mxu1 %v1251_v34  ;;  %v1289_v0 = vld [vmem:[%s1426_s12 + $0x68] ss:$16 sps:$4 sm:$0xff]   ;;  %v359_v28 = vld [vmem:[#allocation2 + $0x10] sm:$0xff] }
  0x3e   : > { %v360_v33 = vld [vmem:[#allocation2 + $0x18] sm:$0xff] }
  0x3f   : > { %1122 = vmatpush3.bf16.msra.mxu0 %v1252_v35 }
  0x40   : > { %1162 = vmatpush3.bf16.msra.mxu1 %v1253_v36  ;;  %1123 = vmatprep.subr.bf16.mxu0 %v1254_v37 }
  0x41   : > { %1163 = vmatprep.subr.bf16.mxu1 %v1255_v38 }
  0x43   : > { %1124 = vmatpush3.bf16.msra.mxu0 %v1256_v39 }
  0x44   : > { %1164 = vmatpush3.bf16.msra.mxu1 %v1257_v40  ;;  %1125 = vmatprep.subr.bf16.mxu0 %v1258_v41 }
  0x45   : > { %1165 = vmatprep.subr.bf16.mxu1 %v1259_v42 }
  0x47   : > { %1126 = vmatpush3.bf16.msra.mxu0 %v1260_v43 }
  0x48   : > { %1166 = vmatpush3.bf16.msra.mxu1 %v1261_v44  ;;  %1127 = vmatprep.subr.bf16.mxu0 %v1262_v45 }
  0x49   : > { %1167 = vmatprep.subr.bf16.mxu1 %v1263_v46  ;;  %v361_v46 = vld [vmem:[#allocation2 + $0x20] sm:$0xff] }
  0x4b   : > { %1128 = vmatpush3.bf16.msra.mxu0 %v1264_v47 }
  0x4c   : > { %1168 = vmatpush3.bf16.msra.mxu1 %v1265_v48 }
  0x4e   : > { %750 = vmatmul.mubr.bf16.vlgmr.msra.gmra.mrb[0].mxu0 %v1266_v49 }
  0x4f   : > { %815 = vmatmul.mubr.bf16.vlgmr.msra.gmra.mrb[0].mxu1 %v1269_v51  ;;  %757 = vmatprep.mubr.bf16.mxu0 %v1272_v53  ;;  %v362_v51 = vld [vmem:[#allocation2 + $0x28] sm:$0xff] }
  0x50   : > { %822 = vmatprep.mubr.bf16.mxu1 %v1274_v54 }
  0x56   : > { %758 = vmatmul.mubr.bf16.gmra.mrb[4].mxu0 %v1276_v55 }
  0x57   : > { %823 = vmatmul.mubr.bf16.gmra.mrb[4].mxu1 %v1277_v56  ;;  %765 = vmatprep.mubr.bf16.mxu0 %v1278_v57 }
  0x58   : > { %830 = vmatprep.mubr.bf16.mxu1 %v1280_v58 }
  0x5e   : > { %766 = vmatmul.mubr.bf16.gmra.mrb[8].mxu0 %v1282_v59 }
  0x5f   : > { %831 = vmatmul.mubr.bf16.gmra.mrb[8].mxu1 %v1283_v60  ;;  %773 = vmatprep.mubr.bf16.mxu0 %v1284_v61 }
  0x60   : > { %838 = vmatprep.mubr.bf16.mxu1 %v1286_v62 }
  0x66   : > { %774 = vmatmul.mubr.bf16.gmra.mrb[12].mxu0 %v1288_v63 }
  0x67   : > { %839 = vmatmul.mubr.bf16.gmra.mrb[12].mxu1 %v1289_v0  ;;  %v363_v0 = vld [vmem:[#allocation2 + $0x30] sm:$0xff] }
 0x121   : > { %v1129_v1 = vpop.f32.mrb[0].mxu0 }
 0x122   : > { %v1169_v2 = vpop.f32.mrb[0].mxu1  ;;  %v1130_v3 = vpop.f32.mrb[1].mxu0 }
 0x123   : > { %v1131_v4 = vadd.f32 %v1130_v3, %v1129_v1  ;;  %v1170_v5 = vpop.f32.mrb[1].mxu1  ;;  %v1132_v6 = vpop.f32.mrb[2].mxu0 }
 0x124   : > { %v1171_v7 = vadd.f32 %v1170_v5, %v1169_v2  ;;  %v1172_v8 = vpop.f32.mrb[2].mxu1  ;;  %v1133_v9 = vpop.f32.mrb[3].mxu0  ;;  %v364_v5 = vld [vmem:[#allocation2 + $0x38] sm:$0xff] }
 0x125   : > { %v1134_v11 = vadd.f32 %v1133_v9, %v1132_v6  ;;  %v1173_v12 = vpop.f32.mrb[3].mxu1 }
 0x126   : > { %v817_v13 = vadd.f32 %v1171_v7, %v1131_v4  ;;  %v1174_v14 = vadd.f32 %v1173_v12, %v1172_v8 }
 0x128   : > { %v847_v16 = vadd.f32 %v817_v13, %v357_v10  ;;  %v820_v17 = vadd.f32 %v1174_v14, %v1134_v11  ;;  %v1106_v10 = vld [vmem:[%s1525_s2] ss:$0 sm:$0xff] (!%p1105_p11) }
 0x129   : > { %v1135_v18 = vpop.f32.mrb[4].mxu0  ;;  %v1107_v11 = vld [vmem:[%s1526_s3] ss:$0 sm:$0xff] (!%p1105_p11) }
 0x12a   : > { %855 = vst [vmem:[#allocation2] sm:$0xff] %v847_v16  ;;  %v848_v19 = vadd.f32 %v820_v17, %v358_v15  ;;  %v1175_v20 = vpop.f32.mrb[4].mxu1  ;;  %v1136_v21 = vpop.f32.mrb[5].mxu0 }
 0x12b   : > { %v1137_v22 = vadd.f32 %v1136_v21, %v1135_v18  ;;  %v1176_v23 = vpop.f32.mrb[5].mxu1  ;;  %v1138_v24 = vpop.f32.mrb[6].mxu0 }
 0x12c   : > { %856 = vst [vmem:[#allocation2 + $0x8] sm:$0xff] %v848_v19  ;;  %v1177_v25 = vadd.f32 %v1176_v23, %v1175_v20  ;;  %v1178_v26 = vpop.f32.mrb[6].mxu1  ;;  %v1139_v27 = vpop.f32.mrb[7].mxu0 }
 0x12d   : > { %v1140_v29 = vadd.f32 %v1139_v27, %v1138_v24  ;;  %v1179_v30 = vpop.f32.mrb[7].mxu1 }
 0x12e   : > { %v825_v31 = vadd.f32 %v1177_v25, %v1137_v22  ;;  %v1180_v32 = vadd.f32 %v1179_v30, %v1178_v26 }
 0x130   : > { %v849_v34 = vadd.f32 %v825_v31, %v359_v28  ;;  %v828_v35 = vadd.f32 %v1180_v32, %v1140_v29 }
 0x131   : > { %v1141_v36 = vpop.f32.mrb[8].mxu0  ;;  %v867_v9 = vld [vmem:[#allocation2] sm:$0xff] (!%p1105_p11) }
 0x132   : > { %857 = vst [vmem:[#allocation2 + $0x10] sm:$0xff] %v849_v34  ;;  %v850_v37 = vadd.f32 %v828_v35, %v360_v33  ;;  %v1181_v38 = vpop.f32.mrb[8].mxu1  ;;  %v1142_v39 = vpop.f32.mrb[9].mxu0  ;;  %v882_v12 = vmul.f32 (!%p1105_p11), %v1106_v10, %v867_v9 }
 0x133   : > { %v1143_v40 = vadd.f32 %v1142_v39, %v1141_v36  ;;  %v1182_v41 = vpop.f32.mrb[9].mxu1  ;;  %v1144_v42 = vpop.f32.mrb[10].mxu0  ;;  %v868_v13 = vld [vmem:[#allocation2 + $0x8] sm:$0xff] (!%p1105_p11) }
 0x134   : > { %858 = vst [vmem:[#allocation2 + $0x18] sm:$0xff] %v850_v37  ;;  %v1183_v43 = vadd.f32 %v1182_v41, %v1181_v38  ;;  %v1184_v44 = vpop.f32.mrb[10].mxu1  ;;  %v1145_v45 = vpop.f32.mrb[11].mxu0  ;;  %v883_v16 = vmul.f32 (!%p1105_p11), %v1106_v10, %v868_v13  ;;  %v897_v22 = vadd.f32 (!%p1105_p11), %v1107_v11, %v882_v12 }
 0x135   : > { %v1146_v47 = vadd.f32 %v1145_v45, %v1144_v42  ;;  %v1185_v48 = vpop.f32.mrb[11].mxu1 }
 0x136   : > { %v833_v49 = vadd.f32 %v1183_v43, %v1143_v40  ;;  %v1186_v50 = vadd.f32 %v1185_v48, %v1184_v44  ;;  %v898_v27 = vadd.f32 (!%p1105_p11), %v1107_v11, %v883_v16  ;;  %v905_v31 = vmax.f32 (!%p1105_p11), %v897_v22, 0.0 }
 0x138   : > { %v851_v52 = vadd.f32 %v833_v49, %v361_v46  ;;  %v836_v53 = vadd.f32 %v1186_v50, %v1146_v47  ;;  %v906_v35 = vmax.f32 (!%p1105_p11), %v898_v27, 0.0  ;;  %913 = vst [vmem:[%s1527_s4] sm:$0xff] (!%p1105_p11), %v905_v31 }
 0x139   : > { %v1147_v54 = vpop.f32.mrb[12].mxu0  ;;  %v869_v14 = vld [vmem:[#allocation2 + $0x10] sm:$0xff] (!%p1105_p11) }
 0x13a   : > { %859 = vst [vmem:[#allocation2 + $0x20] sm:$0xff] %v851_v52  ;;  %v852_v55 = vadd.f32 %v836_v53, %v362_v51  ;;  %v1187_v56 = vpop.f32.mrb[12].mxu1  ;;  %v1148_v57 = vpop.f32.mrb[13].mxu0  ;;  %v884_v17 = vmul.f32 (!%p1105_p11), %v1106_v10, %v869_v14  ;;  %914 = vst [vmem:[%s1527_s4 + $0x8] sm:$0xff] (!%p1105_p11), %v906_v35 }
 0x13b   : > { %v1149_v58 = vadd.f32 %v1148_v57, %v1147_v54  ;;  %v1188_v59 = vpop.f32.mrb[13].mxu1  ;;  %v1150_v60 = vpop.f32.mrb[14].mxu0  ;;  %v870_v15 = vld [vmem:[#allocation2 + $0x18] sm:$0xff] (!%p1105_p11) }
 0x13c   : > { %860 = vst [vmem:[#allocation2 + $0x28] sm:$0xff] %v852_v55  ;;  %v1189_v61 = vadd.f32 %v1188_v59, %v1187_v56  ;;  %v1190_v62 = vpop.f32.mrb[14].mxu1  ;;  %v1151_v63 = vpop.f32.mrb[15].mxu0  ;;  %v885_v18 = vmul.f32 (!%p1105_p11), %v1106_v10, %v870_v15  ;;  %v899_v28 = vadd.f32 (!%p1105_p11), %v1107_v11, %v884_v17 }
 0x13d   : > { %v1152_v1 = vadd.f32 %v1151_v63, %v1150_v60  ;;  %v1191_v2 = vpop.f32.mrb[15].mxu1 }
 0x13e   : > { %v841_v3 = vadd.f32 %v1189_v61, %v1149_v58  ;;  %v1192_v4 = vadd.f32 %v1191_v2, %v1190_v62  ;;  %866 = sbr.rel (%p1105_p11) target bundleno = 339 (0x153), region = 67  ;;  %v900_v29 = vadd.f32 (!%p1105_p11), %v1107_v11, %v885_v18  ;;  %v907_v36 = vmax.f32 (!%p1105_p11), %v899_v28, 0.0 }
 0x140   : > { %v853_v6 = vadd.f32 %v841_v3, %v363_v0  ;;  %v844_v7 = vadd.f32 %v1192_v4, %v1152_v1  ;;  %v908_v37 = vmax.f32 (!%p1105_p11), %v900_v29, 0.0  ;;  %915 = vst [vmem:[%s1527_s4 + $0x10] sm:$0xff] (!%p1105_p11), %v907_v36 }
 0x141   : > { %v871_v19 = vld [vmem:[#allocation2 + $0x20] sm:$0xff] (!%p1105_p11) }
 0x142   : > { %861 = vst [vmem:[#allocation2 + $0x30] sm:$0xff] %v853_v6  ;;  %v854_v8 = vadd.f32 %v844_v7, %v364_v5  ;;  %v886_v23 = vmul.f32 (!%p1105_p11), %v1106_v10, %v871_v19  ;;  %916 = vst [vmem:[%s1527_s4 + $0x18] sm:$0xff] (!%p1105_p11), %v908_v37 }
 0x143   : > { %v872_v20 = vld [vmem:[#allocation2 + $0x28] sm:$0xff] (!%p1105_p11) }
 0x144   : > { %862 = vst [vmem:[#allocation2 + $0x38] sm:$0xff] %v854_v8  ;;  %v887_v24 = vmul.f32 (!%p1105_p11), %v1106_v10, %v872_v20  ;;  %v901_v32 = vadd.f32 (!%p1105_p11), %v1107_v11, %v886_v23 }
 0x146   : > { %v902_v33 = vadd.f32 %v1107_v11, %v887_v24  ;;  %v909_v39 = vmax.f32 %v901_v32, 0.0 }
 0x148   : > { %v910_v40 = vmax.f32 %v902_v33, 0.0  ;;  %917 = vst [vmem:[%s1527_s4 + $0x20] sm:$0xff] %v909_v39 }
 0x149   : > { %v873_v21 = vld [vmem:[#allocation2 + $0x30] sm:$0xff] }
 0x14a   : > { %v888_v25 = vmul.f32 %v1106_v10, %v873_v21  ;;  %918 = vst [vmem:[%s1527_s4 + $0x28] sm:$0xff] %v910_v40 }
 0x14b   : > { %v874_v26 = vld [vmem:[#allocation2 + $0x38] sm:$0xff] }
 0x14c   : > { %v889_v30 = vmul.f32 %v1106_v10, %v874_v26  ;;  %v903_v34 = vadd.f32 %v1107_v11, %v888_v25 }
 0x14e   : > { %v904_v38 = vadd.f32 %v1107_v11, %v889_v30  ;;  %v911_v41 = vmax.f32 %v903_v34, 0.0 }
 0x150   : > { %v912_v42 = vmax.f32 %v904_v38, 0.0  ;;  %919 = vst [vmem:[%s1527_s4 + $0x30] sm:$0xff] %v911_v41 }
 0x152   : > { %920 = vst [vmem:[%s1527_s4 + $0x38] sm:$0xff] %v912_v42 }
 0x153 PF: > { %s14_s19 = sadd.s32 1, %s1328_s19   ;;  %s1528_s15 = smov %s1316_s16 }
 0x154   : > { %p11_p12 = scmp.ge.s32.totalorder %s14_s19, 17   ;;  %s1529_s16 = smov %s1391_s23 }
 0x155   : > { %s1530_s17 = smov %s1324_s18  ;;  %s1531_s18 = smov %s1533_s20 }
 0x156   :  { %13 = sbr.rel (!%p11_p12) target bundleno = 3 (0x3), region = 111 }

// kernel: deepspeech2_forward.10
= control target key start
LH: loop header
LB: loop body
LE: loop exit
PB: predicated region body
PF: predicated region fallthrough
CT: control target
= control target key end

     0   :  { %s1180_s15 = smov 0   ;;  %s1182_s16 = smov 0   ;;  %s1309_s0 = inlined_call_operand.vmem [shape: bf16[32,7680], index: 0, kind: input, shape index: {}]   ;;  %s1310_s1 = inlined_call_operand.vmem [shape: bf16[7680,128], index: 1, kind: input, shape index: {}]   ;;  %s1311_s2 = inlined_call_operand.vmem [shape: f32[1,128], index: 2, kind: input, shape index: {}]   ;;  %s1312_s3 = inlined_call_operand.vmem [shape: f32[1,128], index: 3, kind: input, shape index: {}]   ;;  %s1313_s4 = inlined_call_operand.vmem [shape: f32[32,128], index: 4, kind: output, shape index: {}]  }
   0x1   :  { %s1184_s17 = smov 0   ;;  %s1186_s18 = smov 0  }
   0x2   :  { %s1188_s19 = smov 0  }
   0x3 LB: > { %s26_s20 = sadd.s32 1, %s1148_s18  ;;  %p49_p1 = scmp.ne.s32.totalorder %s1140_s16, %s1136_s15  ;;  %s1152_s19 = sphi %s1188_s19, %s14_s19   ;;  %s1148_s18 = sphi %s1186_s18, %s1317_s18   ;;  %s1144_s17 = sphi %s1184_s17, %s1316_s17   ;;  %s1140_s16 = sphi %s1182_s16, %s1315_s16   ;;  %s1136_s15 = sphi %s1180_s15, %s1314_s15  }
   0x4   : > { %p27_p0 = scmp.ge.s32.totalorder %s26_s20, 15  ;;  %p50_p2 = scmp.eq.s32.totalorder %s1152_s19, 0 }
   0x5   : > { %s42_s22 = sadd.s32 1, %s1140_s16  ;;  %p916_p5 = scmp.ge.s32.totalorder %s1152_s19, 15 }
   0x6   : > { %s1319_s20 = smov (%p27_p0, %s26_s20), 0  ;;  %p51_p3 = por %p50_p2, %p49_p1 }
   0x7   : > { %s38_s21 = ssub.s32 %s1148_s18, %s1319_s20  ;;  %195 = sbr.rel (%p916_p5) target bundleno = 22 (0x16), region = 24 }
   0x8   : > { %p40_p4 = scmp.eq.s32.totalorder %s38_s21, 0 }
   0xa   : > { %s1215_s23 = scalar_select %p40_p4, %s1140_s16, %s42_s22  }
   0xe   : > { %198 = sbr.rel (!%p51_p3) target bundleno = 22 (0x16), region = 28  ;;  %s200_s24 = sand.u32 (%p51_p3), 1, %s1140_s16  }
   0xf   : > { %s972_s25 = sshll.u32 (%p51_p3), %s1148_s18, 4  ;;  %s917_s26 = sshll.u32 (%p51_p3), %s200_s24, 6 }
  0x10   : > { %s208_s29 = scalar_lea.vmem (%p51_p3), %s1309_s0, %s972_s25  ;;  %s202_s30 = scalar_lea.vmem (%p51_p3), [#allocation3], %s917_s26 }
  0x11   : > { %v221_v0 = vld [vmem:[%s208_s29] sm:$0xff] (%p51_p3)  ;;  %v223_v1 = vld [vmem:[%s208_s29 + $0x8] sm:$0xff] (%p51_p3)  ;;  %v225_v2 = vld [vmem:[%s208_s29 + $0xf0] sm:$0xff] (%p51_p3) }
  0x12   : > { %222 = vst [vmem:[%s202_s30] sm:$0xff] (%p51_p3), %v221_v0  ;;  %224 = vst [vmem:[%s202_s30 + $0x8] sm:$0xff] (%p51_p3), %v223_v1  ;;  %v227_v3 = vld [vmem:[%s208_s29 + $0xf8] sm:$0xff] (%p51_p3)  ;;  %v229_v4 = vld [vmem:[%s208_s29 + $0x1e0] sm:$0xff] (%p51_p3) }
  0x13   : > { %226 = vst [vmem:[%s202_s30 + $0x10] sm:$0xff] (%p51_p3), %v225_v2  ;;  %v231_v5 = vld [vmem:[%s208_s29 + $0x1e8] sm:$0xff] (%p51_p3)  ;;  %228 = vst [vmem:[%s202_s30 + $0x18] sm:$0xff] (%p51_p3), %v227_v3  ;;  %v233_v6 = vld [vmem:[%s208_s29 + $0x2d0] sm:$0xff] (%p51_p3) }
  0x14   : > { %230 = vst [vmem:[%s202_s30 + $0x20] sm:$0xff] (%p51_p3), %v229_v4  ;;  %232 = vst [vmem:[%s202_s30 + $0x28] sm:$0xff] (%p51_p3), %v231_v5  ;;  %v235_v7 = vld [vmem:[%s208_s29 + $0x2d8] sm:$0xff] (%p51_p3) }
  0x15   : > { %234 = vst [vmem:[%s202_s30 + $0x30] sm:$0xff] %v233_v6  ;;  %236 = vst [vmem:[%s202_s30 + $0x38] sm:$0xff] %v235_v7 }
  0x16 PF: > { %p920_p6 = scmp.ge.s32.totalorder %s1152_s19, 1  ;;  %p253_p7 = scmp.lt.s32.totalorder %s1152_s19, 16 }
  0x18   : > { %p254_p8 = pnand %p920_p6, %p253_p7 }
  0x19   : > { %s260_s5 = sand.u32 (!%p254_p8), 1, %s1136_s15   ;;  %s922_s6 = sshll.u32 (!%p254_p8), %s1144_s17, 6 }
  0x1a   : > { %257 = sbr.rel (%p254_p8) target bundleno = 319 (0x13f), region = 55  ;;  %s921_s7 = sshll.u32 (!%p254_p8), %s260_s5, 6 }
  0x1b   : > { %p305_p9 = scmp.lt.s32.totalorder (!%p254_p8), %s922_s6, 959  ;;  %s1232_s12 = scalar_lea.vmem (!%p254_p8), [#allocation3], %s921_s7 }
  0x1c   : > { %p924_p10 = scmp.ne.s32.totalorder (!%p254_p8), %s1144_s17, 0 }
  0x21   : > { %s1321_s6 = smov (!%p305_p9, %s922_s6), 959  ;;  %332 = sbr.rel (%p924_p10) target bundleno = 40 (0x28), region = 63 }
  0x22   : > { %s923_s8 = sshll.u32 %s1321_s6, 2  ;;  %v1154_v8 = vmov (!%p924_p10), 0.0  }
  0x23   : > { %s1230_s11 = scalar_lea.vmem %s1310_s1, %s923_s8  ;;  %333 = vst [vmem:[#allocation2] sm:$0xff] (!%p924_p10), %v1154_v8  ;;  %334 = vst [vmem:[#allocation2 + $0x8] sm:$0xff] (!%p924_p10), %v1154_v8 }
  0x24   : > { %335 = vst [vmem:[#allocation2 + $0x10] sm:$0xff] (!%p924_p10), %v1154_v8  ;;  %336 = vst [vmem:[#allocation2 + $0x18] sm:$0xff] (!%p924_p10), %v1154_v8 }
  0x28 PF: > { %v1070_v9 = vld [vmem:[%s1230_s11 + $0x40] sm:$0xff]   ;;  %v1074_v13 = vld [vmem:[%s1230_s11 + $0x48] sm:$0xff]   ;;  %v1078_v17 = vld [vmem:[%s1230_s11 + $0x50] sm:$0xff]   ;;  %p965_p11 = scmp.ne.s32.totalorder %s1144_s17, 14 }
  0x29   : > { %v1071_v10 = vld [vmem:[%s1230_s11 + $0xc0] sm:$0xff]   ;;  %973 = vmatprep.subr.bf16.mxu0 %v1070_v9  ;;  %v1075_v14 = vld [vmem:[%s1230_s11 + $0xc8] sm:$0xff]   ;;  %v1079_v18 = vld [vmem:[%s1230_s11 + $0xd0] sm:$0xff]  }
  0x2a   : > { %v1072_v11 = vld [vmem:[%s1230_s11] sm:$0xff]   ;;  %1001 = vmatprep.subr.bf16.mxu1 %v1071_v10  ;;  %v1076_v15 = vld [vmem:[%s1230_s11 + $0x8] sm:$0xff]   ;;  %v1080_v19 = vld [vmem:[%s1230_s11 + $0x10] sm:$0xff]  }
  0x2b   : > { %v1073_v12 = vld [vmem:[%s1230_s11 + $0x80] sm:$0xff]   ;;  %974 = vmatpush3.bf16.msra.mxu0 %v1072_v11  ;;  %v1077_v16 = vld [vmem:[%s1230_s11 + $0x88] sm:$0xff]   ;;  %v1081_v20 = vld [vmem:[%s1230_s11 + $0x90] sm:$0xff]  }
  0x2c   : > { %1002 = vmatpush3.bf16.msra.mxu1 %v1073_v12  ;;  %975 = vmatprep.subr.bf16.mxu0 %v1074_v13  ;;  %v1082_v21 = vld [vmem:[%s1230_s11 + $0x58] sm:$0xff]   ;;  %v1086_v25 = vld [vmem:[%s1230_s11 + $0x60] sm:$0xff]   ;;  %v1090_v29 = vld [vmem:[%s1230_s11 + $0x68] sm:$0xff]  }
  0x2d   : > { %1003 = vmatprep.subr.bf16.mxu1 %v1075_v14  ;;  %v1083_v22 = vld [vmem:[%s1230_s11 + $0xd8] sm:$0xff]   ;;  %v1087_v26 = vld [vmem:[%s1230_s11 + $0xe0] sm:$0xff]   ;;  %v1091_v30 = vld [vmem:[%s1230_s11 + $0xe8] sm:$0xff]  }
  0x2e   : > { %v1084_v23 = vld [vmem:[%s1230_s11 + $0x18] sm:$0xff]   ;;  %v1088_v27 = vld [vmem:[%s1230_s11 + $0x20] sm:$0xff]   ;;  %v1092_v31 = vld [vmem:[%s1230_s11 + $0x28] sm:$0xff]  }
  0x2f   : > { %976 = vmatpush3.bf16.msra.mxu0 %v1076_v15  ;;  %v1085_v24 = vld [vmem:[%s1230_s11 + $0x98] sm:$0xff]   ;;  %v1089_v28 = vld [vmem:[%s1230_s11 + $0xa0] sm:$0xff]   ;;  %v1093_v32 = vld [vmem:[%s1230_s11 + $0xa8] sm:$0xff]  }
  0x30   : > { %1004 = vmatpush3.bf16.msra.mxu1 %v1077_v16  ;;  %977 = vmatprep.subr.bf16.mxu0 %v1078_v17  ;;  %v1094_v33 = vld [vmem:[%s1230_s11 + $0x70] sm:$0xff]   ;;  %v1098_v37 = vld [vmem:[%s1230_s11 + $0x78] sm:$0xff]   ;;  %v337_v58 = vld [vmem:[#allocation2] sm:$0xff] }
  0x31   : > { %1005 = vmatprep.subr.bf16.mxu1 %v1079_v18  ;;  %v1095_v34 = vld [vmem:[%s1230_s11 + $0xf0] sm:$0xff]   ;;  %v1099_v38 = vld [vmem:[%s1230_s11 + $0xf8] sm:$0xff]   ;;  %v338_v63 = vld [vmem:[#allocation2 + $0x8] sm:$0xff] }
  0x32   : > { %v1096_v35 = vld [vmem:[%s1230_s11 + $0x30] sm:$0xff]   ;;  %v1100_v39 = vld [vmem:[%s1230_s11 + $0x38] sm:$0xff]  }
  0x33   : > { %978 = vmatpush3.bf16.msra.mxu0 %v1080_v19  ;;  %v1097_v36 = vld [vmem:[%s1230_s11 + $0xb0] sm:$0xff]   ;;  %v1101_v40 = vld [vmem:[%s1230_s11 + $0xb8] sm:$0xff]  }
  0x34   : > { %1006 = vmatpush3.bf16.msra.mxu1 %v1081_v20  ;;  %979 = vmatprep.subr.bf16.mxu0 %v1082_v21  ;;  %v1102_v41 = vld [vmem:[%s1232_s12] ss:$16 sps:$4 sm:$0xff]   ;;  %v1104_v42 = vld [vmem:[%s1232_s12 + $0x4] ss:$16 sps:$4 sm:$0xff]   ;;  %v1105_v43 = vld [vmem:[%s1232_s12 + $0x8] ss:$16 sps:$4 sm:$0xff]  }
  0x35   : > { %1007 = vmatprep.subr.bf16.mxu1 %v1083_v22  ;;  %v1107_v44 = vld [vmem:[%s1232_s12 + $0xc] ss:$16 sps:$4 sm:$0xff]   ;;  %677 = vmatprep.mubr.bf16.mxu0 %v1104_v42  ;;  %v1108_v45 = vld [vmem:[%s1232_s12 + $0x24] ss:$16 sps:$4 sm:$0xff]   ;;  %v1112_v47 = vld [vmem:[%s1232_s12 + $0x20] ss:$16 sps:$4 sm:$0xff]  }
  0x36   : > { %726 = vmatprep.mubr.bf16.mxu1 %v1107_v44  ;;  %v1110_v46 = vld [vmem:[%s1232_s12 + $0x2c] ss:$16 sps:$4 sm:$0xff]   ;;  %v1113_v48 = vld [vmem:[%s1232_s12 + $0x28] ss:$16 sps:$4 sm:$0xff]   ;;  %v339_v12 = vld [vmem:[#allocation2 + $0x10] sm:$0xff] }
  0x37   : > { %980 = vmatpush3.bf16.msra.mxu0 %v1084_v23  ;;  %v340_v17 = vld [vmem:[#allocation2 + $0x18] sm:$0xff]  ;;  %v966_v22 = vld [vmem:[%s1311_s2] ss:$0 sm:$0xff] (!%p965_p11) }
  0x38   : > { %1008 = vmatpush3.bf16.msra.mxu1 %v1085_v24  ;;  %981 = vmatprep.subr.bf16.mxu0 %v1086_v25  ;;  %v967_v23 = vld [vmem:[%s1312_s3] ss:$0 sm:$0xff] (!%p965_p11) }
  0x39   : > { %1009 = vmatprep.subr.bf16.mxu1 %v1087_v26 }
  0x3b   : > { %982 = vmatpush3.bf16.msra.mxu0 %v1088_v27 }
  0x3c   : > { %1010 = vmatpush3.bf16.msra.mxu1 %v1089_v28  ;;  %983 = vmatprep.subr.bf16.mxu0 %v1090_v29 }
  0x3d   : > { %1011 = vmatprep.subr.bf16.mxu1 %v1091_v30 }
  0x3f   : > { %984 = vmatpush3.bf16.msra.mxu0 %v1092_v31 }
  0x40   : > { %1012 = vmatpush3.bf16.msra.mxu1 %v1093_v32  ;;  %985 = vmatprep.subr.bf16.mxu0 %v1094_v33 }
  0x41   : > { %1013 = vmatprep.subr.bf16.mxu1 %v1095_v34 }
  0x43   : > { %986 = vmatpush3.bf16.msra.mxu0 %v1096_v35 }
  0x44   : > { %1014 = vmatpush3.bf16.msra.mxu1 %v1097_v36  ;;  %987 = vmatprep.subr.bf16.mxu0 %v1098_v37 }
  0x45   : > { %1015 = vmatprep.subr.bf16.mxu1 %v1099_v38 }
  0x47   : > { %988 = vmatpush3.bf16.msra.mxu0 %v1100_v39 }
  0x48   : > { %1016 = vmatpush3.bf16.msra.mxu1 %v1101_v40 }
  0x4a   : > { %678 = vmatmul.mubr.bf16.vlgmr.msra.gmra.mrb[0].mxu0 %v1102_v41 }
  0x4b   : > { %727 = vmatmul.mubr.bf16.vlgmr.msra.gmra.mrb[0].mxu1 %v1105_v43  ;;  %685 = vmatprep.mubr.bf16.mxu0 %v1108_v45 }
  0x4c   : > { %734 = vmatprep.mubr.bf16.mxu1 %v1110_v46 }
  0x52   : > { %686 = vmatmul.mubr.bf16.gmra.mrb[4].mxu0 %v1112_v47 }
  0x53   : > { %735 = vmatmul.mubr.bf16.gmra.mrb[4].mxu1 %v1113_v48 }
 0x11d   : > { %v989_v49 = vpop.f32.mrb[0].mxu0 }
 0x11e   : > { %v1017_v50 = vpop.f32.mrb[0].mxu1  ;;  %v990_v51 = vpop.f32.mrb[1].mxu0 }
 0x11f   : > { %v991_v52 = vadd.f32 %v990_v51, %v989_v49  ;;  %v1018_v53 = vpop.f32.mrb[1].mxu1  ;;  %v992_v54 = vpop.f32.mrb[2].mxu0 }
 0x120   : > { %v1019_v55 = vadd.f32 %v1018_v53, %v1017_v50  ;;  %v1020_v56 = vpop.f32.mrb[2].mxu1  ;;  %v993_v57 = vpop.f32.mrb[3].mxu0 }
 0x121   : > { %v994_v59 = vadd.f32 %v993_v57, %v992_v54  ;;  %v1021_v60 = vpop.f32.mrb[3].mxu1 }
 0x122   : > { %v729_v61 = vadd.f32 %v1019_v55, %v991_v52  ;;  %v1022_v62 = vadd.f32 %v1021_v60, %v1020_v56 }
 0x124   : > { %v743_v0 = vadd.f32 %v729_v61, %v337_v58  ;;  %v732_v1 = vadd.f32 %v1022_v62, %v994_v59 }
 0x125   : > { %v995_v2 = vpop.f32.mrb[4].mxu0 }
 0x126   : > { %747 = vst [vmem:[#allocation2] sm:$0xff] %v743_v0  ;;  %v744_v3 = vadd.f32 %v732_v1, %v338_v63  ;;  %v1023_v4 = vpop.f32.mrb[4].mxu1  ;;  %v996_v5 = vpop.f32.mrb[5].mxu0 }
 0x127   : > { %v997_v6 = vadd.f32 %v996_v5, %v995_v2  ;;  %v1024_v7 = vpop.f32.mrb[5].mxu1  ;;  %v998_v8 = vpop.f32.mrb[6].mxu0 }
 0x128   : > { %748 = vst [vmem:[#allocation2 + $0x8] sm:$0xff] %v744_v3  ;;  %v1025_v9 = vadd.f32 %v1024_v7, %v1023_v4  ;;  %v1026_v10 = vpop.f32.mrb[6].mxu1  ;;  %v999_v11 = vpop.f32.mrb[7].mxu0 }
 0x129   : > { %v1000_v13 = vadd.f32 %v999_v11, %v998_v8  ;;  %v1027_v14 = vpop.f32.mrb[7].mxu1 }
 0x12a   : > { %v737_v15 = vadd.f32 %v1025_v9, %v997_v6  ;;  %v1028_v16 = vadd.f32 %v1027_v14, %v1026_v10  ;;  %754 = sbr.rel (%p965_p11) target bundleno = 319 (0x13f), region = 67 }
 0x12c   : > { %v745_v18 = vadd.f32 %v737_v15, %v339_v12  ;;  %v740_v19 = vadd.f32 %v1028_v16, %v1000_v13 }
 0x12d   : > { %v755_v21 = vld [vmem:[#allocation2] sm:$0xff] (!%p965_p11) }
 0x12e   : > { %749 = vst [vmem:[#allocation2 + $0x10] sm:$0xff] %v745_v18  ;;  %v746_v20 = vadd.f32 %v740_v19, %v340_v17  ;;  %v766_v24 = vmul.f32 (!%p965_p11), %v966_v22, %v755_v21 }
 0x12f   : > { %v756_v25 = vld [vmem:[#allocation2 + $0x8] sm:$0xff] (!%p965_p11) }
 0x130   : > { %750 = vst [vmem:[#allocation2 + $0x18] sm:$0xff] %v746_v20  ;;  %v767_v28 = vmul.f32 (!%p965_p11), %v966_v22, %v756_v25  ;;  %v777_v31 = vadd.f32 (!%p965_p11), %v967_v23, %v766_v24 }
 0x132   : > { %v778_v32 = vadd.f32 %v967_v23, %v767_v28  ;;  %v781_v35 = vmax.f32 %v777_v31, 0.0 }
 0x134   : > { %v782_v36 = vmax.f32 %v778_v32, 0.0  ;;  %785 = vst [vmem:[%s1313_s4] sm:$0xff] %v781_v35 }
 0x135   : > { %v757_v26 = vld [vmem:[#allocation2 + $0x10] sm:$0xff] }
 0x136   : > { %v768_v29 = vmul.f32 %v966_v22, %v757_v26  ;;  %786 = vst [vmem:[%s1313_s4 + $0x8] sm:$0xff] %v782_v36 }
 0x137   : > { %v758_v27 = vld [vmem:[#allocation2 + $0x18] sm:$0xff] }
 0x138   : > { %v769_v30 = vmul.f32 %v966_v22, %v758_v27  ;;  %v779_v33 = vadd.f32 %v967_v23, %v768_v29 }
 0x13a   : > { %v780_v34 = vadd.f32 %v967_v23, %v769_v30  ;;  %v783_v37 = vmax.f32 %v779_v33, 0.0 }
 0x13c   : > { %v784_v38 = vmax.f32 %v780_v34, 0.0  ;;  %787 = vst [vmem:[%s1313_s4 + $0x10] sm:$0xff] %v783_v37 }
 0x13e   : > { %788 = vst [vmem:[%s1313_s4 + $0x18] sm:$0xff] %v784_v38 }
 0x13f PF: > { %s14_s19 = sadd.s32 1, %s1152_s19   ;;  %s1314_s15 = smov %s1140_s16 }
 0x140   : > { %p11_p12 = scmp.ge.s32.totalorder %s14_s19, 17   ;;  %s1315_s16 = smov %s1215_s23 }
 0x141   : > { %s1316_s17 = smov %s1148_s18  ;;  %s1317_s18 = smov %s1319_s20 }
 0x142   :  { %13 = sbr.rel (!%p11_p12) target bundleno = 3 (0x3), region = 111 }

// kernel: deepspeech2_forward.11
= control target key start
LH: loop header
LB: loop body
LE: loop exit
PB: predicated region body
PF: predicated region fallthrough
CT: control target
= control target key end

     0   :  { %s1129_s15 = smov 0   ;;  %s1131_s16 = smov 0   ;;  %s1320_s0 = inlined_call_operand.vmem [shape: bf16[16,256], index: 0, kind: input, shape index: {}]   ;;  %s1321_s1 = inlined_call_operand.vmem [shape: bf16[256,768], index: 1, kind: input, shape index: {}]   ;;  %s1322_s2 = inlined_call_operand.vmem [shape: f32[1,768], index: 2, kind: input, shape index: {}]   ;;  %s1323_s3 = inlined_call_operand.vmem [shape: f32[1,768], index: 3, kind: input, shape index: {}]   ;;  %s1324_s4 = inlined_call_operand.vmem [shape: f32[16,768], index: 4, kind: output, shape index: {}]  }
   0x1   :  { %s1133_s17 = smov 0   ;;  %s1135_s18 = smov 0  }
   0x2   :  { %s1137_s19 = smov 0  }
   0x3 LB: > { %s29_s20 = sadd.s32 1, %s1098_s18  ;;  %s919_s21 = sadd.s32 4294967295, %s1102_s19   ;;  %s1102_s19 = sphi %s1137_s19, %s14_s19   ;;  %s1098_s18 = sphi %s1135_s18, %s1329_s18   ;;  %s1094_s17 = sphi %s1133_s17, %s1328_s17   ;;  %s1090_s16 = sphi %s1131_s16, %s1327_s16   ;;  %s1086_s15 = sphi %s1129_s15, %s1326_s15  }
   0x4   : > { %p31_p0 = scmp.ge.s32.totalorder %s29_s20, 3  ;;  %p77_p1 = scmp.ne.s32.totalorder %s1090_s16, %s1086_s15 }
   0x5   : > { %p78_p2 = scmp.eq.s32.totalorder %s1102_s19, 0  ;;  %p161_p4 = scmp.eq.s32.totalorder %s919_s21, 2 }
   0x6   : > { %s1331_s20 = smov (%p31_p0, %s29_s20), 0  ;;  %s70_s23 = sadd.s32 1, %s1090_s16 }
   0x7   : > { %p79_p3 = por %p78_p2, %p77_p1  ;;  %s66_s22 = ssub.s32 %s1098_s18, %s1331_s20 }
   0x8   : > { %p68_p5 = scmp.eq.s32.totalorder %s66_s22, 0  ;;  %p1164_p6 = por %p161_p4, %p77_p1 }
   0x9   : > { %p923_p7 = scmp.ge.s32.totalorder %s1102_s19, 3 }
   0xa   : > { %s1169_s25 = scalar_select %p68_p5, %s1090_s16, %s70_s23  }
   0xb   : > { %198 = sbr.rel (%p923_p7) target bundleno = 38 (0x26), region = 20 }
  0x12   : > { %201 = sbr.rel (!%p79_p3) target bundleno = 38 (0x26), region = 24  ;;  %s203_s26 = sand.u32 (%p79_p3), 1, %s1090_s16  }
  0x13   : > { %s971_s27 = sshll.u32 (%p79_p3), %s1098_s18, 3  ;;  %s924_s28 = sshll.u32 (%p79_p3), %s203_s26, 8 }
  0x14   : > { %s1177_s5 = scalar_lea.vmem (%p79_p3), %s1321_s1, %s971_s27  ;;  %s1182_s6 = scalar_lea.vmem (%p79_p3), [#allocation3], %s924_s28 }
  0x15   : > { %v301_v0 = vld [vmem:[%s1177_s5] sm:$0xff] (%p79_p3)  ;;  %v303_v1 = vld [vmem:[%s1177_s5 + $0x18] sm:$0xff] (%p79_p3)  ;;  %v305_v2 = vld [vmem:[%s1177_s5 + $0x30] sm:$0xff] (%p79_p3) }
  0x16   : > { %302 = vst [vmem:[%s1182_s6] sm:$0xff] (%p79_p3), %v301_v0  ;;  %304 = vst [vmem:[%s1182_s6 + $0x8] sm:$0xff] (%p79_p3), %v303_v1  ;;  %v307_v3 = vld [vmem:[%s1177_s5 + $0x48] sm:$0xff] (%p79_p3)  ;;  %v309_v4 = vld [vmem:[%s1177_s5 + $0x60] sm:$0xff] (%p79_p3) }
  0x17   : > { %306 = vst [vmem:[%s1182_s6 + $0x10] sm:$0xff] (%p79_p3), %v305_v2  ;;  %v311_v5 = vld [vmem:[%s1177_s5 + $0x78] sm:$0xff] (%p79_p3)  ;;  %308 = vst [vmem:[%s1182_s6 + $0x18] sm:$0xff] (%p79_p3), %v307_v3  ;;  %v313_v6 = vld [vmem:[%s1177_s5 + $0x90] sm:$0xff] (%p79_p3) }
  0x18   : > { %310 = vst [vmem:[%s1182_s6 + $0x20] sm:$0xff] (%p79_p3), %v309_v4  ;;  %312 = vst [vmem:[%s1182_s6 + $0x28] sm:$0xff] (%p79_p3), %v311_v5  ;;  %v315_v7 = vld [vmem:[%s1177_s5 + $0xa8] sm:$0xff] (%p79_p3)  ;;  %v317_v8 = vld [vmem:[%s1177_s5 + $0xc0] sm:$0xff] (%p79_p3) }
  0x19   : > { %314 = vst [vmem:[%s1182_s6 + $0x30] sm:$0xff] %v313_v6  ;;  %316 = vst [vmem:[%s1182_s6 + $0x38] sm:$0xff] %v315_v7  ;;  %v319_v9 = vld [vmem:[%s1177_s5 + $0xd8] sm:$0xff]  ;;  %v321_v10 = vld [vmem:[%s1177_s5 + $0xf0] sm:$0xff] }
  0x1a   : > { %318 = vst [vmem:[%s1182_s6 + $0x40] sm:$0xff] %v317_v8  ;;  %v323_v11 = vld [vmem:[%s1177_s5 + $0x108] sm:$0xff]  ;;  %320 = vst [vmem:[%s1182_s6 + $0x48] sm:$0xff] %v319_v9  ;;  %v325_v12 = vld [vmem:[%s1177_s5 + $0x120] sm:$0xff] }
  0x1b   : > { %322 = vst [vmem:[%s1182_s6 + $0x50] sm:$0xff] %v321_v10  ;;  %324 = vst [vmem:[%s1182_s6 + $0x58] sm:$0xff] %v323_v11  ;;  %v327_v13 = vld [vmem:[%s1177_s5 + $0x138] sm:$0xff]  ;;  %v329_v14 = vld [vmem:[%s1177_s5 + $0x150] sm:$0xff] }
  0x1c   : > { %326 = vst [vmem:[%s1182_s6 + $0x60] sm:$0xff] %v325_v12  ;;  %328 = vst [vmem:[%s1182_s6 + $0x68] sm:$0xff] %v327_v13  ;;  %v331_v15 = vld [vmem:[%s1177_s5 + $0x168] sm:$0xff]  ;;  %v333_v16 = vld [vmem:[%s1177_s5 + $0x180] sm:$0xff] }
  0x1d   : > { %330 = vst [vmem:[%s1182_s6 + $0x70] sm:$0xff] %v329_v14  ;;  %v335_v17 = vld [vmem:[%s1177_s5 + $0x198] sm:$0xff]  ;;  %332 = vst [vmem:[%s1182_s6 + $0x78] sm:$0xff] %v331_v15  ;;  %v337_v18 = vld [vmem:[%s1177_s5 + $0x1b0] sm:$0xff] }
  0x1e   : > { %334 = vst [vmem:[%s1182_s6 + $0x80] sm:$0xff] %v333_v16  ;;  %336 = vst [vmem:[%s1182_s6 + $0x88] sm:$0xff] %v335_v17  ;;  %v339_v19 = vld [vmem:[%s1177_s5 + $0x1c8] sm:$0xff]  ;;  %v341_v20 = vld [vmem:[%s1177_s5 + $0x1e0] sm:$0xff] }
  0x1f   : > { %338 = vst [vmem:[%s1182_s6 + $0x90] sm:$0xff] %v337_v18  ;;  %340 = vst [vmem:[%s1182_s6 + $0x98] sm:$0xff] %v339_v19  ;;  %v343_v21 = vld [vmem:[%s1177_s5 + $0x1f8] sm:$0xff]  ;;  %v345_v22 = vld [vmem:[%s1177_s5 + $0x210] sm:$0xff] }
  0x20   : > { %342 = vst [vmem:[%s1182_s6 + $0xa0] sm:$0xff] %v341_v20  ;;  %v347_v23 = vld [vmem:[%s1177_s5 + $0x228] sm:$0xff]  ;;  %344 = vst [vmem:[%s1182_s6 + $0xa8] sm:$0xff] %v343_v21  ;;  %v349_v24 = vld [vmem:[%s1177_s5 + $0x240] sm:$0xff] }
  0x21   : > { %346 = vst [vmem:[%s1182_s6 + $0xb0] sm:$0xff] %v345_v22  ;;  %348 = vst [vmem:[%s1182_s6 + $0xb8] sm:$0xff] %v347_v23  ;;  %v351_v25 = vld [vmem:[%s1177_s5 + $0x258] sm:$0xff]  ;;  %v353_v26 = vld [vmem:[%s1177_s5 + $0x270] sm:$0xff] }
  0x22   : > { %350 = vst [vmem:[%s1182_s6 + $0xc0] sm:$0xff] %v349_v24  ;;  %352 = vst [vmem:[%s1182_s6 + $0xc8] sm:$0xff] %v351_v25  ;;  %v355_v27 = vld [vmem:[%s1177_s5 + $0x288] sm:$0xff]  ;;  %v357_v28 = vld [vmem:[%s1177_s5 + $0x2a0] sm:$0xff] }
  0x23   : > { %354 = vst [vmem:[%s1182_s6 + $0xd0] sm:$0xff] %v353_v26  ;;  %v359_v29 = vld [vmem:[%s1177_s5 + $0x2b8] sm:$0xff]  ;;  %356 = vst [vmem:[%s1182_s6 + $0xd8] sm:$0xff] %v355_v27  ;;  %v361_v30 = vld [vmem:[%s1177_s5 + $0x2d0] sm:$0xff] }
  0x24   : > { %358 = vst [vmem:[%s1182_s6 + $0xe0] sm:$0xff] %v357_v28  ;;  %360 = vst [vmem:[%s1182_s6 + $0xe8] sm:$0xff] %v359_v29  ;;  %v363_v31 = vld [vmem:[%s1177_s5 + $0x2e8] sm:$0xff] }
  0x25   : > { %362 = vst [vmem:[%s1182_s6 + $0xf0] sm:$0xff] %v361_v30  ;;  %364 = vst [vmem:[%s1182_s6 + $0xf8] sm:$0xff] %v363_v31 }
  0x26 PF: > { %p927_p8 = scmp.ge.s32.totalorder %s1102_s19, 1  ;;  %p385_p9 = scmp.lt.s32.totalorder %s1102_s19, 4 }
  0x28   : > { %p386_p10 = pnand %p927_p8, %p385_p9 }
  0x29   : > { %s392_s7 = sand.u32 (!%p386_p10), 1, %s1086_s15   ;;  %v1063_v32 = vld [vmem:[%s1320_s0 + $0x4] ss:$8 sps:$4 sm:$0xff] (!%p386_p10)   ;;  %v1061_v1 = vld [vmem:[%s1320_s0] ss:$8 sps:$4 sm:$0xff] (!%p386_p10)   ;;  %s930_s14 = sshll.u32 (!%p386_p10), %s1094_s17, 1  ;;  %v736_v2 = vlaneseq (!%p386_p10) }
  0x2a   : > { %389 = sbr.rel (%p386_p10) target bundleno = 337 (0x151), region = 70  ;;  %s928_s8 = sshll.u32 (!%p386_p10), %s392_s7, 8  ;;  %708 = vmatprep.mubr.bf16.mxu0 (!%p386_p10), %v1063_v32 }
  0x2b   : > { %s1253_s11 = scalar_lea.vmem (!%p386_p10), [#allocation3], %s928_s8  ;;  %p449_p11 = scmp.lt.s32.totalorder (!%p386_p10), %s930_s14, 5  ;;  %v737_v3 = vshrl.u32 (!%p386_p10), %v736_v2, 7 }
  0x2c   : > { %v1013_v33 = vld [vmem:[%s1253_s11 + $0x4] ss:$8 sps:$4 sm:$0xff] (!%p386_p10)   ;;  %v1015_v34 = vld [vmem:[%s1253_s11] ss:$8 sps:$4 sm:$0xff] (!%p386_p10)   ;;  %v1016_v35 = vld [vmem:[%s1253_s11 + $0x14] ss:$8 sps:$4 sm:$0xff] (!%p386_p10)  }
  0x2d   : > { %676 = vmatprep.subr.bf16.mxu0 (!%p386_p10), %v1013_v33  ;;  %v1018_v36 = vld [vmem:[%s1253_s11 + $0x10] ss:$8 sps:$4 sm:$0xff] (!%p386_p10)   ;;  %v1019_v37 = vld [vmem:[%s1253_s11 + $0x24] ss:$8 sps:$4 sm:$0xff] (!%p386_p10)   ;;  %v1021_v38 = vld [vmem:[%s1253_s11 + $0x20] ss:$8 sps:$4 sm:$0xff] (!%p386_p10)  }
  0x2e   : > { %677 = vmatpush1.bf16.msra.mxu0 (!%p386_p10), %v1015_v34  ;;  %v1022_v39 = vld [vmem:[%s1253_s11 + $0x34] ss:$8 sps:$4 sm:$0xff] (!%p386_p10)   ;;  %v1024_v40 = vld [vmem:[%s1253_s11 + $0x30] ss:$8 sps:$4 sm:$0xff] (!%p386_p10)   ;;  %v1025_v41 = vld [vmem:[%s1253_s11 + $0x44] ss:$8 sps:$4 sm:$0xff] (!%p386_p10)  }
  0x2f   : > { %678 = vmatprep.subr.bf16.mxu0 (!%p386_p10), %v1016_v35  ;;  %v1027_v42 = vld [vmem:[%s1253_s11 + $0x40] ss:$8 sps:$4 sm:$0xff] (!%p386_p10)   ;;  %v1028_v43 = vld [vmem:[%s1253_s11 + $0x54] ss:$8 sps:$4 sm:$0xff] (!%p386_p10)   ;;  %v1030_v44 = vld [vmem:[%s1253_s11 + $0x50] ss:$8 sps:$4 sm:$0xff] (!%p386_p10)  }
  0x30   : > { %v1031_v45 = vld [vmem:[%s1253_s11 + $0x64] ss:$8 sps:$4 sm:$0xff] (!%p386_p10)   ;;  %v1033_v46 = vld [vmem:[%s1253_s11 + $0x60] ss:$8 sps:$4 sm:$0xff] (!%p386_p10)   ;;  %v1034_v47 = vld [vmem:[%s1253_s11 + $0x74] ss:$8 sps:$4 sm:$0xff] (!%p386_p10)  }
  0x31   : > { %v1036_v48 = vld [vmem:[%s1253_s11 + $0x70] ss:$8 sps:$4 sm:$0xff]   ;;  %v1037_v49 = vld [vmem:[%s1253_s11 + $0x84] ss:$8 sps:$4 sm:$0xff]   ;;  %v1039_v50 = vld [vmem:[%s1253_s11 + $0x80] ss:$8 sps:$4 sm:$0xff]  }
  0x32   : > { %679 = vmatpush1.bf16.msra.mxu0 %v1018_v36  ;;  %v1040_v51 = vld [vmem:[%s1253_s11 + $0x94] ss:$8 sps:$4 sm:$0xff]   ;;  %v1042_v52 = vld [vmem:[%s1253_s11 + $0x90] ss:$8 sps:$4 sm:$0xff]   ;;  %v1043_v53 = vld [vmem:[%s1253_s11 + $0xa4] ss:$8 sps:$4 sm:$0xff]  }
  0x33   : > { %680 = vmatprep.subr.bf16.mxu0 %v1019_v37  ;;  %v1045_v54 = vld [vmem:[%s1253_s11 + $0xa0] ss:$8 sps:$4 sm:$0xff]   ;;  %v1046_v55 = vld [vmem:[%s1253_s11 + $0xb4] ss:$8 sps:$4 sm:$0xff]   ;;  %v1048_v56 = vld [vmem:[%s1253_s11 + $0xb0] ss:$8 sps:$4 sm:$0xff]  }
  0x34   : > { %v1049_v57 = vld [vmem:[%s1253_s11 + $0xc4] ss:$8 sps:$4 sm:$0xff]   ;;  %v1051_v58 = vld [vmem:[%s1253_s11 + $0xc0] ss:$8 sps:$4 sm:$0xff]   ;;  %v1052_v59 = vld [vmem:[%s1253_s11 + $0xd4] ss:$8 sps:$4 sm:$0xff]  }
  0x35   : > { %v1054_v60 = vld [vmem:[%s1253_s11 + $0xd0] ss:$8 sps:$4 sm:$0xff]   ;;  %v1055_v61 = vld [vmem:[%s1253_s11 + $0xe4] ss:$8 sps:$4 sm:$0xff]   ;;  %v1057_v62 = vld [vmem:[%s1253_s11 + $0xe0] ss:$8 sps:$4 sm:$0xff]  }
  0x36   : > { %681 = vmatpush1.bf16.msra.mxu0 %v1021_v38  ;;  %v1058_v63 = vld [vmem:[%s1253_s11 + $0xf4] ss:$8 sps:$4 sm:$0xff]   ;;  %v1060_v0 = vld [vmem:[%s1253_s11 + $0xf0] ss:$8 sps:$4 sm:$0xff]   ;;  %s1333_s14 = smov (!%p449_p11, %s930_s14), 5  ;;  %v738_v4 = vsub.s32 0, %v737_v3 }
  0x37   : > { %682 = vmatprep.subr.bf16.mxu0 %v1022_v39  ;;  %s451_s23 = scalar_lea.vmem %s1322_s2, %s1333_s14  ;;  %s456_s28 = scalar_lea.vmem %s1323_s3, %s1333_s14  ;;  %v742_v6 = vsub.s32 1, %v737_v3 }
  0x38   : > { %v734_v5 = vld [vmem:[%s451_s23] sm:$0x3]  ;;  %s929_s29 = sshll.u32 %s392_s7, 5  ;;  %s972_s15 = sshll.u32 (%p1164_p6), %s1094_s17, 4 }
  0x39   : > { %v750_v7 = vld [vmem:[%s456_s28] sm:$0x3]  ;;  %v739_v8 = vrot.slane %v734_v5, %v738_v4  ;;  %v743_v9 = vrot.slane %v734_v5, %v742_v6  ;;  %s433_s30 = scalar_lea.vmem [#allocation4], %s929_s29  ;;  %s782_s7 = scalar_lea.vmem (%p1164_p6), %s1324_s4, %s972_s15 }
  0x3a   : > { %683 = vmatpush1.bf16.msra.mxu0 %v1024_v40  ;;  %v755_v10 = vrot.slane %v750_v7, %v738_v4  ;;  %v759_v12 = vrot.slane %v750_v7, %v742_v6 }
  0x3b   : > { %684 = vmatprep.subr.bf16.mxu0 %v1025_v41 }
  0x3e   : > { %685 = vmatpush1.bf16.msra.mxu0 %v1027_v42 }
  0x3f   : > { %686 = vmatprep.subr.bf16.mxu0 %v1028_v43 }
  0x42   : > { %687 = vmatpush1.bf16.msra.mxu0 %v1030_v44 }
  0x43   : > { %688 = vmatprep.subr.bf16.mxu0 %v1031_v45 }
  0x46   : > { %689 = vmatpush1.bf16.msra.mxu0 %v1033_v46 }
  0x47   : > { %690 = vmatprep.subr.bf16.mxu0 %v1034_v47 }
  0x4a   : > { %691 = vmatpush1.bf16.msra.mxu0 %v1036_v48 }
  0x4b   : > { %692 = vmatprep.subr.bf16.mxu0 %v1037_v49 }
  0x4e   : > { %693 = vmatpush1.bf16.msra.mxu0 %v1039_v50 }
  0x4f   : > { %694 = vmatprep.subr.bf16.mxu0 %v1040_v51 }
  0x52   : > { %695 = vmatpush1.bf16.msra.mxu0 %v1042_v52 }
  0x53   : > { %696 = vmatprep.subr.bf16.mxu0 %v1043_v53 }
  0x56   : > { %697 = vmatpush1.bf16.msra.mxu0 %v1045_v54 }
  0x57   : > { %698 = vmatprep.subr.bf16.mxu0 %v1046_v55 }
  0x5a   : > { %699 = vmatpush1.bf16.msra.mxu0 %v1048_v56 }
  0x5b   : > { %700 = vmatprep.subr.bf16.mxu0 %v1049_v57 }
  0x5e   : > { %701 = vmatpush1.bf16.msra.mxu0 %v1051_v58 }
  0x5f   : > { %702 = vmatprep.subr.bf16.mxu0 %v1052_v59 }
  0x62   : > { %703 = vmatpush1.bf16.msra.mxu0 %v1054_v60 }
  0x63   : > { %704 = vmatprep.subr.bf16.mxu0 %v1055_v61 }
  0x66   : > { %705 = vmatpush1.bf16.msra.mxu0 %v1057_v62 }
  0x67   : > { %706 = vmatprep.subr.bf16.mxu0 %v1058_v63 }
  0x6a   : > { %707 = vmatpush1.bf16.msra.mxu0 %v1060_v0 }
  0x6d   : > { %709 = vmatmul.mubr.bf16.vlgmr.msra.gmra.mrb[0].mxu0 %v1061_v1 }
 0x140   : > { %v710_v11 = vpop.f32.mrb[0].mxu0 }
 0x141   : > { %v746_v13 = vmul.f32 %v739_v8, %v710_v11  ;;  %v712_v14 = vpop.f32.mrb[1].mxu0 }
 0x142   : > { %v747_v15 = vmul.f32 %v743_v9, %v712_v14  ;;  %v714_v16 = vpop.f32.mrb[2].mxu0  ;;  %776 = sbr.rel (!%p1164_p6) target bundleno = 337 (0x151), region = 86 }
 0x143   : > { %v762_v17 = vadd.f32 %v755_v10, %v746_v13  ;;  %v748_v18 = vmul.f32 %v739_v8, %v714_v16  ;;  %v716_v19 = vpop.f32.mrb[3].mxu0 }
 0x144   : > { %v763_v20 = vadd.f32 %v759_v12, %v747_v15  ;;  %v749_v21 = vmul.f32 %v743_v9, %v716_v19 }
 0x145   : > { %766 = vst [vmem:[%s433_s30] sm:$0xff] %v762_v17  ;;  %v764_v22 = vadd.f32 %v755_v10, %v748_v18 }
 0x146   : > { %767 = vst [vmem:[%s433_s30 + $0x8] sm:$0xff] %v763_v20  ;;  %v765_v23 = vadd.f32 %v759_v12, %v749_v21 }
 0x147   : > { %768 = vst [vmem:[%s433_s30 + $0x10] sm:$0xff] %v764_v22 }
 0x148   : > { %769 = vst [vmem:[%s433_s30 + $0x18] sm:$0xff] %v765_v23 }
 0x14c   : > { %v795_v24 = vld [vmem:[%s433_s30] sm:$0xff] }
 0x14d   : > { %v797_v25 = vld [vmem:[%s433_s30 + $0x8] sm:$0xff]  ;;  %796 = vst [vmem:[%s782_s7] sm:$0xff] %v795_v24 }
 0x14e   : > { %v799_v26 = vld [vmem:[%s433_s30 + $0x10] sm:$0xff]  ;;  %798 = vst [vmem:[%s782_s7 + $0x8] sm:$0xff] %v797_v25 }
 0x14f   : > { %v801_v27 = vld [vmem:[%s433_s30 + $0x18] sm:$0xff]  ;;  %800 = vst [vmem:[%s782_s7 + $0x30] sm:$0xff] %v799_v26 }
 0x150   : > { %802 = vst [vmem:[%s782_s7 + $0x38] sm:$0xff] %v801_v27 }
 0x151 PF: > { %s14_s19 = sadd.s32 1, %s1102_s19   ;;  %s1326_s15 = smov %s1090_s16 }
 0x152   : > { %p11_p12 = scmp.ge.s32.totalorder %s14_s19, 5   ;;  %s1327_s16 = smov %s1169_s25 }
 0x153   : > { %s1328_s17 = smov %s1098_s18  ;;  %s1329_s18 = smov %s1331_s20 }
 0x154   :  { %13 = sbr.rel (!%p11_p12) target bundleno = 3 (0x3), region = 149 }

// kernel: deepspeech2_forward.12
= control target key start
LH: loop header
LB: loop body
LE: loop exit
PB: predicated region body
PF: predicated region fallthrough
CT: control target
= control target key end

     0   :  { %s1935_s12 = smov 0   ;;  %s1937_s13 = smov 0   ;;  %s2439_s0 = inlined_call_operand.vmem [shape: f32[2,8,8,384], index: 0, kind: input, shape index: {}]   ;;  %s2440_s1 = inlined_call_operand.vmem [shape: bf16[2,128,384], index: 1, kind: input, shape index: {}]   ;;  %s2441_s2 = inlined_call_operand.vmem [shape: f32[2,1,384], index: 2, kind: input, shape index: {}]   ;;  %s2442_s3 = inlined_call_operand.vmem [shape: f32[2,8,8,128], index: 3, kind: output, shape index: {}]  }
   0x1   :  { %s1939_s14 = smov 0  }
   0x2 LB: > { %s25_s15 = sadd.s32 1, %s1905_s13  ;;  %p1423_p0 = scmp.ge.s32.totalorder %s1909_s14, 1  ;;  %s1909_s14 = sphi %s1939_s14, %s13_s14   ;;  %s1905_s13 = sphi %s1937_s13, %s2444_s13   ;;  %s1901_s12 = sphi %s1935_s12, %s2443_s12  }
   0x3   : > { %p27_p1 = scmp.ge.s32.totalorder %s25_s15, 2  ;;  %p178_p2 = scmp.lt.s32.totalorder %s1909_s14, 3 }
   0x5   : > { %s2446_s15 = smov (%p27_p1, %s25_s15), 0  ;;  %p179_p3 = pnand %p1423_p0, %p178_p2 }
   0x6   : > { %p221_p4 = scmp.lt.s32.totalorder (!%p179_p3), %s1901_s12, 1  ;;  %v1911_v0 = vmov (!%p179_p3), 0.0   ;;  %v1912_v1 = vmov (!%p179_p3), 0   ;;  %vm1913_vm0 = vmmov (!%p179_p3), 0   ;;  %v1914_v25 = vmov (!%p179_p3), 0.0|0.0  }
   0x7   : > { %182 = sbr.rel (%p179_p3) target bundleno = 2154 (0x86a), region = 32  ;;  %1571 = vmatprep.subr.bf16.mxu1 (!%p179_p3), %v1911_v0  ;;  %470 = vmatprep.mubr.bf16.mxu0 (!%p179_p3), %v1912_v1  ;;  %v295_v27 = vlaneseq (!%p179_p3) }
   0x8   : > { %1587 = vmatprep.mubr.msk.bf16.mxu1 (!%p179_p3), %vm1913_vm0, %v1911_v0 }
   0x9   : > { %v296_v28 = vshrl.u32 (!%p179_p3), %v295_v27, 7 }
   0xb   : > { %v297_v29 = vsub.s32 (!%p179_p3), 0, %v296_v28  ;;  %v301_v31 = vsub.s32 (!%p179_p3), 1, %v296_v28  ;;  %v305_v52 = vsub.s32 (!%p179_p3), 2, %v296_v28 }
   0xe   : > { %s2448_s12 = smov (!%p221_p4, %s1901_s12), 1 }
   0xf   : > { %s1731_s16 = smul.u32 192, %s2448_s12  ;;  %s1498_s27 = sshll.u32 %s2448_s12, 6 }
  0x10   : > { %s1732_s20 = smul.u32 3, %s2448_s12  ;;  %s2134_s30 = scalar_lea.vmem %s2442_s3, %s1498_s27 }
  0x11   : > { %s1965_s19 = scalar_lea.vmem %s2440_s1, %s1731_s16  ;;  %s2116_s26 = scalar_lea.vmem %s2439_s0, %s1731_s16 }
  0x12   : > { %v1968_v2 = vld [vmem:[%s1965_s19 + $0x4] ss:$12 sps:$4 sm:$0xff]   ;;  %v1971_v3 = vld [vmem:[%s1965_s19] ss:$12 sps:$4 sm:$0xff]   ;;  %v1975_v4 = vld [vmem:[%s1965_s19 + $0x1c] ss:$12 sps:$4 sm:$0xff]   ;;  %s239_s23 = scalar_lea.vmem %s2441_s2, %s1732_s20 }
  0x13   : > { %438 = vmatprep.subr.bf16.mxu0 %v1968_v2  ;;  %v1979_v5 = vld [vmem:[%s1965_s19 + $0x18] ss:$12 sps:$4 sm:$0xff]   ;;  %v1983_v6 = vld [vmem:[%s1965_s19 + $0x34] ss:$12 sps:$4 sm:$0xff]   ;;  %v1987_v7 = vld [vmem:[%s1965_s19 + $0x30] ss:$12 sps:$4 sm:$0xff]  }
  0x14   : > { %439 = vmatpush1.bf16.msra.mxu0 %v1971_v3  ;;  %v1991_v8 = vld [vmem:[%s1965_s19 + $0x4c] ss:$12 sps:$4 sm:$0xff]   ;;  %v1994_v9 = vld [vmem:[%s1965_s19 + $0x8] ss:$12 sps:$4 sm:$0xff]   ;;  %v2001_v11 = vld [vmem:[%s1965_s19 + $0x64] ss:$12 sps:$4 sm:$0xff]  }
  0x15   : > { %440 = vmatprep.subr.bf16.mxu0 %v1975_v4  ;;  %v1998_v10 = vld [vmem:[%s1965_s19 + $0x48] ss:$12 sps:$4 sm:$0xff]   ;;  %1572 = vmatpush3.bf16.msra.mxu1 %v1994_v9  ;;  %v2006_v12 = vld [vmem:[%s1965_s19 + $0x20] ss:$12 sps:$4 sm:$0xff]   ;;  %v2019_v15 = vld [vmem:[%s1965_s19 + $0x38] ss:$12 sps:$4 sm:$0xff]  }
  0x16   : > { %1573 = vmatprep.subr.bf16.mxu1 %v1911_v0  ;;  %v2010_v13 = vld [vmem:[%s1965_s19 + $0x60] ss:$12 sps:$4 sm:$0xff]   ;;  %v2014_v14 = vld [vmem:[%s1965_s19 + $0x7c] ss:$12 sps:$4 sm:$0xff]   ;;  %v2024_v16 = vld [vmem:[%s1965_s19 + $0x78] ss:$12 sps:$4 sm:$0xff]  }
  0x17   : > { %v2028_v17 = vld [vmem:[%s1965_s19 + $0x94] ss:$12 sps:$4 sm:$0xff]   ;;  %v2032_v18 = vld [vmem:[%s1965_s19 + $0x50] ss:$12 sps:$4 sm:$0xff]   ;;  %v2041_v20 = vld [vmem:[%s1965_s19 + $0xac] ss:$12 sps:$4 sm:$0xff]  }
  0x18   : > { %441 = vmatpush1.bf16.msra.mxu0 %v1979_v5  ;;  %v2037_v19 = vld [vmem:[%s1965_s19 + $0x90] ss:$12 sps:$4 sm:$0xff]   ;;  %v2045_v21 = vld [vmem:[%s1965_s19 + $0x68] ss:$12 sps:$4 sm:$0xff]   ;;  %v2055_v23 = vld [vmem:[%s1965_s19 + $0x80] ss:$12 sps:$4 sm:$0xff]  }
  0x19   : > { %442 = vmatprep.subr.bf16.mxu0 %v1983_v6  ;;  %1574 = vmatpush3.bf16.msra.mxu1 %v2006_v12  ;;  %v2050_v22 = vld [vmem:[%s1965_s19 + $0xa8] ss:$12 sps:$4 sm:$0xff]   ;;  %v2061_v24 = vld [vmem:[%s1965_s19 + $0x98] ss:$12 sps:$4 sm:$0xff]   ;;  %v2069_v26 = vld [vmem:[%s1965_s19 + $0xb0] ss:$12 sps:$4 sm:$0xff]  }
  0x1a   : > { %1575 = vmatprep.subr.bf16.mxu1 %v1911_v0  ;;  %v288_v30 = vld [vmem:[%s239_s23] sm:$0x7]  ;;  %v291_v41 = vld [vmem:[%s2116_s26 + $0x8] sm:$0xff]  ;;  %v292_v58 = vld [vmem:[%s2116_s26 + $0x10] sm:$0xff] }
  0x1b   : > { %v2118_v32 = vrot.slane %v288_v30, %v297_v29  ;;  %v2120_v33 = vrot.slane %v288_v30, %v301_v31  ;;  %v290_v34 = vld [vmem:[%s2116_s26] sm:$0xff]  ;;  %v2126_v53 = vrot.slane %v288_v30, %v305_v52  ;;  %v1454_v30 = vld [vmem:[%s2116_s26 + $0x18] sm:$0xff] }
  0x1c   : > { %443 = vmatpush1.bf16.msra.mxu0 %v1987_v7 }
  0x1d   : > { %444 = vmatprep.subr.bf16.mxu0 %v1991_v8  ;;  %1576 = vmatpush3.bf16.msra.mxu1 %v2019_v15 }
  0x1e   : > { %1577 = vmatprep.subr.bf16.mxu1 %v1911_v0 }
  0x20   : > { %445 = vmatpush1.bf16.msra.mxu0 %v1998_v10 }
  0x21   : > { %446 = vmatprep.subr.bf16.mxu0 %v2001_v11  ;;  %1578 = vmatpush3.bf16.msra.mxu1 %v2032_v18 }
  0x22   : > { %1579 = vmatprep.subr.bf16.mxu1 %v1911_v0 }
  0x24   : > { %447 = vmatpush1.bf16.msra.mxu0 %v2010_v13 }
  0x25   : > { %448 = vmatprep.subr.bf16.mxu0 %v2014_v14  ;;  %1580 = vmatpush3.bf16.msra.mxu1 %v2045_v21 }
  0x26   : > { %1581 = vmatprep.subr.bf16.mxu1 %v1911_v0 }
  0x28   : > { %449 = vmatpush1.bf16.msra.mxu0 %v2024_v16 }
  0x29   : > { %450 = vmatprep.subr.bf16.mxu0 %v2028_v17  ;;  %1582 = vmatpush3.bf16.msra.mxu1 %v2055_v23 }
  0x2a   : > { %1583 = vmatprep.subr.bf16.mxu1 %v1911_v0 }
  0x2c   : > { %451 = vmatpush1.bf16.msra.mxu0 %v2037_v19 }
  0x2d   : > { %452 = vmatprep.subr.bf16.mxu0 %v2041_v20  ;;  %1584 = vmatpush3.bf16.msra.mxu1 %v2061_v24 }
  0x2e   : > { %1585 = vmatprep.subr.bf16.mxu1 %v1911_v0 }
  0x30   : > { %453 = vmatpush1.bf16.msra.mxu0 %v2050_v22 }
  0x31   : > { %546 = vmatprep.subr.bf16.mxu0 %v1968_v2  ;;  %1586 = vmatpush3.bf16.msra.mxu1 %v2069_v26 }
  0x32   : > { %1591 = vmatprep.subr.bf16.mxu1 %v1911_v0 }
  0x33   : > { %471 = vmatmul.mubr.bf16.vlgmr.msra.gmra.mrb[0].mxu0 %v1914_v25 }
  0x34   : > { %547 = vmatpush1.bf16.msra.mxu0 %v1971_v3  ;;  %578 = vmatprep.mubr.bf16.mxu0 %v1912_v1 }
  0x35   : > { %548 = vmatprep.subr.bf16.mxu0 %v1975_v4  ;;  %1588 = vmatmul.mubr.bf16.vlgmr.msra.gmra.mrb[0].mxu1 %v1914_v25 }
  0x36   : > { %1592 = vmatpush3.bf16.msra.mxu1 %v1994_v9  ;;  %1607 = vmatprep.mubr.msk.bf16.mxu1 %vm1913_vm0, %v1911_v0 }
  0x37   : > { %1593 = vmatprep.subr.bf16.mxu1 %v1911_v0 }
  0x38   : > { %549 = vmatpush1.bf16.msra.mxu0 %v1979_v5 }
  0x39   : > { %550 = vmatprep.subr.bf16.mxu0 %v1983_v6 }
  0x3a   : > { %1594 = vmatpush3.bf16.msra.mxu1 %v2006_v12 }
  0x3b   : > { %1595 = vmatprep.subr.bf16.mxu1 %v1911_v0 }
  0x3c   : > { %551 = vmatpush1.bf16.msra.mxu0 %v1987_v7 }
  0x3d   : > { %552 = vmatprep.subr.bf16.mxu0 %v1991_v8 }
  0x3e   : > { %1596 = vmatpush3.bf16.msra.mxu1 %v2019_v15 }
  0x3f   : > { %1597 = vmatprep.subr.bf16.mxu1 %v1911_v0 }
  0x40   : > { %553 = vmatpush1.bf16.msra.mxu0 %v1998_v10 }
  0x41   : > { %554 = vmatprep.subr.bf16.mxu0 %v2001_v11 }
  0x42   : > { %1598 = vmatpush3.bf16.msra.mxu1 %v2032_v18 }
  0x43   : > { %1599 = vmatprep.subr.bf16.mxu1 %v1911_v0 }
  0x44   : > { %555 = vmatpush1.bf16.msra.mxu0 %v2010_v13 }
  0x45   : > { %556 = vmatprep.subr.bf16.mxu0 %v2014_v14 }
  0x46   : > { %1600 = vmatpush3.bf16.msra.mxu1 %v2045_v21 }
  0x47   : > { %1601 = vmatprep.subr.bf16.mxu1 %v1911_v0 }
  0x48   : > { %557 = vmatpush1.bf16.msra.mxu0 %v2024_v16 }
  0x49   : > { %558 = vmatprep.subr.bf16.mxu0 %v2028_v17 }
  0x4a   : > { %1602 = vmatpush3.bf16.msra.mxu1 %v2055_v23 }
  0x4b   : > { %1603 = vmatprep.subr.bf16.mxu1 %v1911_v0 }
  0x4c   : > { %559 = vmatpush1.bf16.msra.mxu0 %v2037_v19 }
  0x4d   : > { %560 = vmatprep.subr.bf16.mxu0 %v2041_v20 }
  0x4e   : > { %1604 = vmatpush3.bf16.msra.mxu1 %v2061_v24 }
  0x4f   : > { %1605 = vmatprep.subr.bf16.mxu1 %v1911_v0 }
  0x50   : > { %561 = vmatpush1.bf16.msra.mxu0 %v2050_v22 }
  0x51   : > { %655 = vmatprep.subr.bf16.mxu0 %v1968_v2 }
  0x52   : > { %1606 = vmatpush3.bf16.msra.mxu1 %v2069_v26 }
  0x53   : > { %1611 = vmatprep.subr.bf16.mxu1 %v1911_v0 }
 0x106   : > { %v472_v35 = vpop.f32.mrb[0].mxu0 }
 0x107   : > { %v473_v36 = vadd.f32 %v472_v35, %v2118_v32  ;;  %v474_v37 = vpop.f32.mrb[1].mxu0 }
 0x108   : > { %v475_v38 = vadd.f32 %v474_v37, %v2120_v33  ;;  %v476_v39 = vpop.f32.mrb[2].mxu0  ;;  %v513_v45 = vpop.f32.mrb[0].mxu1 }
 0x109   : > { %v519_v40 = vadd.f32 %v473_v36, %v290_v34  ;;  %v477_v42 = vpop.f32.mrb[3].mxu0  ;;  %v1589_v47 = vpop.f32.mrb[1].mxu1  ;;  %v514_v56 = vadd.f32 %v513_v45, %v2126_v53 }
 0x10a   : > { %v526_v44 = vadd.f32 %v475_v38, %v291_v41  ;;  %v516_v48 = vpop.f32.mrb[2].mxu1  ;;  %v1455_v42 = vld [vmem:[%s2116_s26 + $0x20] sm:$0xff] }
 0x10b   : > { %v1452_v43 = vmul.f32 -1.442695, %v519_v40  ;;  %v1590_v49 = vpop.f32.mrb[3].mxu1 }
 0x10c   : > { %v1453_v46 = vmul.f32 -1.442695, %v526_v44 }
 0x10d   : > { %1793 = vpow2.f32 %v1452_v43 }
 0x10e   : > { %1795 = vpow2.f32 %v1453_v46 }
 0x117   : > { %v1794_v50 = vpop.eup %1793 }
 0x118   : > { %v523_v51 = vadd.f32 1.0, %v1794_v50  ;;  %v1796_v54 = vpop.eup %1795 }
 0x119   : > { %v530_v55 = vadd.f32 1.0, %v1796_v54 }
 0x11a   : > { %1797 = vrcp.f32 %v523_v51 }
 0x11b   : > { %1799 = vrcp.f32 %v530_v55  ;;  %v1456_v55 = vld [vmem:[%s2116_s26 + $0x28] sm:$0xff] }
 0x124   : > { %v1798_v57 = vpop.eup %1797 }
 0x125   : > { %v533_v59 = vmul.f32 %v1798_v57, %v514_v56  ;;  %v1800_v61 = vpop.eup %1799 }
 0x126   : > { %v536_v62 = vsub.f32 1.0, %v1800_v61  ;;  %v538_v27 = vmul.f32 0.0, %v1800_v61 }
 0x127   : > { %v534_v60 = vadd.f32 %v533_v59, %v292_v58 }
 0x129   : > { %1801 = vtanh.f32 %v534_v60 }
 0x133   : > { %v1802_v63 = vpop.eup %1801 }
 0x134   : > { %v537_v25 = vmul.f32 %v1802_v63, %v536_v62 }
 0x136   : > { %v2136_v28 = vadd.f32 %v538_v27, %v537_v25  ;;  %v1460_v27 = vld [vmem:[%s2116_s26 + $0x30] sm:$0xff] }
 0x138   : > { %540 = vst [vmem:[%s2134_s30] sm:$0xff] %v2136_v28  ;;  %v545_v29 = vpack.c.bf16 %v2136_v28, %v2136_v28 }
 0x13a   : > { %579 = vmatmul.mubr.bf16.vlgmr.msra.gmra.mrb[4].mxu0 %v545_v29  ;;  %1608 = vmatmul.mubr.bf16.vlgmr.msra.gmra.mrb[4].mxu1 %v545_v29 }
 0x13b   : > { %656 = vmatpush1.bf16.msra.mxu0 %v1971_v3  ;;  %1612 = vmatpush3.bf16.msra.mxu1 %v1994_v9 }
 0x13c   : > { %657 = vmatprep.subr.bf16.mxu0 %v1975_v4  ;;  %1613 = vmatprep.subr.bf16.mxu1 %v1911_v0 }
 0x13d   : > { %687 = vmatprep.mubr.bf16.mxu0 %v1912_v1  ;;  %1627 = vmatprep.mubr.msk.bf16.mxu1 %vm1913_vm0, %v1911_v0 }
 0x13f   : > { %658 = vmatpush1.bf16.msra.mxu0 %v1979_v5  ;;  %1614 = vmatpush3.bf16.msra.mxu1 %v2006_v12 }
 0x140   : > { %659 = vmatprep.subr.bf16.mxu0 %v1983_v6  ;;  %1615 = vmatprep.subr.bf16.mxu1 %v1911_v0 }
 0x143   : > { %660 = vmatpush1.bf16.msra.mxu0 %v1987_v7  ;;  %1616 = vmatpush3.bf16.msra.mxu1 %v2019_v15 }
 0x144   : > { %661 = vmatprep.subr.bf16.mxu0 %v1991_v8  ;;  %1617 = vmatprep.subr.bf16.mxu1 %v1911_v0 }
 0x147   : > { %662 = vmatpush1.bf16.msra.mxu0 %v1998_v10  ;;  %1618 = vmatpush3.bf16.msra.mxu1 %v2032_v18 }
 0x148   : > { %663 = vmatprep.subr.bf16.mxu0 %v2001_v11  ;;  %1619 = vmatprep.subr.bf16.mxu1 %v1911_v0 }
 0x14b   : > { %664 = vmatpush1.bf16.msra.mxu0 %v2010_v13  ;;  %1620 = vmatpush3.bf16.msra.mxu1 %v2045_v21 }
 0x14c   : > { %665 = vmatprep.subr.bf16.mxu0 %v2014_v14  ;;  %1621 = vmatprep.subr.bf16.mxu1 %v1911_v0 }
 0x14f   : > { %666 = vmatpush1.bf16.msra.mxu0 %v2024_v16  ;;  %1622 = vmatpush3.bf16.msra.mxu1 %v2055_v23 }
 0x150   : > { %667 = vmatprep.subr.bf16.mxu0 %v2028_v17  ;;  %1623 = vmatprep.subr.bf16.mxu1 %v1911_v0 }
 0x153   : > { %668 = vmatpush1.bf16.msra.mxu0 %v2037_v19  ;;  %1624 = vmatpush3.bf16.msra.mxu1 %v2061_v24 }
 0x154   : > { %669 = vmatprep.subr.bf16.mxu0 %v2041_v20  ;;  %1625 = vmatprep.subr.bf16.mxu1 %v1911_v0 }
 0x157   : > { %670 = vmatpush1.bf16.msra.mxu0 %v2050_v22  ;;  %1626 = vmatpush3.bf16.msra.mxu1 %v2069_v26 }
 0x158   : > { %764 = vmatprep.subr.bf16.mxu0 %v1968_v2  ;;  %1631 = vmatprep.subr.bf16.mxu1 %v1911_v0 }
 0x20d   : > { %v580_v31 = vpop.f32.mrb[4].mxu0  ;;  %v621_v34 = vpop.f32.mrb[4].mxu1 }
 0x20e   : > { %v581_v35 = vadd.f32 %v580_v31, %v2118_v32  ;;  %v582_v36 = vpop.f32.mrb[5].mxu0  ;;  %v1609_v37 = vpop.f32.mrb[5].mxu1  ;;  %v622_v52 = vadd.f32 %v621_v34, %v2126_v53 }
 0x20f   : > { %v583_v38 = vadd.f32 %v582_v36, %v2120_v33  ;;  %v584_v39 = vpop.f32.mrb[6].mxu0  ;;  %v624_v40 = vpop.f32.mrb[6].mxu1 }
 0x210   : > { %v627_v41 = vadd.f32 %v1454_v30, %v581_v35  ;;  %v585_v43 = vpop.f32.mrb[7].mxu0  ;;  %v1610_v44 = vpop.f32.mrb[7].mxu1  ;;  %v1461_v39 = vld [vmem:[%s2116_s26 + $0x38] sm:$0xff] }
 0x211   : > { %v634_v46 = vadd.f32 %v1455_v42, %v583_v38 }
 0x212   : > { %v1457_v45 = vmul.f32 -1.442695, %v627_v41 }
 0x213   : > { %v1458_v47 = vmul.f32 -1.442695, %v634_v46 }
 0x214   : > { %1803 = vpow2.f32 %v1457_v45 }
 0x215   : > { %1805 = vpow2.f32 %v1458_v47 }
 0x21e   : > { %v1804_v48 = vpop.eup %1803 }
 0x21f   : > { %v631_v49 = vadd.f32 1.0, %v1804_v48  ;;  %v1806_v50 = vpop.eup %1805 }
 0x220   : > { %v638_v51 = vadd.f32 1.0, %v1806_v50 }
 0x221   : > { %1807 = vrcp.f32 %v631_v49 }
 0x222   : > { %1809 = vrcp.f32 %v638_v51  ;;  %v1462_v51 = vld [vmem:[%s2116_s26 + $0x40] sm:$0xff] }
 0x22b   : > { %v1808_v54 = vpop.eup %1807 }
 0x22c   : > { %v641_v56 = vmul.f32 %v1808_v54, %v622_v52  ;;  %v1810_v58 = vpop.eup %1809 }
 0x22d   : > { %v644_v59 = vsub.f32 1.0, %v1810_v58  ;;  %v646_v62 = vmul.f32 %v1810_v58, %v2136_v28 }
 0x22e   : > { %v642_v57 = vadd.f32 %v1456_v55, %v641_v56 }
 0x230   : > { %1811 = vtanh.f32 %v642_v57 }
 0x23a   : > { %v1812_v60 = vpop.eup %1811 }
 0x23b   : > { %v645_v61 = vmul.f32 %v1812_v60, %v644_v59 }
 0x23d   : > { %v2184_v63 = vadd.f32 %v646_v62, %v645_v61  ;;  %v1466_v62 = vld [vmem:[%s2116_s26 + $0x48] sm:$0xff] }
 0x23f   : > { %1459 = vst [vmem:[%s2134_s30 + $0x8] sm:$0xff] %v2184_v63  ;;  %v654_v25 = vpack.c.bf16 %v2184_v63, %v2184_v63 }
 0x241   : > { %688 = vmatmul.mubr.bf16.vlgmr.msra.gmra.mrb[8].mxu0 %v654_v25  ;;  %1628 = vmatmul.mubr.bf16.vlgmr.msra.gmra.mrb[8].mxu1 %v654_v25 }
 0x242   : > { %765 = vmatpush1.bf16.msra.mxu0 %v1971_v3  ;;  %1632 = vmatpush3.bf16.msra.mxu1 %v1994_v9 }
 0x243   : > { %766 = vmatprep.subr.bf16.mxu0 %v1975_v4  ;;  %1633 = vmatprep.subr.bf16.mxu1 %v1911_v0 }
 0x244   : > { %796 = vmatprep.mubr.bf16.mxu0 %v1912_v1  ;;  %1647 = vmatprep.mubr.msk.bf16.mxu1 %vm1913_vm0, %v1911_v0 }
 0x246   : > { %767 = vmatpush1.bf16.msra.mxu0 %v1979_v5  ;;  %1634 = vmatpush3.bf16.msra.mxu1 %v2006_v12 }
 0x247   : > { %768 = vmatprep.subr.bf16.mxu0 %v1983_v6  ;;  %1635 = vmatprep.subr.bf16.mxu1 %v1911_v0 }
 0x24a   : > { %769 = vmatpush1.bf16.msra.mxu0 %v1987_v7  ;;  %1636 = vmatpush3.bf16.msra.mxu1 %v2019_v15 }
 0x24b   : > { %770 = vmatprep.subr.bf16.mxu0 %v1991_v8  ;;  %1637 = vmatprep.subr.bf16.mxu1 %v1911_v0 }
 0x24e   : > { %771 = vmatpush1.bf16.msra.mxu0 %v1998_v10  ;;  %1638 = vmatpush3.bf16.msra.mxu1 %v2032_v18 }
 0x24f   : > { %772 = vmatprep.subr.bf16.mxu0 %v2001_v11  ;;  %1639 = vmatprep.subr.bf16.mxu1 %v1911_v0 }
 0x252   : > { %773 = vmatpush1.bf16.msra.mxu0 %v2010_v13  ;;  %1640 = vmatpush3.bf16.msra.mxu1 %v2045_v21 }
 0x253   : > { %774 = vmatprep.subr.bf16.mxu0 %v2014_v14  ;;  %1641 = vmatprep.subr.bf16.mxu1 %v1911_v0 }
 0x256   : > { %775 = vmatpush1.bf16.msra.mxu0 %v2024_v16  ;;  %1642 = vmatpush3.bf16.msra.mxu1 %v2055_v23 }
 0x257   : > { %776 = vmatprep.subr.bf16.mxu0 %v2028_v17  ;;  %1643 = vmatprep.subr.bf16.mxu1 %v1911_v0 }
 0x25a   : > { %777 = vmatpush1.bf16.msra.mxu0 %v2037_v19  ;;  %1644 = vmatpush3.bf16.msra.mxu1 %v2061_v24 }
 0x25b   : > { %778 = vmatprep.subr.bf16.mxu0 %v2041_v20  ;;  %1645 = vmatprep.subr.bf16.mxu1 %v1911_v0 }
 0x25e   : > { %779 = vmatpush1.bf16.msra.mxu0 %v2050_v22  ;;  %1646 = vmatpush3.bf16.msra.mxu1 %v2069_v26 }
 0x25f   : > { %873 = vmatprep.subr.bf16.mxu0 %v1968_v2  ;;  %1651 = vmatprep.subr.bf16.mxu1 %v1911_v0 }
 0x314   : > { %v689_v28 = vpop.f32.mrb[8].mxu0  ;;  %v730_v29 = vpop.f32.mrb[8].mxu1 }
 0x315   : > { %v690_v30 = vadd.f32 %v689_v28, %v2118_v32  ;;  %v691_v31 = vpop.f32.mrb[9].mxu0  ;;  %v1629_v34 = vpop.f32.mrb[9].mxu1  ;;  %v731_v49 = vadd.f32 %v730_v29, %v2126_v53 }
 0x316   : > { %v692_v35 = vadd.f32 %v691_v31, %v2120_v33  ;;  %v693_v36 = vpop.f32.mrb[10].mxu0  ;;  %v733_v37 = vpop.f32.mrb[10].mxu1 }
 0x317   : > { %v736_v38 = vadd.f32 %v1460_v27, %v690_v30  ;;  %v694_v40 = vpop.f32.mrb[11].mxu0  ;;  %v1630_v41 = vpop.f32.mrb[11].mxu1  ;;  %v1467_v36 = vld [vmem:[%s2116_s26 + $0x50] sm:$0xff] }
 0x318   : > { %v743_v43 = vadd.f32 %v1461_v39, %v692_v35 }
 0x319   : > { %v1463_v42 = vmul.f32 -1.442695, %v736_v38 }
 0x31a   : > { %v1464_v44 = vmul.f32 -1.442695, %v743_v43 }
 0x31b   : > { %1813 = vpow2.f32 %v1463_v42 }
 0x31c   : > { %1815 = vpow2.f32 %v1464_v44 }
 0x325   : > { %v1814_v45 = vpop.eup %1813 }
 0x326   : > { %v740_v46 = vadd.f32 1.0, %v1814_v45  ;;  %v1816_v47 = vpop.eup %1815 }
 0x327   : > { %v747_v48 = vadd.f32 1.0, %v1816_v47 }
 0x328   : > { %1817 = vrcp.f32 %v740_v46 }
 0x329   : > { %1819 = vrcp.f32 %v747_v48  ;;  %v1468_v48 = vld [vmem:[%s2116_s26 + $0x58] sm:$0xff] }
 0x332   : > { %v1818_v50 = vpop.eup %1817 }
 0x333   : > { %v750_v52 = vmul.f32 %v1818_v50, %v731_v49  ;;  %v1820_v55 = vpop.eup %1819 }
 0x334   : > { %v753_v56 = vsub.f32 1.0, %v1820_v55  ;;  %v755_v59 = vmul.f32 %v1820_v55, %v2184_v63 }
 0x335   : > { %v751_v54 = vadd.f32 %v1462_v51, %v750_v52 }
 0x337   : > { %1821 = vtanh.f32 %v751_v54 }
 0x341   : > { %v1822_v57 = vpop.eup %1821 }
 0x342   : > { %v754_v58 = vmul.f32 %v1822_v57, %v753_v56 }
 0x344   : > { %v2232_v60 = vadd.f32 %v755_v59, %v754_v58  ;;  %v1472_v59 = vld [vmem:[%s2116_s26 + $0x60] sm:$0xff] }
 0x346   : > { %1465 = vst [vmem:[%s2134_s30 + $0x10] sm:$0xff] %v2232_v60  ;;  %v763_v61 = vpack.c.bf16 %v2232_v60, %v2232_v60 }
 0x348   : > { %797 = vmatmul.mubr.bf16.vlgmr.msra.gmra.mrb[12].mxu0 %v763_v61  ;;  %1648 = vmatmul.mubr.bf16.vlgmr.msra.gmra.mrb[12].mxu1 %v763_v61 }
 0x349   : > { %874 = vmatpush1.bf16.msra.mxu0 %v1971_v3  ;;  %1652 = vmatpush3.bf16.msra.mxu1 %v1994_v9 }
 0x34a   : > { %875 = vmatprep.subr.bf16.mxu0 %v1975_v4  ;;  %1653 = vmatprep.subr.bf16.mxu1 %v1911_v0 }
 0x34b   : > { %905 = vmatprep.mubr.bf16.mxu0 %v1912_v1  ;;  %1667 = vmatprep.mubr.msk.bf16.mxu1 %vm1913_vm0, %v1911_v0 }
 0x34d   : > { %876 = vmatpush1.bf16.msra.mxu0 %v1979_v5  ;;  %1654 = vmatpush3.bf16.msra.mxu1 %v2006_v12 }
 0x34e   : > { %877 = vmatprep.subr.bf16.mxu0 %v1983_v6  ;;  %1655 = vmatprep.subr.bf16.mxu1 %v1911_v0 }
 0x351   : > { %878 = vmatpush1.bf16.msra.mxu0 %v1987_v7  ;;  %1656 = vmatpush3.bf16.msra.mxu1 %v2019_v15 }
 0x352   : > { %879 = vmatprep.subr.bf16.mxu0 %v1991_v8  ;;  %1657 = vmatprep.subr.bf16.mxu1 %v1911_v0 }
 0x355   : > { %880 = vmatpush1.bf16.msra.mxu0 %v1998_v10  ;;  %1658 = vmatpush3.bf16.msra.mxu1 %v2032_v18 }
 0x356   : > { %881 = vmatprep.subr.bf16.mxu0 %v2001_v11  ;;  %1659 = vmatprep.subr.bf16.mxu1 %v1911_v0 }
 0x359   : > { %882 = vmatpush1.bf16.msra.mxu0 %v2010_v13  ;;  %1660 = vmatpush3.bf16.msra.mxu1 %v2045_v21 }
 0x35a   : > { %883 = vmatprep.subr.bf16.mxu0 %v2014_v14  ;;  %1661 = vmatprep.subr.bf16.mxu1 %v1911_v0 }
 0x35d   : > { %884 = vmatpush1.bf16.msra.mxu0 %v2024_v16  ;;  %1662 = vmatpush3.bf16.msra.mxu1 %v2055_v23 }
 0x35e   : > { %885 = vmatprep.subr.bf16.mxu0 %v2028_v17  ;;  %1663 = vmatprep.subr.bf16.mxu1 %v1911_v0 }
 0x361   : > { %886 = vmatpush1.bf16.msra.mxu0 %v2037_v19  ;;  %1664 = vmatpush3.bf16.msra.mxu1 %v2061_v24 }
 0x362   : > { %887 = vmatprep.subr.bf16.mxu0 %v2041_v20  ;;  %1665 = vmatprep.subr.bf16.mxu1 %v1911_v0 }
 0x365   : > { %888 = vmatpush1.bf16.msra.mxu0 %v2050_v22  ;;  %1666 = vmatpush3.bf16.msra.mxu1 %v2069_v26 }
 0x366   : > { %982 = vmatprep.subr.bf16.mxu0 %v1968_v2  ;;  %1671 = vmatprep.subr.bf16.mxu1 %v1911_v0 }
 0x41b   : > { %v798_v63 = vpop.f32.mrb[12].mxu0  ;;  %v839_v25 = vpop.f32.mrb[12].mxu1 }
 0x41c   : > { %v799_v27 = vadd.f32 %v798_v63, %v2118_v32  ;;  %v800_v28 = vpop.f32.mrb[13].mxu0  ;;  %v1649_v29 = vpop.f32.mrb[13].mxu1  ;;  %v840_v46 = vadd.f32 %v839_v25, %v2126_v53 }
 0x41d   : > { %v801_v30 = vadd.f32 %v800_v28, %v2120_v33  ;;  %v802_v31 = vpop.f32.mrb[14].mxu0  ;;  %v842_v34 = vpop.f32.mrb[14].mxu1 }
 0x41e   : > { %v845_v35 = vadd.f32 %v1466_v62, %v799_v27  ;;  %v803_v37 = vpop.f32.mrb[15].mxu0  ;;  %v1650_v38 = vpop.f32.mrb[15].mxu1  ;;  %v1473_v31 = vld [vmem:[%s2116_s26 + $0x68] sm:$0xff] }
 0x41f   : > { %v852_v40 = vadd.f32 %v1467_v36, %v801_v30 }
 0x420   : > { %v1469_v39 = vmul.f32 -1.442695, %v845_v35 }
 0x421   : > { %v1470_v41 = vmul.f32 -1.442695, %v852_v40 }
 0x422   : > { %1823 = vpow2.f32 %v1469_v39 }
 0x423   : > { %1825 = vpow2.f32 %v1470_v41 }
 0x42c   : > { %v1824_v42 = vpop.eup %1823 }
 0x42d   : > { %v849_v43 = vadd.f32 1.0, %v1824_v42  ;;  %v1826_v44 = vpop.eup %1825 }
 0x42e   : > { %v856_v45 = vadd.f32 1.0, %v1826_v44 }
 0x42f   : > { %1827 = vrcp.f32 %v849_v43 }
 0x430   : > { %1829 = vrcp.f32 %v856_v45  ;;  %v1474_v45 = vld [vmem:[%s2116_s26 + $0x70] sm:$0xff] }
 0x439   : > { %v1828_v47 = vpop.eup %1827 }
 0x43a   : > { %v859_v49 = vmul.f32 %v1828_v47, %v840_v46  ;;  %v1830_v51 = vpop.eup %1829 }
 0x43b   : > { %v862_v52 = vsub.f32 1.0, %v1830_v51  ;;  %v864_v56 = vmul.f32 %v1830_v51, %v2232_v60 }
 0x43c   : > { %v860_v50 = vadd.f32 %v1468_v48, %v859_v49 }
 0x43e   : > { %1831 = vtanh.f32 %v860_v50 }
 0x448   : > { %v1832_v54 = vpop.eup %1831 }
 0x449   : > { %v863_v55 = vmul.f32 %v1832_v54, %v862_v52 }
 0x44b   : > { %v2280_v57 = vadd.f32 %v864_v56, %v863_v55 }
 0x44d   : > { %1471 = vst [vmem:[%s2134_s30 + $0x18] sm:$0xff] %v2280_v57  ;;  %v872_v58 = vpack.c.bf16 %v2280_v57, %v2280_v57 }
 0x44f   : > { %906 = vmatmul.mubr.bf16.vlgmr.msra.gmra.mrb[16].mxu0 %v872_v58  ;;  %1668 = vmatmul.mubr.bf16.vlgmr.msra.gmra.mrb[16].mxu1 %v872_v58 }
 0x450   : > { %983 = vmatpush1.bf16.msra.mxu0 %v1971_v3  ;;  %1672 = vmatpush3.bf16.msra.mxu1 %v1994_v9 }
 0x451   : > { %984 = vmatprep.subr.bf16.mxu0 %v1975_v4  ;;  %1673 = vmatprep.subr.bf16.mxu1 %v1911_v0 }
 0x452   : > { %1014 = vmatprep.mubr.bf16.mxu0 %v1912_v1  ;;  %1687 = vmatprep.mubr.msk.bf16.mxu1 %vm1913_vm0, %v1911_v0 }
 0x454   : > { %985 = vmatpush1.bf16.msra.mxu0 %v1979_v5  ;;  %1674 = vmatpush3.bf16.msra.mxu1 %v2006_v12 }
 0x455   : > { %986 = vmatprep.subr.bf16.mxu0 %v1983_v6  ;;  %1675 = vmatprep.subr.bf16.mxu1 %v1911_v0 }
 0x458   : > { %987 = vmatpush1.bf16.msra.mxu0 %v1987_v7  ;;  %1676 = vmatpush3.bf16.msra.mxu1 %v2019_v15 }
 0x459   : > { %988 = vmatprep.subr.bf16.mxu0 %v1991_v8  ;;  %1677 = vmatprep.subr.bf16.mxu1 %v1911_v0 }
 0x45c   : > { %989 = vmatpush1.bf16.msra.mxu0 %v1998_v10  ;;  %1678 = vmatpush3.bf16.msra.mxu1 %v2032_v18 }
 0x45d   : > { %990 = vmatprep.subr.bf16.mxu0 %v2001_v11  ;;  %1679 = vmatprep.subr.bf16.mxu1 %v1911_v0 }
 0x460   : > { %991 = vmatpush1.bf16.msra.mxu0 %v2010_v13  ;;  %1680 = vmatpush3.bf16.msra.mxu1 %v2045_v21 }
 0x461   : > { %992 = vmatprep.subr.bf16.mxu0 %v2014_v14  ;;  %1681 = vmatprep.subr.bf16.mxu1 %v1911_v0 }
 0x464   : > { %993 = vmatpush1.bf16.msra.mxu0 %v2024_v16  ;;  %1682 = vmatpush3.bf16.msra.mxu1 %v2055_v23 }
 0x465   : > { %994 = vmatprep.subr.bf16.mxu0 %v2028_v17  ;;  %1683 = vmatprep.subr.bf16.mxu1 %v1911_v0 }
 0x468   : > { %995 = vmatpush1.bf16.msra.mxu0 %v2037_v19  ;;  %1684 = vmatpush3.bf16.msra.mxu1 %v2061_v24 }
 0x469   : > { %996 = vmatprep.subr.bf16.mxu0 %v2041_v20  ;;  %1685 = vmatprep.subr.bf16.mxu1 %v1911_v0 }
 0x46c   : > { %997 = vmatpush1.bf16.msra.mxu0 %v2050_v22  ;;  %1686 = vmatpush3.bf16.msra.mxu1 %v2069_v26 }
 0x46d   : > { %1091 = vmatprep.subr.bf16.mxu0 %v1968_v2  ;;  %1691 = vmatprep.subr.bf16.mxu1 %v1911_v0 }
 0x522   : > { %v907_v60 = vpop.f32.mrb[16].mxu0  ;;  %v948_v61 = vpop.f32.mrb[16].mxu1 }
 0x523   : > { %v908_v62 = vadd.f32 %v907_v60, %v2118_v32  ;;  %v909_v63 = vpop.f32.mrb[17].mxu0  ;;  %v1669_v25 = vpop.f32.mrb[17].mxu1  ;;  %v949_v43 = vadd.f32 %v948_v61, %v2126_v53 }
 0x524   : > { %v910_v27 = vadd.f32 %v909_v63, %v2120_v33  ;;  %v911_v28 = vpop.f32.mrb[18].mxu0  ;;  %v951_v29 = vpop.f32.mrb[18].mxu1  ;;  %v1480_v63 = vld [vmem:[%s2116_s26 + $0x88] sm:$0xff] }
 0x525   : > { %v954_v30 = vadd.f32 %v1472_v59, %v908_v62  ;;  %v912_v34 = vpop.f32.mrb[19].mxu0  ;;  %v1670_v35 = vpop.f32.mrb[19].mxu1 }
 0x526   : > { %v961_v37 = vadd.f32 %v1473_v31, %v910_v27 }
 0x527   : > { %v1475_v36 = vmul.f32 -1.442695, %v954_v30 }
 0x528   : > { %v1476_v38 = vmul.f32 -1.442695, %v961_v37  ;;  %v1873_v37 = vld [vmem:[%s1965_s19] ss:$12 sps:$4 sm:$0xff]  }
 0x529   : > { %1833 = vpow2.f32 %v1475_v36 }
 0x52a   : > { %1835 = vpow2.f32 %v1476_v38  ;;  %v1874_v38 = vld [vmem:[%s1965_s19 + $0x8] ss:$12 sps:$4 sm:$0xff]  }
 0x533   : > { %v1834_v39 = vpop.eup %1833 }
 0x534   : > { %v958_v40 = vadd.f32 1.0, %v1834_v39  ;;  %v1836_v41 = vpop.eup %1835  ;;  %v1875_v39 = vld [vmem:[%s1965_s19 + $0x1c] ss:$12 sps:$4 sm:$0xff]  }
 0x535   : > { %v965_v42 = vadd.f32 1.0, %v1836_v41  ;;  %v1877_v41 = vld [vmem:[%s1965_s19 + $0x20] ss:$12 sps:$4 sm:$0xff]  }
 0x536   : > { %1837 = vrcp.f32 %v958_v40  ;;  %v1876_v40 = vld [vmem:[%s1965_s19 + $0x18] ss:$12 sps:$4 sm:$0xff]  }
 0x537   : > { %1839 = vrcp.f32 %v965_v42  ;;  %v1878_v42 = vld [vmem:[%s1965_s19 + $0x34] ss:$12 sps:$4 sm:$0xff]  }
 0x540   : > { %v1838_v44 = vpop.eup %1837 }
 0x541   : > { %v968_v46 = vmul.f32 %v1838_v44, %v949_v43  ;;  %v1840_v48 = vpop.eup %1839  ;;  %v1879_v43 = vld [vmem:[%s1965_s19 + $0x30] ss:$12 sps:$4 sm:$0xff]   ;;  %v1881_v44 = vld [vmem:[%s1965_s19 + $0x48] ss:$12 sps:$4 sm:$0xff]  }
 0x542   : > { %v971_v49 = vsub.f32 1.0, %v1840_v48  ;;  %v973_v52 = vmul.f32 %v1840_v48, %v2280_v57  ;;  %v1886_v48 = vld [vmem:[%s1965_s19 + $0x94] ss:$12 sps:$4 sm:$0xff]  }
 0x543   : > { %v969_v47 = vadd.f32 %v1474_v45, %v968_v46  ;;  %v1882_v45 = vld [vmem:[%s1965_s19 + $0x64] ss:$12 sps:$4 sm:$0xff]   ;;  %v1883_v46 = vld [vmem:[%s1965_s19 + $0x60] ss:$12 sps:$4 sm:$0xff]  }
 0x545   : > { %1841 = vtanh.f32 %v969_v47  ;;  %v1885_v47 = vld [vmem:[%s1965_s19 + $0x78] ss:$12 sps:$4 sm:$0xff]  }
 0x54f   : > { %v1842_v50 = vpop.eup %1841 }
 0x550   : > { %v972_v51 = vmul.f32 %v1842_v50, %v971_v49 }
 0x552   : > { %v2328_v54 = vadd.f32 %v973_v52, %v972_v51 }
 0x554   : > { %1477 = vst [vmem:[%s2134_s30 + $0x20] sm:$0xff] %v2328_v54  ;;  %v981_v55 = vpack.c.bf16 %v2328_v54, %v2328_v54 }
 0x556   : > { %1015 = vmatmul.mubr.bf16.vlgmr.msra.gmra.mrb[20].mxu0 %v981_v55  ;;  %1688 = vmatmul.mubr.bf16.vlgmr.msra.gmra.mrb[20].mxu1 %v981_v55 }
 0x557   : > { %1092 = vmatpush1.bf16.msra.mxu0 %v1971_v3  ;;  %1692 = vmatpush3.bf16.msra.mxu1 %v1994_v9  ;;  %v1478_v3 = vld [vmem:[%s2116_s26 + $0x78] sm:$0xff] }
 0x558   : > { %1093 = vmatprep.subr.bf16.mxu0 %v1975_v4  ;;  %1693 = vmatprep.subr.bf16.mxu1 %v1911_v0 }
 0x559   : > { %1123 = vmatprep.mubr.bf16.mxu0 %v1912_v1  ;;  %1707 = vmatprep.mubr.msk.bf16.mxu1 %vm1913_vm0, %v1911_v0 }
 0x55b   : > { %1094 = vmatpush1.bf16.msra.mxu0 %v1979_v5  ;;  %1694 = vmatpush3.bf16.msra.mxu1 %v2006_v12 }
 0x55c   : > { %1095 = vmatprep.subr.bf16.mxu0 %v1983_v6  ;;  %1695 = vmatprep.subr.bf16.mxu1 %v1911_v0 }
 0x55f   : > { %1096 = vmatpush1.bf16.msra.mxu0 %v1987_v7  ;;  %1696 = vmatpush3.bf16.msra.mxu1 %v2019_v15 }
 0x560   : > { %1097 = vmatprep.subr.bf16.mxu0 %v1991_v8  ;;  %1697 = vmatprep.subr.bf16.mxu1 %v1911_v0 }
 0x563   : > { %1098 = vmatpush1.bf16.msra.mxu0 %v1998_v10  ;;  %1698 = vmatpush3.bf16.msra.mxu1 %v2032_v18 }
 0x564   : > { %1099 = vmatprep.subr.bf16.mxu0 %v2001_v11  ;;  %1699 = vmatprep.subr.bf16.mxu1 %v1911_v0 }
 0x567   : > { %1100 = vmatpush1.bf16.msra.mxu0 %v2010_v13  ;;  %1700 = vmatpush3.bf16.msra.mxu1 %v2045_v21  ;;  %v1479_v13 = vld [vmem:[%s2116_s26 + $0x80] sm:$0xff] }
 0x568   : > { %1101 = vmatprep.subr.bf16.mxu0 %v2014_v14  ;;  %1701 = vmatprep.subr.bf16.mxu1 %v1911_v0 }
 0x56b   : > { %1102 = vmatpush1.bf16.msra.mxu0 %v2024_v16  ;;  %1702 = vmatpush3.bf16.msra.mxu1 %v2055_v23 }
 0x56c   : > { %1103 = vmatprep.subr.bf16.mxu0 %v2028_v17  ;;  %1703 = vmatprep.subr.bf16.mxu1 %v1911_v0 }
 0x56f   : > { %1104 = vmatpush1.bf16.msra.mxu0 %v2037_v19  ;;  %1704 = vmatpush3.bf16.msra.mxu1 %v2061_v24 }
 0x570   : > { %1105 = vmatprep.subr.bf16.mxu0 %v2041_v20  ;;  %1705 = vmatprep.subr.bf16.mxu1 %v1911_v0 }
 0x573   : > { %1106 = vmatpush1.bf16.msra.mxu0 %v2050_v22  ;;  %1706 = vmatpush3.bf16.msra.mxu1 %v2069_v26 }
 0x574   : > { %1200 = vmatprep.subr.bf16.mxu0 %v1968_v2  ;;  %1711 = vmatprep.subr.bf16.mxu1 %v1911_v0 }
 0x629   : > { %v1016_v4 = vpop.f32.mrb[20].mxu0  ;;  %v1057_v5 = vpop.f32.mrb[20].mxu1 }
 0x62a   : > { %v1017_v6 = vadd.f32 %v1016_v4, %v2118_v32  ;;  %v1018_v7 = vpop.f32.mrb[21].mxu0  ;;  %v1689_v8 = vpop.f32.mrb[21].mxu1  ;;  %v1058_v61 = vadd.f32 %v1057_v5, %v2126_v53 }
 0x62b   : > { %v1019_v9 = vadd.f32 %v1018_v7, %v2120_v33  ;;  %v1020_v10 = vpop.f32.mrb[22].mxu0  ;;  %v1060_v11 = vpop.f32.mrb[22].mxu1 }
 0x62c   : > { %v1063_v12 = vadd.f32 %v1478_v3, %v1017_v6  ;;  %v1021_v14 = vpop.f32.mrb[23].mxu0  ;;  %v1690_v16 = vpop.f32.mrb[23].mxu1  ;;  %v1486_v10 = vld [vmem:[%s2116_s26 + $0xa0] sm:$0xff] }
 0x62d   : > { %v1070_v2 = vadd.f32 %v1479_v13, %v1019_v9 }
 0x62e   : > { %v1481_v17 = vmul.f32 -1.442695, %v1063_v12 }
 0x62f   : > { %v1482_v56 = vmul.f32 -1.442695, %v1070_v2 }
 0x630   : > { %1843 = vpow2.f32 %v1481_v17 }
 0x631   : > { %1845 = vpow2.f32 %v1482_v56 }
 0x63a   : > { %v1844_v57 = vpop.eup %1843 }
 0x63b   : > { %v1067_v58 = vadd.f32 1.0, %v1844_v57  ;;  %v1846_v59 = vpop.eup %1845 }
 0x63c   : > { %v1074_v60 = vadd.f32 1.0, %v1846_v59 }
 0x63d   : > { %1847 = vrcp.f32 %v1067_v58  ;;  %v1490_v58 = vld [vmem:[%s2116_s26 + $0xa8] sm:$0xff] }
 0x63e   : > { %1849 = vrcp.f32 %v1074_v60 }
 0x647   : > { %v1848_v62 = vpop.eup %1847 }
 0x648   : > { %v1077_v25 = vmul.f32 %v1848_v62, %v1058_v61  ;;  %v1850_v28 = vpop.eup %1849 }
 0x649   : > { %v1080_v29 = vsub.f32 1.0, %v1850_v28  ;;  %v1082_v34 = vmul.f32 %v1850_v28, %v2328_v54 }
 0x64a   : > { %v1078_v27 = vadd.f32 %v1480_v63, %v1077_v25 }
 0x64c   : > { %1851 = vtanh.f32 %v1078_v27 }
 0x656   : > { %v1852_v30 = vpop.eup %1851 }
 0x657   : > { %v1081_v31 = vmul.f32 %v1852_v30, %v1080_v29  ;;  %v1491_v30 = vld [vmem:[%s2116_s26 + $0xb0] sm:$0xff] }
 0x659   : > { %v2376_v35 = vadd.f32 %v1082_v34, %v1081_v31 }
 0x65b   : > { %1483 = vst [vmem:[%s2134_s30 + $0x28] sm:$0xff] %v2376_v35  ;;  %v1090_v36 = vpack.c.bf16 %v2376_v35, %v2376_v35 }
 0x65d   : > { %1124 = vmatmul.mubr.bf16.vlgmr.msra.gmra.mrb[24].mxu0 %v1090_v36  ;;  %1708 = vmatmul.mubr.bf16.vlgmr.msra.gmra.mrb[24].mxu1 %v1090_v36 }
 0x65e   : > { %1201 = vmatpush1.bf16.msra.mxu0 %v1873_v37  ;;  %1712 = vmatpush3.bf16.msra.mxu1 %v1874_v38 }
 0x65f   : > { %1202 = vmatprep.subr.bf16.mxu0 %v1875_v39  ;;  %1713 = vmatprep.subr.bf16.mxu1 %v1911_v0 }
 0x660   : > { %1232 = vmatprep.mubr.bf16.mxu0 %v1912_v1  ;;  %1727 = vmatprep.mubr.msk.bf16.mxu1 %vm1913_vm0, %v1911_v0  ;;  %v1880_v1 = vld [vmem:[%s1965_s19 + $0x4c] ss:$12 sps:$4 sm:$0xff]  }
 0x662   : > { %1203 = vmatpush1.bf16.msra.mxu0 %v1876_v40  ;;  %1714 = vmatpush3.bf16.msra.mxu1 %v1877_v41 }
 0x663   : > { %1204 = vmatprep.subr.bf16.mxu0 %v1878_v42  ;;  %1715 = vmatprep.subr.bf16.mxu1 %v1911_v0  ;;  %v1492_v42 = vld [vmem:[%s2116_s26 + $0xb8] sm:$0xff] }
 0x666   : > { %1205 = vmatpush1.bf16.msra.mxu0 %v1879_v43  ;;  %1716 = vmatpush3.bf16.msra.mxu1 %v2019_v15  ;;  %v1884_v15 = vld [vmem:[%s1965_s19 + $0x7c] ss:$12 sps:$4 sm:$0xff]  }
 0x667   : > { %1206 = vmatprep.subr.bf16.mxu0 %v1880_v1  ;;  %1717 = vmatprep.subr.bf16.mxu1 %v1911_v0 }
 0x66a   : > { %1207 = vmatpush1.bf16.msra.mxu0 %v1881_v44  ;;  %1718 = vmatpush3.bf16.msra.mxu1 %v2032_v18  ;;  %v1484_v18 = vld [vmem:[%s2116_s26 + $0x90] sm:$0xff] }
 0x66b   : > { %1208 = vmatprep.subr.bf16.mxu0 %v1882_v45  ;;  %1719 = vmatprep.subr.bf16.mxu1 %v1911_v0 }
 0x66e   : > { %1209 = vmatpush1.bf16.msra.mxu0 %v1883_v46  ;;  %1720 = vmatpush3.bf16.msra.mxu1 %v2045_v21 }
 0x66f   : > { %1210 = vmatprep.subr.bf16.mxu0 %v1884_v15  ;;  %1721 = vmatprep.subr.bf16.mxu1 %v1911_v0 }
 0x672   : > { %1211 = vmatpush1.bf16.msra.mxu0 %v1885_v47  ;;  %1722 = vmatpush3.bf16.msra.mxu1 %v2055_v23 }
 0x673   : > { %1212 = vmatprep.subr.bf16.mxu0 %v1886_v48  ;;  %1723 = vmatprep.subr.bf16.mxu1 %v1911_v0 }
 0x676   : > { %1213 = vmatpush1.bf16.msra.mxu0 %v2037_v19  ;;  %1724 = vmatpush3.bf16.msra.mxu1 %v2061_v24 }
 0x677   : > { %1214 = vmatprep.subr.bf16.mxu0 %v2041_v20  ;;  %1725 = vmatprep.subr.bf16.mxu1 %v1911_v0  ;;  %v1485_v20 = vld [vmem:[%s2116_s26 + $0x98] sm:$0xff] }
 0x67a   : > { %1215 = vmatpush1.bf16.msra.mxu0 %v2050_v22  ;;  %1726 = vmatpush3.bf16.msra.mxu1 %v2069_v26 }
 0x730   : > { %v1125_v21 = vpop.f32.mrb[24].mxu0  ;;  %v1166_v23 = vpop.f32.mrb[24].mxu1 }
 0x731   : > { %v1126_v49 = vadd.f32 %v1125_v21, %v2118_v32  ;;  %v1127_v50 = vpop.f32.mrb[25].mxu0  ;;  %v1709_v51 = vpop.f32.mrb[25].mxu1  ;;  %v1167_v8 = vadd.f32 %v1166_v23, %v2126_v53 }
 0x732   : > { %v1128_v19 = vadd.f32 %v1127_v50, %v2120_v33  ;;  %v1129_v52 = vpop.f32.mrb[26].mxu0  ;;  %v1169_v54 = vpop.f32.mrb[26].mxu1 }
 0x733   : > { %v1172_v24 = vadd.f32 %v1484_v18, %v1126_v49  ;;  %v1130_v55 = vpop.f32.mrb[27].mxu0  ;;  %v1710_v0 = vpop.f32.mrb[27].mxu1 }
 0x734   : > { %v1179_v22 = vadd.f32 %v1485_v20, %v1128_v19 }
 0x735   : > { %v1487_v3 = vmul.f32 -1.442695, %v1172_v24 }
 0x736   : > { %v1488_v26 = vmul.f32 -1.442695, %v1179_v22 }
 0x737   : > { %1853 = vpow2.f32 %v1487_v3 }
 0x738   : > { %1855 = vpow2.f32 %v1488_v26 }
 0x741   : > { %v1854_v4 = vpop.eup %1853 }
 0x742   : > { %v1176_v5 = vadd.f32 1.0, %v1854_v4  ;;  %v1856_v6 = vpop.eup %1855 }
 0x743   : > { %v1183_v7 = vadd.f32 1.0, %v1856_v6 }
 0x744   : > { %1857 = vrcp.f32 %v1176_v5 }
 0x745   : > { %1859 = vrcp.f32 %v1183_v7 }
 0x74e   : > { %v1858_v9 = vpop.eup %1857 }
 0x74f   : > { %v1186_v11 = vmul.f32 %v1858_v9, %v1167_v8  ;;  %v1860_v13 = vpop.eup %1859 }
 0x750   : > { %v1189_v14 = vsub.f32 1.0, %v1860_v13  ;;  %v1191_v2 = vmul.f32 %v1860_v13, %v2376_v35 }
 0x751   : > { %v1187_v12 = vadd.f32 %v1486_v10, %v1186_v11 }
 0x753   : > { %1861 = vtanh.f32 %v1187_v12 }
 0x75d   : > { %v1862_v16 = vpop.eup %1861 }
 0x75e   : > { %v1190_v17 = vmul.f32 %v1862_v16, %v1189_v14 }
 0x760   : > { %v1192_v56 = vadd.f32 %v1191_v2, %v1190_v17 }
 0x762   : > { %1489 = vst [vmem:[%s2134_s30 + $0x30] sm:$0xff] %v1192_v56  ;;  %v1199_v57 = vpack.c.bf16 %v1192_v56, %v1192_v56 }
 0x764   : > { %1233 = vmatmul.mubr.bf16.vlgmr.msra.gmra.mrb[28].mxu0 %v1199_v57  ;;  %1728 = vmatmul.mubr.bf16.vlgmr.msra.gmra.mrb[28].mxu1 %v1199_v57 }
 0x837   : > { %v1234_v59 = vpop.f32.mrb[28].mxu0  ;;  %v1275_v60 = vpop.f32.mrb[28].mxu1 }
 0x838   : > { %v1235_v61 = vadd.f32 %v1234_v59, %v2118_v32  ;;  %v1236_v62 = vpop.f32.mrb[29].mxu0  ;;  %v1729_v63 = vpop.f32.mrb[29].mxu1 }
 0x839   : > { %v1237_v25 = vadd.f32 %v1236_v62, %v2120_v33  ;;  %v1238_v27 = vpop.f32.mrb[30].mxu0  ;;  %v1278_v28 = vpop.f32.mrb[30].mxu1  ;;  %v1276_v33 = vadd.f32 %v1275_v60, %v2126_v53 }
 0x83a   : > { %v1281_v29 = vadd.f32 %v1490_v58, %v1235_v61  ;;  %v1239_v31 = vpop.f32.mrb[31].mxu0  ;;  %v1730_v34 = vpop.f32.mrb[31].mxu1 }
 0x83b   : > { %v1288_v36 = vadd.f32 %v1491_v30, %v1237_v25 }
 0x83c   : > { %v1493_v35 = vmul.f32 -1.442695, %v1281_v29 }
 0x83d   : > { %v1494_v37 = vmul.f32 -1.442695, %v1288_v36 }
 0x83e   : > { %1863 = vpow2.f32 %v1493_v35 }
 0x83f   : > { %1865 = vpow2.f32 %v1494_v37 }
 0x848   : > { %v1864_v38 = vpop.eup %1863 }
 0x849   : > { %v1285_v39 = vadd.f32 1.0, %v1864_v38  ;;  %v1866_v32 = vpop.eup %1865 }
 0x84a   : > { %v1292_v40 = vadd.f32 1.0, %v1866_v32 }
 0x84b   : > { %1867 = vrcp.f32 %v1285_v39 }
 0x84c   : > { %1869 = vrcp.f32 %v1292_v40 }
 0x855   : > { %v1868_v41 = vpop.eup %1867 }
 0x856   : > { %v1295_v43 = vmul.f32 %v1868_v41, %v1276_v33  ;;  %v1870_v44 = vpop.eup %1869 }
 0x857   : > { %v1298_v45 = vsub.f32 1.0, %v1870_v44  ;;  %v1300_v47 = vmul.f32 %v1870_v44, %v1192_v56 }
 0x858   : > { %v1296_v1 = vadd.f32 %v1492_v42, %v1295_v43 }
 0x85a   : > { %1871 = vtanh.f32 %v1296_v1 }
 0x864   : > { %v1872_v46 = vpop.eup %1871 }
 0x865   : > { %v1299_v15 = vmul.f32 %v1872_v46, %v1298_v45 }
 0x867   : > { %v1301_v48 = vadd.f32 %v1300_v47, %v1299_v15 }
 0x869   : > { %1495 = vst [vmem:[%s2134_s30 + $0x38] sm:$0xff] %v1301_v48 }
 0x86a PF: > { %s13_s14 = sadd.s32 1, %s1909_s14   ;;  %s2443_s12 = smov %s1905_s13 }
 0x86b   : > { %p10_p5 = scmp.ge.s32.totalorder %s13_s14, 4   ;;  %s2444_s13 = smov %s2446_s15 }
 0x86d   :  { %12 = sbr.rel (!%p10_p5) target bundleno = 2 (0x2), region = 86 }

// kernel: deepspeech2_forward.13
= control target key start
LH: loop header
LB: loop body
LE: loop exit
PB: predicated region body
PF: predicated region fallthrough
CT: control target
= control target key end

     0   :  { %s914_s15 = smov 0   ;;  %s916_s16 = smov 0   ;;  %s1018_s0 = inlined_call_operand.vmem [shape: bf16[16,128], index: 0, kind: input, shape index: {}]   ;;  %s1019_s1 = inlined_call_operand.vmem [shape: bf16[128,768], index: 1, kind: input, shape index: {}]   ;;  %s1020_s2 = inlined_call_operand.vmem [shape: f32[1,768], index: 2, kind: input, shape index: {}]   ;;  %s1021_s3 = inlined_call_operand.vmem [shape: f32[1,768], index: 3, kind: input, shape index: {}]   ;;  %s1022_s4 = inlined_call_operand.vmem [shape: f32[16,768], index: 4, kind: output, shape index: {}]  }
   0x1   :  { %s918_s17 = smov 0   ;;  %s920_s18 = smov 0  }
   0x2   :  { %s922_s19 = smov 0  }
   0x3 LB: > { %s29_s20 = sadd.s32 1, %s882_s18  ;;  %s745_s21 = sadd.s32 4294967295, %s886_s19   ;;  %s886_s19 = sphi %s922_s19, %s14_s19   ;;  %s882_s18 = sphi %s920_s18, %s1027_s18   ;;  %s878_s17 = sphi %s918_s17, %s1026_s17   ;;  %s874_s16 = sphi %s916_s16, %s1025_s16   ;;  %s870_s15 = sphi %s914_s15, %s1024_s15  }
   0x4   : > { %p31_p0 = scmp.ge.s32.totalorder %s29_s20, 3  ;;  %p77_p1 = scmp.ne.s32.totalorder %s874_s16, %s870_s15 }
   0x5   : > { %p78_p2 = scmp.eq.s32.totalorder %s886_s19, 0  ;;  %p161_p4 = scmp.eq.s32.totalorder %s745_s21, 2 }
   0x6   : > { %s1029_s20 = smov (%p31_p0, %s29_s20), 0  ;;  %s70_s23 = sadd.s32 1, %s874_s16 }
   0x7   : > { %p79_p3 = por %p78_p2, %p77_p1  ;;  %s66_s22 = ssub.s32 %s882_s18, %s1029_s20 }
   0x8   : > { %p68_p5 = scmp.eq.s32.totalorder %s66_s22, 0  ;;  %p949_p6 = por %p161_p4, %p77_p1 }
   0x9   : > { %p749_p7 = scmp.ge.s32.totalorder %s886_s19, 3 }
   0xa   : > { %s954_s25 = scalar_select %p68_p5, %s874_s16, %s70_s23  }
   0xb   : > { %195 = sbr.rel (%p749_p7) target bundleno = 30 (0x1e), region = 20 }
  0x12   : > { %198 = sbr.rel (!%p79_p3) target bundleno = 30 (0x1e), region = 24  ;;  %s200_s26 = sand.u32 (%p79_p3), 1, %s874_s16  }
  0x13   : > { %s780_s27 = sshll.u32 (%p79_p3), %s882_s18, 3  ;;  %s750_s28 = sshll.u32 (%p79_p3), %s200_s26, 7 }
  0x14   : > { %s962_s5 = scalar_lea.vmem (%p79_p3), %s1019_s1, %s780_s27  ;;  %s202_s6 = scalar_lea.vmem (%p79_p3), [#allocation3], %s750_s28 }
  0x15   : > { %v266_v0 = vld [vmem:[%s962_s5] sm:$0xff] (%p79_p3)  ;;  %v268_v1 = vld [vmem:[%s962_s5 + $0x18] sm:$0xff] (%p79_p3)  ;;  %v270_v2 = vld [vmem:[%s962_s5 + $0x30] sm:$0xff] (%p79_p3) }
  0x16   : > { %267 = vst [vmem:[%s202_s6] sm:$0xff] (%p79_p3), %v266_v0  ;;  %269 = vst [vmem:[%s202_s6 + $0x8] sm:$0xff] (%p79_p3), %v268_v1  ;;  %v272_v3 = vld [vmem:[%s962_s5 + $0x48] sm:$0xff] (%p79_p3)  ;;  %v274_v4 = vld [vmem:[%s962_s5 + $0x60] sm:$0xff] (%p79_p3) }
  0x17   : > { %271 = vst [vmem:[%s202_s6 + $0x10] sm:$0xff] (%p79_p3), %v270_v2  ;;  %v276_v5 = vld [vmem:[%s962_s5 + $0x78] sm:$0xff] (%p79_p3)  ;;  %273 = vst [vmem:[%s202_s6 + $0x18] sm:$0xff] (%p79_p3), %v272_v3  ;;  %v278_v6 = vld [vmem:[%s962_s5 + $0x90] sm:$0xff] (%p79_p3) }
  0x18   : > { %275 = vst [vmem:[%s202_s6 + $0x20] sm:$0xff] (%p79_p3), %v274_v4  ;;  %277 = vst [vmem:[%s202_s6 + $0x28] sm:$0xff] (%p79_p3), %v276_v5  ;;  %v280_v7 = vld [vmem:[%s962_s5 + $0xa8] sm:$0xff] (%p79_p3)  ;;  %v282_v8 = vld [vmem:[%s962_s5 + $0xc0] sm:$0xff] (%p79_p3) }
  0x19   : > { %279 = vst [vmem:[%s202_s6 + $0x30] sm:$0xff] %v278_v6  ;;  %281 = vst [vmem:[%s202_s6 + $0x38] sm:$0xff] %v280_v7  ;;  %v284_v9 = vld [vmem:[%s962_s5 + $0xd8] sm:$0xff]  ;;  %v286_v10 = vld [vmem:[%s962_s5 + $0xf0] sm:$0xff] }
  0x1a   : > { %283 = vst [vmem:[%s202_s6 + $0x40] sm:$0xff] %v282_v8  ;;  %v288_v11 = vld [vmem:[%s962_s5 + $0x108] sm:$0xff]  ;;  %285 = vst [vmem:[%s202_s6 + $0x48] sm:$0xff] %v284_v9  ;;  %v290_v12 = vld [vmem:[%s962_s5 + $0x120] sm:$0xff] }
  0x1b   : > { %287 = vst [vmem:[%s202_s6 + $0x50] sm:$0xff] %v286_v10  ;;  %289 = vst [vmem:[%s202_s6 + $0x58] sm:$0xff] %v288_v11  ;;  %v292_v13 = vld [vmem:[%s962_s5 + $0x138] sm:$0xff]  ;;  %v294_v14 = vld [vmem:[%s962_s5 + $0x150] sm:$0xff] }
  0x1c   : > { %291 = vst [vmem:[%s202_s6 + $0x60] sm:$0xff] %v290_v12  ;;  %293 = vst [vmem:[%s202_s6 + $0x68] sm:$0xff] %v292_v13  ;;  %v296_v15 = vld [vmem:[%s962_s5 + $0x168] sm:$0xff] }
  0x1d   : > { %295 = vst [vmem:[%s202_s6 + $0x70] sm:$0xff] %v294_v14  ;;  %297 = vst [vmem:[%s202_s6 + $0x78] sm:$0xff] %v296_v15 }
  0x1e PF: > { %p753_p8 = scmp.ge.s32.totalorder %s886_s19, 1  ;;  %p318_p9 = scmp.lt.s32.totalorder %s886_s19, 4 }
  0x20   : > { %p319_p10 = pnand %p753_p8, %p318_p9 }
  0x21   : > { %s325_s7 = sand.u32 (!%p319_p10), 1, %s870_s15   ;;  %v888_v16 = vmov (!%p319_p10), 0   ;;  %v847_v33 = vld [vmem:[%s1018_s0] sm:$0xff] (!%p319_p10)   ;;  %s756_s12 = sshll.u32 (!%p319_p10), %s878_s17, 1  ;;  %v565_v34 = vlaneseq (!%p319_p10) }
  0x22   : > { %322 = sbr.rel (%p319_p10) target bundleno = 297 (0x129), region = 70  ;;  %s754_s8 = sshll.u32 (!%p319_p10), %s325_s7, 7  ;;  %537 = vmatprep.mubr.bf16.mxu0 (!%p319_p10), %v888_v16 }
  0x23   : > { %s327_s9 = scalar_lea.vmem (!%p319_p10), [#allocation3], %s754_s8  ;;  %p377_p11 = scmp.lt.s32.totalorder (!%p319_p10), %s756_s12, 5  ;;  %v566_v35 = vshrl.u32 (!%p319_p10), %v565_v34, 7 }
  0x24   : > { %v823_v17 = vld [vmem:[%s327_s9 + $0x4] ss:$8 sps:$4 sm:$0xff] (!%p319_p10)   ;;  %v825_v18 = vld [vmem:[%s327_s9] ss:$8 sps:$4 sm:$0xff] (!%p319_p10)   ;;  %v826_v19 = vld [vmem:[%s327_s9 + $0x14] ss:$8 sps:$4 sm:$0xff] (!%p319_p10)  }
  0x25   : > { %505 = vmatprep.subr.bf16.mxu0 (!%p319_p10), %v823_v17  ;;  %v828_v20 = vld [vmem:[%s327_s9 + $0x10] ss:$8 sps:$4 sm:$0xff] (!%p319_p10)   ;;  %v829_v21 = vld [vmem:[%s327_s9 + $0x24] ss:$8 sps:$4 sm:$0xff] (!%p319_p10)   ;;  %v831_v22 = vld [vmem:[%s327_s9 + $0x20] ss:$8 sps:$4 sm:$0xff] (!%p319_p10)  }
  0x26   : > { %506 = vmatpush1.bf16.msra.mxu0 (!%p319_p10), %v825_v18  ;;  %v832_v23 = vld [vmem:[%s327_s9 + $0x34] ss:$8 sps:$4 sm:$0xff] (!%p319_p10)   ;;  %v834_v24 = vld [vmem:[%s327_s9 + $0x30] ss:$8 sps:$4 sm:$0xff] (!%p319_p10)   ;;  %v835_v25 = vld [vmem:[%s327_s9 + $0x44] ss:$8 sps:$4 sm:$0xff] (!%p319_p10)  }
  0x27   : > { %507 = vmatprep.subr.bf16.mxu0 (!%p319_p10), %v826_v19  ;;  %v837_v26 = vld [vmem:[%s327_s9 + $0x40] ss:$8 sps:$4 sm:$0xff] (!%p319_p10)   ;;  %v838_v27 = vld [vmem:[%s327_s9 + $0x54] ss:$8 sps:$4 sm:$0xff] (!%p319_p10)   ;;  %v840_v28 = vld [vmem:[%s327_s9 + $0x50] ss:$8 sps:$4 sm:$0xff] (!%p319_p10)  }
  0x28   : > { %v841_v29 = vld [vmem:[%s327_s9 + $0x64] ss:$8 sps:$4 sm:$0xff] (!%p319_p10)   ;;  %v843_v30 = vld [vmem:[%s327_s9 + $0x60] ss:$8 sps:$4 sm:$0xff] (!%p319_p10)   ;;  %v844_v31 = vld [vmem:[%s327_s9 + $0x74] ss:$8 sps:$4 sm:$0xff] (!%p319_p10)  }
  0x29   : > { %v846_v32 = vld [vmem:[%s327_s9 + $0x70] ss:$8 sps:$4 sm:$0xff]   ;;  %s1031_s12 = smov (!%p377_p11, %s756_s12), 5  ;;  %v567_v36 = vsub.s32 0, %v566_v35  ;;  %v571_v38 = vsub.s32 1, %v566_v35  ;;  %s755_s27 = sshll.u32 %s325_s7, 5 }
  0x2a   : > { %508 = vmatpush1.bf16.msra.mxu0 %v828_v20  ;;  %s379_s21 = scalar_lea.vmem %s1020_s2, %s1031_s12  ;;  %s384_s26 = scalar_lea.vmem %s1021_s3, %s1031_s12 }
  0x2b   : > { %509 = vmatprep.subr.bf16.mxu0 %v829_v21  ;;  %v563_v37 = vld [vmem:[%s379_s21] sm:$0x3]  ;;  %s364_s28 = scalar_lea.vmem [#allocation4], %s755_s27  ;;  %s781_s15 = sshll.u32 (%p949_p6), %s878_s17, 4 }
  0x2c   : > { %v579_v39 = vld [vmem:[%s384_s26] sm:$0x3]  ;;  %v568_v40 = vrot.slane %v563_v37, %v567_v36  ;;  %v572_v41 = vrot.slane %v563_v37, %v571_v38  ;;  %s611_s5 = scalar_lea.vmem (%p949_p6), %s1022_s4, %s781_s15 }
  0x2d   : > { %v584_v42 = vrot.slane %v579_v39, %v567_v36  ;;  %v588_v44 = vrot.slane %v579_v39, %v571_v38 }
  0x2e   : > { %510 = vmatpush1.bf16.msra.mxu0 %v831_v22 }
  0x2f   : > { %511 = vmatprep.subr.bf16.mxu0 %v832_v23 }
  0x32   : > { %512 = vmatpush1.bf16.msra.mxu0 %v834_v24 }
  0x33   : > { %513 = vmatprep.subr.bf16.mxu0 %v835_v25 }
  0x36   : > { %514 = vmatpush1.bf16.msra.mxu0 %v837_v26 }
  0x37   : > { %515 = vmatprep.subr.bf16.mxu0 %v838_v27 }
  0x3a   : > { %516 = vmatpush1.bf16.msra.mxu0 %v840_v28 }
  0x3b   : > { %517 = vmatprep.subr.bf16.mxu0 %v841_v29 }
  0x3e   : > { %518 = vmatpush1.bf16.msra.mxu0 %v843_v30 }
  0x3f   : > { %519 = vmatprep.subr.bf16.mxu0 %v844_v31 }
  0x42   : > { %520 = vmatpush1.bf16.msra.mxu0 %v846_v32 }
  0x45   : > { %538 = vmatmul.mubr.bf16.vlgmr.msra.gmra.mrb[0].mxu0 %v847_v33 }
 0x118   : > { %v539_v43 = vpop.f32.mrb[0].mxu0 }
 0x119   : > { %v575_v45 = vmul.f32 %v568_v40, %v539_v43  ;;  %v541_v46 = vpop.f32.mrb[1].mxu0 }
 0x11a   : > { %v576_v47 = vmul.f32 %v572_v41, %v541_v46  ;;  %v543_v48 = vpop.f32.mrb[2].mxu0  ;;  %605 = sbr.rel (!%p949_p6) target bundleno = 297 (0x129), region = 86 }
 0x11b   : > { %v591_v49 = vadd.f32 %v584_v42, %v575_v45  ;;  %v577_v50 = vmul.f32 %v568_v40, %v543_v48  ;;  %v545_v51 = vpop.f32.mrb[3].mxu0 }
 0x11c   : > { %v592_v52 = vadd.f32 %v588_v44, %v576_v47  ;;  %v578_v53 = vmul.f32 %v572_v41, %v545_v51 }
 0x11d   : > { %595 = vst [vmem:[%s364_s28] sm:$0xff] %v591_v49  ;;  %v593_v54 = vadd.f32 %v584_v42, %v577_v50 }
 0x11e   : > { %596 = vst [vmem:[%s364_s28 + $0x8] sm:$0xff] %v592_v52  ;;  %v594_v55 = vadd.f32 %v588_v44, %v578_v53 }
 0x11f   : > { %597 = vst [vmem:[%s364_s28 + $0x10] sm:$0xff] %v593_v54 }
 0x120   : > { %598 = vst [vmem:[%s364_s28 + $0x18] sm:$0xff] %v594_v55 }
 0x124   : > { %v624_v56 = vld [vmem:[%s364_s28] sm:$0xff] }
 0x125   : > { %v626_v57 = vld [vmem:[%s364_s28 + $0x8] sm:$0xff]  ;;  %625 = vst [vmem:[%s611_s5] sm:$0xff] %v624_v56 }
 0x126   : > { %v628_v58 = vld [vmem:[%s364_s28 + $0x10] sm:$0xff]  ;;  %627 = vst [vmem:[%s611_s5 + $0x8] sm:$0xff] %v626_v57 }
 0x127   : > { %v630_v59 = vld [vmem:[%s364_s28 + $0x18] sm:$0xff]  ;;  %629 = vst [vmem:[%s611_s5 + $0x30] sm:$0xff] %v628_v58 }
 0x128   : > { %631 = vst [vmem:[%s611_s5 + $0x38] sm:$0xff] %v630_v59 }
 0x129 PF: > { %s14_s19 = sadd.s32 1, %s886_s19   ;;  %s1024_s15 = smov %s874_s16 }
 0x12a   : > { %p11_p12 = scmp.ge.s32.totalorder %s14_s19, 5   ;;  %s1025_s16 = smov %s954_s25 }
 0x12b   : > { %s1026_s17 = smov %s882_s18  ;;  %s1027_s18 = smov %s1029_s20 }
 0x12c   :  { %13 = sbr.rel (!%p11_p12) target bundleno = 3 (0x3), region = 149 }

// kernel: deepspeech2_forward.15
= control target key start
LH: loop header
LB: loop body
LE: loop exit
PB: predicated region body
PF: predicated region fallthrough
CT: control target
= control target key end

     0   :  { %v226_v0 = vmov 0.0   ;;  %vm227_vm0 = vmmov 0   ;;  %v135_v10 = vlaneseq  ;;  %s284_s1 = inlined_call_operand.vmem [shape: bf16[128,128], index: 1, kind: input, shape index: {}]   ;;  %s285_s0 = inlined_call_operand.vmem [shape: bf16[16,128], index: 0, kind: input, shape index: {}]   ;;  %s286_s2 = inlined_call_operand.vmem [shape: f32[1,128], index: 2, kind: input, shape index: {}]   ;;  %s287_s3 = inlined_call_operand.vmem [shape: f32[16,128], index: 3, kind: output, shape index: {}]  }
   0x1   :  { %187 = vmatprep.subr.bf16.mxu0 %v226_v0  ;;  %v209_v1 = vld [vmem:[%s284_s1] sm:$0xff]   ;;  %203 = vmatprep.mubr.msk.bf16.mxu0 %vm227_vm0, %v226_v0  ;;  %v210_v2 = vld [vmem:[%s284_s1 + $0x8] sm:$0xff]   ;;  %v211_v3 = vld [vmem:[%s284_s1 + $0x10] sm:$0xff]  }
   0x2   :  { %188 = vmatpush3.bf16.msra.mxu0 %v209_v1  ;;  %v212_v4 = vld [vmem:[%s284_s1 + $0x18] sm:$0xff]   ;;  %v213_v5 = vld [vmem:[%s284_s1 + $0x20] sm:$0xff]   ;;  %v214_v6 = vld [vmem:[%s284_s1 + $0x28] sm:$0xff]   ;;  %v136_v11 = vand.u32 127, %v135_v10 }
   0x3   :  { %189 = vmatprep.subr.bf16.mxu0 %v226_v0  ;;  %v215_v7 = vld [vmem:[%s284_s1 + $0x30] sm:$0xff]   ;;  %v216_v8 = vld [vmem:[%s284_s1 + $0x38] sm:$0xff]   ;;  %v217_v9 = vld [vmem:[%s285_s0] sm:$0xff]  }
   0x4   :  { %v168_v12 = vld [vmem:[%s286_s2] ss:$0 sm:$0xff]  ;;  %vm137_vm1 = vcmp.lt.s32.totalorder %v136_v11, 10 }
   0x6   :  { %190 = vmatpush3.bf16.msra.mxu0 %v210_v2 }
   0x7   :  { %191 = vmatprep.subr.bf16.mxu0 %v226_v0 }
   0xa   :  { %192 = vmatpush3.bf16.msra.mxu0 %v211_v3 }
   0xb   :  { %193 = vmatprep.subr.bf16.mxu0 %v226_v0 }
   0xe   :  { %194 = vmatpush3.bf16.msra.mxu0 %v212_v4 }
   0xf   :  { %195 = vmatprep.subr.bf16.mxu0 %v226_v0 }
  0x12   :  { %196 = vmatpush3.bf16.msra.mxu0 %v213_v5 }
  0x13   :  { %197 = vmatprep.subr.bf16.mxu0 %v226_v0 }
  0x16   :  { %198 = vmatpush3.bf16.msra.mxu0 %v214_v6 }
  0x17   :  { %199 = vmatprep.subr.bf16.mxu0 %v226_v0 }
  0x1a   :  { %200 = vmatpush3.bf16.msra.mxu0 %v215_v7 }
  0x1b   :  { %201 = vmatprep.subr.bf16.mxu0 %v226_v0 }
  0x1e   :  { %202 = vmatpush3.bf16.msra.mxu0 %v216_v8 }
  0x21   :  { %204 = vmatmul.mubr.bf16.vlgmr.msra.gmra.mrb[0].mxu0 %v217_v9 }
  0xf4   :  { %v128_v13 = vpop.f32.mrb[0].mxu0 }
  0xf5   :  { %v129_v14 = vadd.f32 %v168_v12, %v128_v13  ;;  %v205_v15 = vpop.f32.mrb[1].mxu0 }
  0xf6   :  { %v131_v16 = vpop.f32.mrb[2].mxu0 }
  0xf7   :  { %v132_v17 = vadd.f32 %v168_v12, %v131_v16  ;;  %v206_v18 = vpop.f32.mrb[3].mxu0  ;;  %v138_v19 = vsel %vm137_vm1, %v129_v14, -inf }
  0xf8   :  { %140 = vmax.xlane.f32.xlu0 %v138_v19 }
  0xf9   :  { %v139_v20 = vsel %vm137_vm1, %v132_v17, -inf }
  0xfc   :  { %142 = vmax.xlane.f32.xlu0 %v139_v20 }
 0x185   :  { %v141_v21 = vpop.xlane.xlu0 %140 }
 0x186   :  { %v144_v22 = vsub.f32 %v138_v19, %v141_v21 }
 0x188   :  { %v146_v23 = vmul.f32 1.442695, %v144_v22 }
 0x189   :  { %v143_v24 = vpop.xlane.xlu0 %142 }
 0x18a   :  { %v145_v25 = vsub.f32 %v139_v20, %v143_v24  ;;  %218 = vpow2.f32 %v146_v23 }
 0x18c   :  { %v148_v26 = vmul.f32 1.442695, %v145_v25 }
 0x18e   :  { %220 = vpow2.f32 %v148_v26 }
 0x194   :  { %v219_v27 = vpop.eup %218 }
 0x195   :  { %150 = vadd.xlane.f32.xlu1 %v219_v27 }
 0x198   :  { %v221_v28 = vpop.eup %220 }
 0x199   :  { %152 = vadd.xlane.f32.xlu1 %v221_v28 }
 0x222   :  { %v151_v29 = vpop.xlane.xlu1 %150 }
 0x223   :  { %222 = vlog2.f32 %v151_v29 }
 0x226   :  { %v153_v30 = vpop.xlane.xlu1 %152 }
 0x227   :  { %224 = vlog2.f32 %v153_v30 }
 0x22d   :  { %v223_v31 = vpop.eup %222 }
 0x22e   :  { %v155_v32 = vmul.f32 0.6931472, %v223_v31 }
 0x230   :  { %v158_v33 = vadd.f32 %v155_v32, %v141_v21 }
 0x231   :  { %v225_v34 = vpop.eup %224 }
 0x232   :  { %v160_v35 = vsub.f32 %v138_v19, %v158_v33  ;;  %v157_v36 = vmul.f32 0.6931472, %v225_v34 }
 0x234   :  { %162 = vst [vmem:[%s287_s3] sm:$0xff] %v160_v35  ;;  %v159_v37 = vadd.f32 %v157_v36, %v143_v24 }
 0x236   :  { %v161_v38 = vsub.f32 %v139_v20, %v159_v37 }
 0x238   :  { %163 = vst [vmem:[%s287_s3 + $0x8] sm:$0xff] %v161_v38 }

</bundles_post_ra>
